<compile_context>
chip_gen: v5e
topology: v5e:2x2
jax: 0.10.0
libtpu: 0.0.40
codegen_flags: <defaults>
</compile_context>

<pallas_src>
import math

import jax
import jax.numpy as jnp
from jax import lax
from jax.experimental import pallas as pl
from jax.experimental.pallas import tpu as pltpu


# ---------------------------------------------------------------------------
# Model configuration (small, deterministic, synthetic).
# ---------------------------------------------------------------------------
DIM_T = 128            # timestep embedding dim (module default)
HALF = DIM_T // 2      # 64  (DIM_T is even -> no zero-pad column needed)
D_IN = 16              # rtdl_params['d_in']
D_LAYERS = [32, 32]    # MLP.make_baseline d_layers
D_OUT = 16             # rtdl_params['d_out']
BATCH = 256            # example batch (exercises a 2-step "parallel" grid)


def _init_linear(key, d_in, d_out):
    """Deterministic init mimicking nn.Linear (kaiming-uniform-ish)."""
    kw, kb = jax.random.split(key)
    bound = 1.0 / math.sqrt(d_in)
    w = jax.random.uniform(kw, (d_in, d_out), jnp.float32, -bound, bound)
    b = jax.random.uniform(kb, (1, d_out), jnp.float32, -bound, bound)
    return w, b


def make_params(key):
    keys = jax.random.split(key, 3 + len(D_LAYERS) + 1)
    params = {}
    # time_embed: Linear(dim_t, dim_t) -> SiLU -> Linear(dim_t, d_in)
    params["wt1"], params["bt1"] = _init_linear(keys[0], DIM_T, DIM_T)
    params["wt2"], params["bt2"] = _init_linear(keys[1], DIM_T, D_IN)
    # MLP blocks: Linear + ReLU (+ Dropout, identity at eval time)
    dims = [D_IN] + D_LAYERS
    params["blocks"] = []
    for i in range(len(D_LAYERS)):
        w, b = _init_linear(keys[2 + i], dims[i], dims[i + 1])
        params["blocks"].append((w, b))
    # head
    params["wh"], params["bh"] = _init_linear(
        keys[2 + len(D_LAYERS)], D_LAYERS[-1] if D_LAYERS else D_IN, D_OUT
    )
    return params


def pack_params(params):
    """Pack all linears into one [5,128,128] weight stack + one [5,128] bias
    stack, zero-padded to 128 lanes.  Zero padding is exact: padded rows/cols
    contribute nothing to the valid output lanes (this invariant is relied on
    by the in-kernel padded matmuls)."""

    def pad_w(w):
        d_in, d_out = w.shape
        return jnp.zeros((DIM_T, DIM_T), jnp.float32).at[:d_in, :d_out].set(w)

    def pad_b(b):
        b = b.reshape(-1)
        return jnp.zeros((DIM_T,), jnp.float32).at[: b.shape[0]].set(b)

    ws = [params["wt1"], params["wt2"],
          params["blocks"][0][0], params["blocks"][1][0], params["wh"]]
    bs = [params["bt1"], params["bt2"],
          params["blocks"][0][1], params["blocks"][1][1], params["bh"]]
    w_stack = jnp.stack([pad_w(w) for w in ws])    # [5, 128, 128]
    b_stack = jnp.stack([pad_b(b) for b in bs])    # [5, 128]
    return w_stack, b_stack


def _pick_tile_n(n):
    """Pick the batch tile (rows per grid step) from the static batch size.

    Prefer the largest tile in {1024,512,256,128} that yields an even (>=2)
    grid so both v7x TensorCores get work under dimension_semantics=
    ("parallel",); otherwise fall back to the fewest/biggest steps (best on
    the single-TC v5e/v6e)."""
    n128 = pl.cdiv(n, 128) * 128
    for tile in (1024, 512, 256, 128):
        steps = n128 // tile
        if n128 % tile == 0 and steps >= 2 and steps % 2 == 0:
            return tile
    for tile in (1024, 512, 256, 128):
        if n128 % tile == 0:
            return tile
    return 128


# ---------------------------------------------------------------------------
# Pallas kernel: full MLPDiffusion forward for one batch tile.
# ---------------------------------------------------------------------------
def mlpdiffusion_kernel(
    ts_ref,      # [TILE_N, 1]        f32 timesteps (per tile)
    x_ref,       # [TILE_N, D_IN]     f32 input (natural width, no lane pad)
    w_ref,       # [5, DIM_T, DIM_T]  padded weight stack (VMEM-resident)
    b_ref,       # [5, DIM_T]         padded bias stack   (VMEM-resident)
    out_ref,     # [TILE_N, D_OUT]    narrow output block
):
    # --- sinusoidal timestep embedding; freqs rebuilt in-kernel -------------
    lane = lax.broadcasted_iota(jnp.int32, (1, HALF), 1).astype(jnp.float32)
    freqs = jnp.exp(-math.log(10000.0) * lane / HALF)      # [1, HALF]
    args = ts_ref[...] * freqs                              # [TILE_N, HALF]
    cos_part = jnp.cos(args)
    sin_part = jnp.sin(args)

    # --- time_embed: Linear(dim_t, dim_t) -> SiLU -> Linear(dim_t, d_in) ----
    # concat([cos, sin]) @ Wt1  ==  cos @ Wt1[:HALF] + sin @ Wt1[HALF:]
    wt1 = w_ref[0]                                          # [128, 128]
    h = (
        jnp.dot(cos_part, wt1[:HALF, :], preferred_element_type=jnp.float32)
        + jnp.dot(sin_part, wt1[HALF:, :], preferred_element_type=jnp.float32)
        + b_ref[0:1, :]
    )
    h = h * jax.nn.sigmoid(h)                               # SiLU
    emb = jnp.dot(h, w_ref[1], preferred_element_type=jnp.float32) + b_ref[1:2, :]

    # --- x = x + emb (narrow 16-lane path) -----------------------------------
    z = x_ref[...] + emb[:, :D_IN]                          # [TILE_N, 16]

    # --- MLP baseline: Block(Linear -> ReLU -> Dropout[eval=identity]) x2 ---
    h1 = jnp.dot(z, w_ref[2][:D_IN, :], preferred_element_type=jnp.float32) + b_ref[2:3, :]
    h1 = jnp.maximum(h1, 0.0)                               # lanes >= 32 stay 0
    h2 = jnp.dot(h1, w_ref[3], preferred_element_type=jnp.float32) + b_ref[3:4, :]
    h2 = jnp.maximum(h2, 0.0)
    # Dropout is identity in eval mode (no RNG needed).

    # --- head: narrow [TILE_N, D_OUT] store (no wrapper slice needed) -------
    out = jnp.dot(h2, w_ref[4], preferred_element_type=jnp.float32) + b_ref[4:5, :]
    out_ref[...] = out[:, :D_OUT]


@jax.jit
def mlpdiffusion_forward(w_stack, b_stack, x, timesteps):
    n, d_in = x.shape
    assert d_in == D_IN
    tile_n = _pick_tile_n(n)
    n_pad = pl.cdiv(n, tile_n) * tile_n

    x = x.astype(jnp.float32)
    ts = timesteps.astype(jnp.float32).reshape(-1, 1)
    if n_pad != n:                                   # narrow row-pad only
        x = jnp.pad(x, ((0, n_pad - n), (0, 0)))
        ts = jnp.pad(ts, ((0, n_pad - n), (0, 0)))

    grid = (n_pad // tile_n,)
    out = pl.pallas_call(
        mlpdiffusion_kernel,
        out_shape=jax.ShapeDtypeStruct((n_pad, D_OUT), jnp.float32),
        grid=grid,
        in_specs=[
            pl.BlockSpec((tile_n, 1), lambda i: (i, 0)),           # ts
            pl.BlockSpec((tile_n, D_IN), lambda i: (i, 0)),        # x (narrow)
            pl.BlockSpec((5, DIM_T, DIM_T), lambda i: (0, 0, 0)),  # W stack (resident)
            pl.BlockSpec((5, DIM_T), lambda i: (0, 0)),            # B stack (resident)
        ],
        out_specs=pl.BlockSpec((tile_n, D_OUT), lambda i: (i, 0)),
        compiler_params=pltpu.CompilerParams(
            dimension_semantics=("parallel",),   # shard batch across TCs (v7x)
        ),
    )(ts, x, w_stack, b_stack)

    return out if n_pad == n else out[:n]


# ---------------------------------------------------------------------------
# Pure-JAX reference (for a sanity check of the kernel).
# ---------------------------------------------------------------------------
def reference_forward(params, x, timesteps):
    freqs = jnp.exp(
        -math.log(10000.0) * jnp.arange(HALF, dtype=jnp.float32) / HALF
    )
    args = timesteps.astype(jnp.float32)[:, None] * freqs[None, :]
    temb = jnp.concatenate([jnp.cos(args), jnp.sin(args)], axis=-1)
    h = temb @ params["wt1"] + params["bt1"]
    h = h * jax.nn.sigmoid(h)
    emb = h @ params["wt2"] + params["bt2"]
    z = x.astype(jnp.float32) + emb
    for w, b in params["blocks"]:
        z = jnp.maximum(z @ w + b, 0.0)
    return z @ params["wh"] + params["bh"]


if __name__ == "__main__":
    key = jax.random.PRNGKey(0)
    kp, kx, kt = jax.random.split(key, 3)

    params = make_params(kp)
    w_stack, b_stack = pack_params(params)

    x = jax.random.normal(kx, (BATCH, D_IN), jnp.float32)
    timesteps = jax.random.uniform(kt, (BATCH,), jnp.float32, 0.0, 1000.0)

    out = mlpdiffusion_forward(w_stack, b_stack, x, timesteps)
    out = jax.block_until_ready(out)

    ref = reference_forward(params, x, timesteps)
    assert out.shape == (BATCH, D_OUT)
    # Tolerance is 1e-3: the in-kernel iota/exp frequency rebuild and MXU
    # DEFAULT-precision dots are not bit-identical to the XLA-folded reference
    # (ts up to 1000 amplifies ulp-level arg differences through cos/sin).
    assert jnp.allclose(out, ref, atol=1e-3, rtol=1e-3), "kernel mismatch vs reference"

    print("KERNEL_OK")
</pallas_src>

<mosaic_0001>
module attributes {stable_mosaic.version = 11 : i64} {
  func.func @mlpdiffusion_kernel(%arg0: i32, %arg1: memref<128x1xf32, #tpu.memory_space<vmem>>, %arg2: memref<128x16xf32, #tpu.memory_space<vmem>>, %arg3: memref<5x128x128xf32, #tpu.memory_space<vmem>>, %arg4: memref<5x128xf32, #tpu.memory_space<vmem>>, %arg5: memref<128x16xf32, #tpu.memory_space<vmem>>) attributes {dimension_semantics = [#tpu.dimension_semantics<parallel>], iteration_bounds = array<i64: 2>, scalar_prefetch = 0 : i64, scratch_operands = 0 : i64, tpu.core_type = #tpu.core_type<tc>, window_params = [{transform_indices = @transform_0, window_bounds = array<i64: 128, 1>}, {transform_indices = @transform_1, window_bounds = array<i64: 128, 16>}, {pipeline_mode = #tpu.pipeline_mode<synchronous>, transform_indices = @transform_2, window_bounds = array<i64: 5, 128, 128>}, {pipeline_mode = #tpu.pipeline_mode<synchronous>, transform_indices = @transform_3, window_bounds = array<i64: 5, 128>}, {transform_indices = @transform_4, window_bounds = array<i64: 128, 16>}]} {
    %0 = tpu.iota {dimensions = array<i32: 1>} : vector<1x64xi32>
    %1 = arith.sitofp %0 : vector<1x64xi32> to vector<1x64xf32>
    %cst = arith.constant -9.21034049 : f32
    %2 = vector.broadcast %cst : f32 to vector<1x64xf32>
    %3 = arith.mulf %2, %1 : vector<1x64xf32>
    %cst_0 = arith.constant 6.400000e+01 : f32
    %4 = vector.broadcast %cst_0 : f32 to vector<1x64xf32>
    %5 = arith.divf %3, %4 : vector<1x64xf32>
    %6 = math.exp %5 : vector<1x64xf32>
    %c0 = arith.constant 0 : index
    %c0_1 = arith.constant 0 : index
    %7 = vector.load %arg1[%c0, %c0_1] : memref<128x1xf32, #tpu.memory_space<vmem>>, vector<128x1xf32>
    %8 = vector.broadcast %7 : vector<128x1xf32> to vector<128x64xf32>
    %9 = vector.broadcast %6 : vector<1x64xf32> to vector<128x64xf32>
    %10 = arith.mulf %8, %9 : vector<128x64xf32>
    %11 = math.cos %10 : vector<128x64xf32>
    %12 = math.sin %10 : vector<128x64xf32>
    %c0_2 = arith.constant 0 : index
    %c0_3 = arith.constant 0 : index
    %c0_4 = arith.constant 0 : index
    %13 = vector.load %arg3[%c0_2, %c0_3, %c0_4] : memref<5x128x128xf32, #tpu.memory_space<vmem>>, vector<1x128x128xf32>
    %14 = vector.shape_cast %13 : vector<1x128x128xf32> to vector<128x128xf32>
    %15 = vector.extract_strided_slice %14 {offsets = [0, 0], sizes = [64, 128], strides = [1, 1]} : vector<128x128xf32> to vector<64x128xf32>
    %cst_5 = arith.constant dense<0.000000e+00> : vector<128x128xf32>
    %16 = tpu.matmul %11, %15, %cst_5 {dimension_numbers = #tpu.dot_dimension_numbers<[1], [0], [0], [1], [0, 0, 1, 1], [], []>} : vector<128x64xf32>, vector<64x128xf32>, vector<128x128xf32> -> vector<128x128xf32>
    %17 = vector.extract_strided_slice %14 {offsets = [64, 0], sizes = [64, 128], strides = [1, 1]} : vector<128x128xf32> to vector<64x128xf32>
    %cst_6 = arith.constant dense<0.000000e+00> : vector<128x128xf32>
    %18 = tpu.matmul %12, %17, %cst_6 {dimension_numbers = #tpu.dot_dimension_numbers<[1], [0], [0], [1], [0, 0, 1, 1], [], []>} : vector<128x64xf32>, vector<64x128xf32>, vector<128x128xf32> -> vector<128x128xf32>
    %19 = arith.addf %16, %18 : vector<128x128xf32>
    %c0_7 = arith.constant 0 : index
    %c0_8 = arith.constant 0 : index
    %20 = vector.load %arg4[%c0_7, %c0_8] : memref<5x128xf32, #tpu.memory_space<vmem>>, vector<1x128xf32>
    %21 = vector.broadcast %20 : vector<1x128xf32> to vector<128x128xf32>
    %22 = arith.addf %19, %21 : vector<128x128xf32>
    %23 = arith.negf %22 : vector<128x128xf32>
    %24 = math.exp %23 : vector<128x128xf32>
    %cst_9 = arith.constant 1.000000e+00 : f32
    %25 = vector.broadcast %cst_9 : f32 to vector<128x128xf32>
    %26 = arith.addf %25, %24 : vector<128x128xf32>
    %27 = arith.divf %25, %26 : vector<128x128xf32>
    %28 = arith.mulf %22, %27 : vector<128x128xf32>
    %c1 = arith.constant 1 : index
    %c0_10 = arith.constant 0 : index
    %c0_11 = arith.constant 0 : index
    %29 = vector.load %arg3[%c1, %c0_10, %c0_11] : memref<5x128x128xf32, #tpu.memory_space<vmem>>, vector<1x128x128xf32>
    %30 = vector.shape_cast %29 : vector<1x128x128xf32> to vector<128x128xf32>
    %cst_12 = arith.constant dense<0.000000e+00> : vector<128x128xf32>
    %31 = tpu.matmul %28, %30, %cst_12 {dimension_numbers = #tpu.dot_dimension_numbers<[1], [0], [0], [1], [0, 0, 1, 1], [], []>} : vector<128x128xf32>, vector<128x128xf32>, vector<128x128xf32> -> vector<128x128xf32>
    %c1_13 = arith.constant 1 : index
    %c0_14 = arith.constant 0 : index
    %32 = vector.load %arg4[%c1_13, %c0_14] : memref<5x128xf32, #tpu.memory_space<vmem>>, vector<1x128xf32>
    %33 = vector.broadcast %32 : vector<1x128xf32> to vector<128x128xf32>
    %34 = arith.addf %31, %33 : vector<128x128xf32>
    %c0_15 = arith.constant 0 : index
    %c0_16 = arith.constant 0 : index
    %35 = vector.load %arg2[%c0_15, %c0_16] : memref<128x16xf32, #tpu.memory_space<vmem>>, vector<128x16xf32>
    %36 = vector.extract_strided_slice %34 {offsets = [0, 0], sizes = [128, 16], strides = [1, 1]} : vector<128x128xf32> to vector<128x16xf32>
    %37 = arith.addf %35, %36 : vector<128x16xf32>
    %c2 = arith.constant 2 : index
    %c0_17 = arith.constant 0 : index
    %c0_18 = arith.constant 0 : index
    %38 = vector.load %arg3[%c2, %c0_17, %c0_18] : memref<5x128x128xf32, #tpu.memory_space<vmem>>, vector<1x128x128xf32>
    %39 = vector.shape_cast %38 : vector<1x128x128xf32> to vector<128x128xf32>
    %40 = vector.extract_strided_slice %39 {offsets = [0, 0], sizes = [16, 128], strides = [1, 1]} : vector<128x128xf32> to vector<16x128xf32>
    %cst_19 = arith.constant dense<0.000000e+00> : vector<128x128xf32>
    %41 = tpu.matmul %37, %40, %cst_19 {dimension_numbers = #tpu.dot_dimension_numbers<[1], [0], [0], [1], [0, 0, 1, 1], [], []>} : vector<128x16xf32>, vector<16x128xf32>, vector<128x128xf32> -> vector<128x128xf32>
    %c2_20 = arith.constant 2 : index
    %c0_21 = arith.constant 0 : index
    %42 = vector.load %arg4[%c2_20, %c0_21] : memref<5x128xf32, #tpu.memory_space<vmem>>, vector<1x128xf32>
    %43 = vector.broadcast %42 : vector<1x128xf32> to vector<128x128xf32>
    %44 = arith.addf %41, %43 : vector<128x128xf32>
    %cst_22 = arith.constant 0.000000e+00 : f32
    %45 = vector.broadcast %cst_22 : f32 to vector<128x128xf32>
    %46 = arith.maximumf %44, %45 : vector<128x128xf32>
    %c3 = arith.constant 3 : index
    %c0_23 = arith.constant 0 : index
    %c0_24 = arith.constant 0 : index
    %47 = vector.load %arg3[%c3, %c0_23, %c0_24] : memref<5x128x128xf32, #tpu.memory_space<vmem>>, vector<1x128x128xf32>
    %48 = vector.shape_cast %47 : vector<1x128x128xf32> to vector<128x128xf32>
    %cst_25 = arith.constant dense<0.000000e+00> : vector<128x128xf32>
    %49 = tpu.matmul %46, %48, %cst_25 {dimension_numbers = #tpu.dot_dimension_numbers<[1], [0], [0], [1], [0, 0, 1, 1], [], []>} : vector<128x128xf32>, vector<128x128xf32>, vector<128x128xf32> -> vector<128x128xf32>
    %c3_26 = arith.constant 3 : index
    %c0_27 = arith.constant 0 : index
    %50 = vector.load %arg4[%c3_26, %c0_27] : memref<5x128xf32, #tpu.memory_space<vmem>>, vector<1x128xf32>
    %51 = vector.broadcast %50 : vector<1x128xf32> to vector<128x128xf32>
    %52 = arith.addf %49, %51 : vector<128x128xf32>
    %cst_28 = arith.constant 0.000000e+00 : f32
    %53 = vector.broadcast %cst_28 : f32 to vector<128x128xf32>
    %54 = arith.maximumf %52, %53 : vector<128x128xf32>
    %c4 = arith.constant 4 : index
    %c0_29 = arith.constant 0 : index
    %c0_30 = arith.constant 0 : index
    %55 = vector.load %arg3[%c4, %c0_29, %c0_30] : memref<5x128x128xf32, #tpu.memory_space<vmem>>, vector<1x128x128xf32>
    %56 = vector.shape_cast %55 : vector<1x128x128xf32> to vector<128x128xf32>
    %cst_31 = arith.constant dense<0.000000e+00> : vector<128x128xf32>
    %57 = tpu.matmul %54, %56, %cst_31 {dimension_numbers = #tpu.dot_dimension_numbers<[1], [0], [0], [1], [0, 0, 1, 1], [], []>} : vector<128x128xf32>, vector<128x128xf32>, vector<128x128xf32> -> vector<128x128xf32>
    %c4_32 = arith.constant 4 : index
    %c0_33 = arith.constant 0 : index
    %58 = vector.load %arg4[%c4_32, %c0_33] : memref<5x128xf32, #tpu.memory_space<vmem>>, vector<1x128xf32>
    %59 = vector.broadcast %58 : vector<1x128xf32> to vector<128x128xf32>
    %60 = arith.addf %57, %59 : vector<128x128xf32>
    %61 = vector.extract_strided_slice %60 {offsets = [0, 0], sizes = [128, 16], strides = [1, 1]} : vector<128x128xf32> to vector<128x16xf32>
    %c0_34 = arith.constant 0 : index
    %c0_35 = arith.constant 0 : index
    %62 = vector.load %arg5[%c0_34, %c0_35] : memref<128x16xf32, #tpu.memory_space<vmem>>, vector<128x16xf32>
    tpu.vector_store %arg5[%c0_34, %c0_35], %61 {strides = array<i32>} : memref<128x16xf32, #tpu.memory_space<vmem>>, vector<128x16xf32>,
    return
  }
  func.func @transform_0(%arg0: i32) -> (i32, i32) {
    %c0_i32 = arith.constant 0 : i32
    %c0_i32_0 = arith.constant 0 : i32
    return %arg0, %c0_i32 : i32, i32
  }
  func.func @transform_1(%arg0: i32) -> (i32, i32) {
    %c0_i32 = arith.constant 0 : i32
    %c0_i32_0 = arith.constant 0 : i32
    return %arg0, %c0_i32 : i32, i32
  }
  func.func @transform_2(%arg0: i32) -> (i32, i32, i32) {
    %c0_i32 = arith.constant 0 : i32
    %c0_i32_0 = arith.constant 0 : i32
    %c0_i32_1 = arith.constant 0 : i32
    %c0_i32_2 = arith.constant 0 : i32
    return %c0_i32, %c0_i32_0, %c0_i32_1 : i32, i32, i32
  }
  func.func @transform_3(%arg0: i32) -> (i32, i32) {
    %c0_i32 = arith.constant 0 : i32
    %c0_i32_0 = arith.constant 0 : i32
    %c0_i32_1 = arith.constant 0 : i32
    return %c0_i32, %c0_i32_0 : i32, i32
  }
  func.func @transform_4(%arg0: i32) -> (i32, i32) {
    %c0_i32 = arith.constant 0 : i32
    %c0_i32_0 = arith.constant 0 : i32
    return %arg0, %c0_i32 : i32, i32
  }
}

</mosaic_0001>

<bundles_post_ra>
// kernel: mlpdiffusion_forward.1
= control target key start
LH: loop header
LB: loop body
LE: loop exit
PB: predicated region body
PF: predicated region fallthrough
CT: control target
= control target key end

     0   :  { %9 = vsyncpa [#allocation3], 0  ;;  %s6790_s15 = smov 0   ;;  %s10281_s0 = inlined_call_operand.vmem [shape: f32[256,1], index: 0, kind: input, shape index: {}]   ;;  %s10282_s1 = inlined_call_operand.vmem [shape: f32[256,16], index: 1, kind: input, shape index: {}]   ;;  %s10283_s2 = inlined_call_operand.hbm [shape: f32[5,128,128], index: 2, kind: input, shape index: {}]   ;;  %s10284_s3 = inlined_call_operand.vmem [shape: f32[5,128], index: 3, kind: input, shape index: {}]   ;;  %s10285_s4 = inlined_call_operand.vmem [shape: f32[256,16], index: 4, kind: output, shape index: {}]  }
   0x1 LB: > { %s151_s18 = sshll.u32 %s10283_s2, 4  ;;  %s6422_s19 = sadd.s32 4294967295, %s6752_s15   ;;  %s6752_s15 = sphi %s6790_s15, %s15_s15   ;;  %s152_s18 = int_to_ptr.hbm [resolvable:$true] %s151_s18 }
   0x2   : > { %p6424_p0 = scmp.ge.s32.totalorder %s6752_s15, 1  ;;  %p140_p1 = scmp.lt.s32.totalorder %s6752_s15, 3 }
   0x3   : > { %p6615_p2 = scmp.eq.s32.totalorder %s6422_s19, 0  ;;  %s6754_s20 = smov [#allocation2]  }
   0x4   : > { %p141_p3 = pnand %p6424_p0, %p140_p1  ;;  %s153_s21 = sshll.u32 %s6754_s20, 4  ;;  %s154_s21 = int_to_ptr.vmem [resolvable:$true] %s153_s21 }
   0x5   : > { %s6755_s22 = smov 128   ;;  %s6756_s23 = smov 8  }
   0x6   : > { %p6611_p4 = pneg %p141_p3  ;;  %190 = sbr.rel (%p141_p3) target bundleno = 1531 (0x5fb), region = 36 }
   0x8   : > { %p6612_p5 = pnand %p6615_p2, %p6611_p4 }
   0xa   : > { %6614 = dma.hbm_to_vmem [thread:$0]  (!%p6612_p5), %s152_s18, 10240, %s154_s21, [#allocation3], %s6755_s22, %s6755_s22, %s6756_s23  }
   0xb   : > { %6747 = dma.done.wait (%p6615_p2), [#allocation3], 10240  }
   0xc   : > { %6749 = vsyncadd (%p6615_p2), [#allocation3], 4294957056  ;;  %s6429_s24 = sshll.u32 %s6422_s19, 4  ;;  %v10294_v0 = vmov 0   ;;  %v6758_v17 = vmov 64.0   ;;  %v240_v20 = vlaneseq }
   0xd   : > { %6638 = vset.pattern.permute.xlu2 %v10294_v0  ;;  %6637 = vset.pattern.permute.xlu1 %v10294_v0  ;;  %p223_p6 = scmp.lt.s32.totalorder %s6429_s24, 31  ;;  %6644 = vrcp.f32 %v6758_v17  ;;  %v10304_v50 = vmov 920167782   ;;  %v10296_v52 = vmov 1326507024  }
   0xe   : > { %6636 = vset.pattern.permute.xlu0 %v10294_v0  ;;  %v241_v22 = vand.u32 127, %v240_v20  ;;  %v10310_v56 = vmov 2475754826   ;;  %v10307_v58 = vmov 2131351028  }
   0xf   : > { %s11220_s24 = smov (!%p223_p6, %s6429_s24), 31  ;;  %v10300_v62 = vmov 2102212464  }
  0x10   : > { %s6804_s25 = sshll.u32 %s11220_s24, 3  ;;  %v242_v24 = vcvt.s32.f32 %v241_v22 }
  0x11   : > { %s6810_s28 = scalar_lea.vmem %s10281_s0, %s6804_s25  ;;  %s10158_s7 = scalar_lea.vmem %s10282_s1, %s6804_s25 }
  0x12   : > { %v267_v1 = vld [vmem:[%s6810_s28 + $0x68] sm:$0xff]  ;;  %v265_v2 = vld [vmem:[%s6810_s28 + $0x58] sm:$0xff]  ;;  %v268_v4 = vld [vmem:[%s6810_s28 + $0x70] sm:$0xff]  ;;  %v243_v26 = vmul.f32 -9.2103405, %v242_v24  ;;  %s10244_s19 = scalar_lea.vmem %s10285_s4, %s6804_s25 }
  0x13   : > { %v263_v3 = vld [vmem:[%s6810_s28 + $0x48] sm:$0xff]  ;;  %337 = vperm.xlu2 %6638, %v267_v1   ;;  %327 = vperm.xlu1 %6637, %v265_v2   ;;  %v266_v5 = vld [vmem:[%s6810_s28 + $0x60] sm:$0xff]  ;;  %v264_v6 = vld [vmem:[%s6810_s28 + $0x50] sm:$0xff]  ;;  %v6645_v18 = vpop.eup %6644 }
  0x14   : > { %317 = vperm.xlu0 %6636, %v263_v3   ;;  %v255_v7 = vld [vmem:[%s6810_s28 + $0x8] sm:$0xff]  ;;  %v254_v8 = vld [vmem:[%s6810_s28] sm:$0xff]  ;;  %v269_v9 = vld [vmem:[%s6810_s28 + $0x78] sm:$0xff]  ;;  %v245_v19 = vmul.f32 64.0, %v6645_v18  ;;  %vm249_vm0 = vweird.f32 %v6645_v18 }
  0x15   : > { %v258_v10 = vld [vmem:[%s6810_s28 + $0x20] sm:$0xff]  ;;  %v257_v11 = vld [vmem:[%s6810_s28 + $0x18] sm:$0xff]  ;;  %v256_v12 = vld [vmem:[%s6810_s28 + $0x10] sm:$0xff] }
  0x16   : > { %v261_v13 = vld [vmem:[%s6810_s28 + $0x38] sm:$0xff]  ;;  %v260_v14 = vld [vmem:[%s6810_s28 + $0x30] sm:$0xff]  ;;  %v259_v15 = vld [vmem:[%s6810_s28 + $0x28] sm:$0xff]  ;;  %v246_v21 = vsub.f32 1.0, %v245_v19 }
  0x17   : > { %v262_v16 = vld [vmem:[%s6810_s28 + $0x40] sm:$0xff] }
  0x18   : > { %v247_v23 = vmul.f32 %v6645_v18, %v246_v21 }
  0x1a   : > { %v248_v25 = vadd.f32 %v6645_v18, %v247_v23 }
  0x1b   : > { %342 = vperm.xlu2 %6638, %v268_v4   ;;  %332 = vperm.xlu1 %6637, %v266_v5  }
  0x1c   : > { %322 = vperm.xlu0 %6636, %v264_v6   ;;  %v250_v27 = vsel %vm249_vm0, %v6645_v18, %v248_v25 }
  0x1d   : > { %v251_v28 = vmul.f32 %v250_v27, %v243_v26 }
  0x1f   : > { %v252_v29 = vmul.f32 1.442695, %v251_v28 }
  0x21   : > { %6646 = vpow2.f32 %v252_v29 }
  0x23   : > { %277 = vperm.xlu2 %6638, %v255_v7   ;;  %272 = vperm.xlu1 %6637, %v254_v8   ;;  %v10298_v7 = vmov 683565275  }
  0x24   : > { %347 = vperm.xlu0 %6636, %v269_v9  }
  0x27   : > { %v6828_v30 = vpop.eup %6646 }
  0x2b   : > { %292 = vperm.xlu2 %6638, %v258_v10   ;;  %287 = vperm.xlu1 %6637, %v257_v11  }
  0x2c   : > { %282 = vperm.xlu0 %6636, %v256_v12  }
  0x33   : > { %307 = vperm.xlu2 %6638, %v261_v13   ;;  %302 = vperm.xlu1 %6637, %v260_v14  }
  0x34   : > { %297 = vperm.xlu0 %6636, %v259_v15  }
  0x3c   : > { %312 = vperm.xlu0 %6636, %v262_v16  }
  0x6d   : > { %v338_v31 = vpop.permute.xlu2 %337 }
  0x6e   : > { %v6831_v32 = vmul.f32 %v6828_v30, %v338_v31 }
  0x70   : > { %10587 = vst [vmem:[#allocation5_spill] sm:$0xff] %v6831_v32  ;;  %v2371_v33 = vand.u32 2139095040, %v6831_v32  ;;  %v10287_v47 = vand.u32 2147483647, %v6831_v32 }
  0x72   : > { %v2372_v34 = vshrl.u32 %v2371_v33, 23  ;;  %v2375_v54 = vand.u32 8388607, %v10287_v47 }
  0x74   : > { %v6474_v35 = vadd.s32 4294967169, %v2372_v34  ;;  %v2376_v5 = vor.u32 8388608, %v2375_v54 }
  0x75   : > { %v343_v36 = vpop.permute.xlu2 %342 }
  0x76   : > { %v6835_v37 = vmul.f32 %v6828_v30, %v343_v36  ;;  %v2378_v38 = vadd.s32 1, %v6474_v35  ;;  %v6858_v17 = vshll.u32 %v2376_v5, 8 }
  0x78   : > { %10588 = vst [vmem:[#allocation6_spill] sm:$0xff] %v6835_v37  ;;  %v2525_v39 = vand.u32 2139095040, %v6835_v37  ;;  %vm2379_vm1 = vcmp.gt.s32.totalorder %v2378_v38, 0  ;;  %v10286_v6 = vand.u32 2147483647, %v6835_v37  ;;  %v6877_v36 = vand.u32 65535, %v6858_v17 }
  0x79   : > { %v2380_v40 = vsel %vm2379_vm1, %v2378_v38, 0  ;;  %10590 = vst [vmem:[#allocation8_spill] sm:$0xff] %v6858_v17 }
  0x7a   : > { %v2526_v41 = vshrl.u32 %v2525_v39, 23  ;;  %v2382_v43 = vand.u32 31, %v2380_v40  ;;  %v2381_v55 = vshrl.u32 %v2380_v40, 5  ;;  %v2529_v18 = vand.u32 8388607, %v10286_v6  ;;  %10593 = vst [vmem:[#allocation11_spill] sm:$0xff] %v6877_v36 }
  0x7c   : > { %v6477_v44 = vadd.s32 4294967169, %v2526_v41  ;;  %v2383_v46 = vsub.s32 32, %v2382_v43  ;;  %v2397_v51 = vshll.u32 %v10304_v50, %v2382_v43  ;;  %v2388_v57 = vshll.u32 %v10310_v56, %v2382_v43 }
  0x7d   : > { %v278_v42 = vpop.permute.xlu2 %277  ;;  %v2391_v59 = vshll.u32 %v10307_v58, %v2382_v43  ;;  %v2394_v1 = vshll.u32 %v10300_v62, %v2382_v43  ;;  %vm2403_vm3 = vcmp.lt.s32.totalorder %v2381_v55, 4  ;;  %v2385_v8 = vshll.u32 %v10298_v7, %v2382_v43 }
  0x7e   : > { %v6839_v45 = vmul.f32 %v6828_v30, %v278_v42  ;;  %v2532_v48 = vadd.s32 1, %v6477_v44  ;;  %v2398_v53 = vshrl.u32 %v10296_v52, %v2383_v46  ;;  %v2389_v61 = vshrl.u32 %v10307_v58, %v2383_v46 }
  0x7f   : > { %v2392_v63 = vshrl.u32 %v10300_v62, %v2383_v46  ;;  %v2395_v2 = vshrl.u32 %v10304_v50, %v2383_v46  ;;  %v2386_v9 = vshrl.u32 %v10310_v56, %v2383_v46  ;;  %vm2400_vm4 = vcmp.lt.s32.totalorder %v2381_v55, 1 }
  0x80   : > { %10589 = vst [vmem:[#allocation7_spill] sm:$0xff] %v6839_v45  ;;  %v523_v49 = vand.u32 2139095040, %v6839_v45  ;;  %vm2533_vm2 = vcmp.gt.s32.totalorder %v2532_v48, 0  ;;  %v2399_v3 = vor.u32 %v2398_v53, %v2397_v51  ;;  %v2390_v11 = vor.u32 %v2389_v61, %v2388_v57 }
  0x81   : > { %v2534_v4 = vsel %vm2533_vm2, %v2532_v48, 0  ;;  %v2393_v12 = vor.u32 %v2392_v63, %v2391_v59  ;;  %v2396_v13 = vor.u32 %v2395_v2, %v2394_v1  ;;  %vm2402_vm5 = vcmp.lt.s32.totalorder %v2381_v55, 3 }
  0x82   : > { %v524_v60 = vshrl.u32 %v523_v49, 23  ;;  %v2536_v14 = vand.u32 31, %v2534_v4  ;;  %v2413_v15 = vsel %vm2403_vm3, %v2399_v3, 1326507024  ;;  %v2384_v16 = vshrl.u32 %v10298_v7, %v2383_v46 }
  0x83   : > { %v2387_v20 = vor.u32 %v2386_v9, %v2385_v8  ;;  %vm2401_vm6 = vcmp.lt.s32.totalorder %v2381_v55, 2  ;;  %v2405_v21 = vsel %vm2403_vm3, %v2393_v12, 2102212464  ;;  %v2409_v23 = vsel %vm2403_vm3, %v2396_v13, 920167782 }
  0x84   : > { %v6438_v10 = vadd.s32 4294967169, %v524_v60  ;;  %v2412_v24 = vsel %vm2400_vm4, %v2390_v11, %v2393_v12  ;;  %v2414_v25 = vsel %vm2402_vm5, %v2396_v13, %v2413_v15  ;;  %v2537_v26 = vsub.s32 32, %v2536_v14 }
  0x85   : > { %v328_v19 = vpop.permute.xlu1 %327  ;;  %v2404_v28 = vsel %vm2400_vm4, %v2384_v16, %v2387_v20  ;;  %v2406_v29 = vsel %vm2402_vm5, %v2390_v11, %v2405_v21  ;;  %v2530_v31 = vor.u32 8388608, %v2529_v18  ;;  %v2408_v33 = vsel %vm2400_vm4, %v2387_v20, %v2390_v11  ;;  %v293_v6 = vpop.permute.xlu2 %292 }
  0x86   : > { %v530_v22 = vadd.s32 1, %v6438_v10  ;;  %v6867_v27 = vmul.f32 %v6828_v30, %v328_v19  ;;  %v2410_v34 = vsel %vm2402_vm5, %v2393_v12, %v2409_v23  ;;  %v6874_v35 = vsel %vm2401_vm6, %v2412_v24, %v2414_v25  ;;  %v318_v16 = vpop.permute.xlu0 %317 }
  0x87   : > { %10592 = vst [vmem:[#allocation10_spill] sm:$0xff] %v6874_v35  ;;  %v2551_v38 = vshll.u32 %v10304_v50, %v2536_v14  ;;  %v2552_v39 = vshrl.u32 %v10296_v52, %v2537_v26  ;;  %v6882_v40 = vsel %vm2401_vm6, %v2404_v28, %v2406_v29  ;;  %v6885_v41 = vshrl.u32 %v6858_v17, 16 }
  0x88   : > { %10591 = vst [vmem:[#allocation9_spill] sm:$0xff] %v6867_v27  ;;  %vm531_vm7 = vcmp.gt.s32.totalorder %v530_v22, 0  ;;  %v6887_v42 = vshrl.u32 %v2534_v4, 5  ;;  %v2063_v43 = vand.u32 2139095040, %v6867_v27  ;;  %v6891_v44 = vsel %vm2401_vm6, %v2408_v33, %v2410_v34 }
  0x89   : > { %10594 = vst [vmem:[#allocation12_spill] sm:$0xff] %v6882_v40  ;;  %v2420_v46 = vshrl.u32 %v6874_v35, 16  ;;  %v6894_v48 = vshll.u32 %v2530_v31, 8  ;;  %v532_v49 = vsel %vm531_vm7, %v530_v22, 0  ;;  %v2542_v51 = vshll.u32 %v10310_v56, %v2536_v14 }
  0x8a   : > { %10595 = vst [vmem:[#allocation13_spill] sm:$0xff] %v6885_v41  ;;  %v2543_v53 = vshrl.u32 %v10307_v58, %v2537_v26  ;;  %v2545_v54 = vshll.u32 %v10307_v58, %v2536_v14  ;;  %v2546_v57 = vshrl.u32 %v10300_v62, %v2537_v26  ;;  %v2548_v55 = vshll.u32 %v10300_v62, %v2536_v14 }
  0x8b   : > { %10596 = vst [vmem:[#allocation14_spill] sm:$0xff] %v6891_v44  ;;  %v2549_v60 = vshrl.u32 %v10304_v50, %v2537_v26  ;;  %v2553_v61 = vor.u32 %v2552_v39, %v2551_v38  ;;  %v10290_v63 = vand.u32 65535, %v6874_v35  ;;  %vm2557_vm8 = vcmp.lt.s32.totalorder %v6887_v42, 4 }
  0x8c   : > { %10597 = vst [vmem:[#allocation15_spill] sm:$0xff] %v6894_v48  ;;  %v534_v1 = vand.u32 31, %v532_v49  ;;  %v2064_v2 = vshrl.u32 %v2063_v43, 23  ;;  %v6907_v3 = vmul.u32 %v2420_v46, %v6877_v36  ;;  %v2442_v5 = vshrl.u32 %v6891_v44, 16 }
  0x8d   : > { %v6912_v8 = vand.u32 65535, %v6894_v48  ;;  %v2539_v9 = vshll.u32 %v10298_v7, %v2536_v14  ;;  %v2540_v10 = vshrl.u32 %v10310_v56, %v2537_v26  ;;  %v2544_v11 = vor.u32 %v2543_v53, %v2542_v51 }
  0x8e   : > { %10598 = vst [vmem:[#allocation16_spill] sm:$0xff] %v6907_v3  ;;  %v2547_v12 = vor.u32 %v2546_v57, %v2545_v54  ;;  %v2550_v13 = vor.u32 %v2549_v60, %v2548_v55  ;;  %vm2554_vm9 = vcmp.lt.s32.totalorder %v6887_v42, 1  ;;  %vm2556_vm10 = vcmp.lt.s32.totalorder %v6887_v42, 3 }
  0x8f   : > { %10599 = vst [vmem:[#allocation17_spill] sm:$0xff] %v6912_v8  ;;  %v2567_v15 = vsel %vm2557_vm8, %v2553_v61, 1326507024  ;;  %v6921_v18 = vshrl.u32 %v6894_v48, 16  ;;  %v10291_v19 = vand.u32 2147483647, %v6839_v45  ;;  %v6927_v21 = vmul.u32 %v10290_v63, %v6877_v36 }
  0x90   : > { %v535_v20 = vsub.s32 32, %v534_v1  ;;  %v6468_v14 = vadd.s32 4294967169, %v2064_v2  ;;  %v10292_v22 = vshll.u32 %v6907_v3, 16  ;;  %v2538_v23 = vshrl.u32 %v10298_v7, %v2537_v26 }
  0x91   : > { %10600 = vst [vmem:[#allocation18_spill] sm:$0xff] %v6921_v18  ;;  %vm2555_vm11 = vcmp.lt.s32.totalorder %v6887_v42, 2  ;;  %v2541_v24 = vor.u32 %v2540_v10, %v2539_v9  ;;  %v2566_v25 = vsel %vm2554_vm9, %v2544_v11, %v2547_v12  ;;  %v2568_v28 = vsel %vm2556_vm10, %v2550_v13, %v2567_v15 }
  0x92   : > { %10601 = vst [vmem:[#allocation19_spill] sm:$0xff] %v6927_v21  ;;  %v6937_v29 = vmul.f32 %v6828_v30, %v318_v16  ;;  %v6940_v31 = vmul.u32 %v2420_v46, %v6885_v41  ;;  %v6943_v33 = vmul.u32 %v2442_v5, %v6877_v36  ;;  %v6946_v26 = vmul.u32 %v2442_v5, %v6885_v41 }
  0x93   : > { %v2563_v34 = vsel %vm2557_vm8, %v2550_v13, 920167782  ;;  %v527_v38 = vand.u32 8388607, %v10291_v19  ;;  %v549_v39 = vshll.u32 %v10304_v50, %v534_v1  ;;  %v550_v43 = vshrl.u32 %v10296_v52, %v535_v20 }
  0x94   : > { %10602 = vst [vmem:[#allocation20_spill] sm:$0xff] %v6937_v29  ;;  %v2070_v51 = vadd.s32 1, %v6468_v14  ;;  %v6957_v46 = vadd.s32 %v10292_v22, %v6927_v21  ;;  %v2559_v53 = vsel %vm2557_vm8, %v2547_v12, 2102212464  ;;  %v6963_v54 = vsel %vm2555_vm11, %v2566_v25, %v2568_v28 }
  0x95   : > { %10603 = vst [vmem:[#allocation21_spill] sm:$0xff] %v6940_v31  ;;  %v6965_v57 = vshrl.u32 %v532_v49, 5  ;;  %v2558_v55 = vsel %vm2554_vm9, %v2538_v23, %v2541_v24  ;;  %v2562_v60 = vsel %vm2554_vm9, %v2541_v24, %v2544_v11  ;;  %v2564_v61 = vsel %vm2556_vm10, %v2547_v12, %v2563_v34 }
  0x96   : > { %10604 = vst [vmem:[#allocation22_spill] sm:$0xff] %v6943_v33  ;;  %v1755_v2 = vand.u32 2139095040, %v6937_v29  ;;  %v540_v5 = vshll.u32 %v10310_v56, %v534_v1  ;;  %v541_v9 = vshrl.u32 %v10307_v58, %v535_v20  ;;  %v543_v10 = vshll.u32 %v10307_v58, %v534_v1 }
  0x97   : > { %10605 = vst [vmem:[#allocation23_spill] sm:$0xff] %v6946_v26  ;;  %v544_v49 = vshrl.u32 %v10300_v62, %v535_v20  ;;  %v2560_v13 = vsel %vm2556_vm10, %v2544_v11, %v2559_v53  ;;  %v2574_v15 = vshrl.u32 %v6963_v54, 16  ;;  %v551_v16 = vor.u32 %v550_v43, %v549_v39 }
  0x98   : > { %10606 = vst [vmem:[#allocation24_spill] sm:$0xff] %v6957_v46  ;;  %vm2071_vm12 = vcmp.gt.s32.totalorder %v2070_v51, 0  ;;  %v528_v14 = vor.u32 8388608, %v527_v38  ;;  %v546_v12 = vshll.u32 %v10300_v62, %v534_v1  ;;  %v547_v23 = vshrl.u32 %v10304_v50, %v535_v20 }
  0x99   : > { %10607 = vst [vmem:[#allocation25_spill] sm:$0xff] %v6963_v54  ;;  %vm555_vm13 = vcmp.lt.s32.totalorder %v6965_v57, 4  ;;  %v6986_v24 = vsel %vm2555_vm11, %v2562_v60, %v2564_v61  ;;  %v10288_v25 = vand.u32 65535, %v6963_v54  ;;  %v537_v28 = vshll.u32 %v10298_v7, %v534_v1 }
  0x9a   : > { %10608 = vst [vmem:[#allocation26_spill] sm:$0xff] %v6986_v24  ;;  %v1756_v11 = vshrl.u32 %v1755_v2, 23  ;;  %v538_v34 = vshrl.u32 %v10310_v56, %v535_v20  ;;  %v542_v39 = vor.u32 %v541_v9, %v540_v5  ;;  %v545_v43 = vor.u32 %v544_v49, %v543_v10 }
  0x9b   : > { %v2072_v38 = vsel %vm2071_vm12, %v2070_v51, 0  ;;  %v6992_v53 = vmul.u32 %v2574_v15, %v6912_v8  ;;  %vm552_vm14 = vcmp.lt.s32.totalorder %v6965_v57, 1  ;;  %vm554_vm15 = vcmp.lt.s32.totalorder %v6965_v57, 3 }
  0x9c   : > { %v565_v60 = vsel %vm555_vm13, %v551_v16, 1326507024  ;;  %v7000_v61 = vsel %vm2555_vm11, %v2558_v55, %v2560_v13  ;;  %v2596_v1 = vshrl.u32 %v6986_v24, 16  ;;  %v536_v2 = vshrl.u32 %v10298_v7, %v535_v20 }
  0x9d   : > { %10609 = vst [vmem:[#allocation27_spill] sm:$0xff] %v6992_v53  ;;  %v548_v5 = vor.u32 %v547_v23, %v546_v12  ;;  %v557_v51 = vsel %vm555_vm13, %v545_v43, 2102212464  ;;  %v7006_v9 = vshll.u32 %v528_v14, 8  ;;  %v2074_v10 = vand.u32 31, %v2072_v38 }
  0x9e   : > { %10610 = vst [vmem:[#allocation28_spill] sm:$0xff] %v7000_v61  ;;  %v6462_v49 = vadd.s32 4294967169, %v1756_v11  ;;  %v539_v47 = vor.u32 %v538_v34, %v537_v28  ;;  %vm553_vm0 = vcmp.lt.s32.totalorder %v6965_v57, 2  ;;  %v564_v42 = vsel %vm552_vm14, %v542_v39, %v545_v43 }
  0x9f   : > { %10611 = vst [vmem:[#allocation29_spill] sm:$0xff] %v7006_v9  ;;  %v566_v55 = vsel %vm554_vm15, %v548_v5, %v565_v60  ;;  %v7016_v20 = vmul.u32 %v10288_v25, %v6912_v8  ;;  %v10289_v13 = vshll.u32 %v6992_v53, 16  ;;  %v10293_v14 = vand.u32 2147483647, %v6867_v27 }
  0xa0   : > { %v556_v23 = vsel %vm552_vm14, %v536_v2, %v539_v47  ;;  %v558_v28 = vsel %vm554_vm15, %v542_v39, %v557_v51  ;;  %v7028_v11 = vmul.f32 %v6828_v30, %v293_v6  ;;  %v561_v34 = vsel %vm555_vm13, %v548_v5, 920167782 }
  0xa1   : > { %10612 = vst [vmem:[#allocation30_spill] sm:$0xff] %v7016_v20  ;;  %v7034_v60 = vsel %vm553_vm0, %v564_v42, %v566_v55  ;;  %v2075_v16 = vsub.s32 32, %v2074_v10  ;;  %v1762_v25 = vadd.s32 1, %v6462_v49  ;;  %v7037_v12 = vmul.u32 %v2574_v15, %v6921_v18 }
  0xa2   : > { %10613 = vst [vmem:[#allocation31_spill] sm:$0xff] %v7028_v11  ;;  %v7040_v2 = vmul.u32 %v2596_v1, %v6912_v8  ;;  %v7043_v51 = vmul.u32 %v2596_v1, %v6921_v18  ;;  %v7046_v6 = vand.u32 65535, %v7006_v9  ;;  %v7051_v5 = vadd.s32 %v10289_v13, %v7016_v20 }
  0xa3   : > { %10614 = vst [vmem:[#allocation32_spill] sm:$0xff] %v7034_v60  ;;  %v560_v49 = vsel %vm552_vm14, %v539_v47, %v542_v39  ;;  %v7056_v15 = vshrl.u32 %v7006_v9, 16  ;;  %v2067_v42 = vand.u32 8388607, %v10293_v14  ;;  %v7062_v1 = vsel %vm553_vm0, %v556_v23, %v558_v28 }
  0xa4   : > { %10615 = vst [vmem:[#allocation33_spill] sm:$0xff] %v7037_v12  ;;  %v562_v55 = vsel %vm554_vm15, %v545_v43, %v561_v34  ;;  %v572_v59 = vshrl.u32 %v7034_v60, 16  ;;  %v7067_v13 = vshrl.u32 %v2072_v38, 5  ;;  %v2089_v4 = vshll.u32 %v10304_v50, %v2074_v10 }
  0xa5   : > { %10616 = vst [vmem:[#allocation34_spill] sm:$0xff] %v7040_v2  ;;  %v2090_v47 = vshrl.u32 %v10296_v52, %v2075_v16  ;;  %vm1763_vm1 = vcmp.gt.s32.totalorder %v1762_v25, 0  ;;  %v985_v39 = vand.u32 2139095040, %v7028_v11  ;;  %v2083_v63 = vshll.u32 %v10307_v58, %v2074_v10 }
  0xa6   : > { %10617 = vst [vmem:[#allocation35_spill] sm:$0xff] %v7043_v51  ;;  %v2084_v19 = vshrl.u32 %v10300_v62, %v2075_v16  ;;  %v2086_v23 = vshll.u32 %v10300_v62, %v2074_v10  ;;  %v2087_v28 = vshrl.u32 %v10304_v50, %v2075_v16  ;;  %v7078_v43 = vsel %vm553_vm0, %v560_v49, %v562_v55 }
  0xa7   : > { %10618 = vst [vmem:[#allocation36_spill] sm:$0xff] %v7046_v6  ;;  %v2068_v22 = vor.u32 8388608, %v2067_v42  ;;  %v2080_v0 = vshll.u32 %v10310_v56, %v2074_v10  ;;  %v2081_v52 = vshrl.u32 %v10307_v58, %v2075_v16  ;;  %v1764_v7 = vsel %vm1763_vm1, %v1762_v25, 0 }
  0xa8   : > { %10619 = vst [vmem:[#allocation37_spill] sm:$0xff] %v7051_v5  ;;  %v10623_v62 = vmov 683565275   ;;  %v2078_v50 = vshrl.u32 %v10310_v56, %v2075_v16  ;;  %v2091_v57 = vor.u32 %v2090_v47, %v2089_v4  ;;  %v986_v49 = vshrl.u32 %v985_v39, 23  ;;  %v333_v39 = vpop.permute.xlu1 %332 }
  0xa9   : > { %10620 = vst [vmem:[#allocation38_spill] sm:$0xff] %v7056_v15  ;;  %v2077_v37 = vshll.u32 %v10623_v62, %v2074_v10  ;;  %v7089_v55 = vmul.u32 %v572_v59, %v7046_v6  ;;  %v2085_v38 = vor.u32 %v2084_v19, %v2083_v63  ;;  %v2088_v61 = vor.u32 %v2087_v28, %v2086_v23 }
  0xaa   : > { %10621 = vst [vmem:[#allocation39_spill] sm:$0xff] %v7062_v1  ;;  %vm2095_vm2 = vcmp.lt.s32.totalorder %v7067_v13, 4  ;;  %v594_v42 = vshrl.u32 %v7078_v43, 16  ;;  %v2076_v34 = vshrl.u32 %v10623_v62, %v2075_v16  ;;  %v10309_v14 = vand.u32 2147483647, %v6937_v29 }
  0xab   : > { %10622 = vst [vmem:[#allocation40_spill] sm:$0xff] %v7078_v43  ;;  %v1766_v25 = vand.u32 31, %v1764_v7  ;;  %v2082_v58 = vor.u32 %v2081_v52, %v2080_v0  ;;  %vm2092_vm3 = vcmp.lt.s32.totalorder %v7067_v13, 1  ;;  %v2097_v4 = vsel %vm2095_vm2, %v2085_v38, 2102212464 }
  0xac   : > { %10624 = vst [vmem:[#allocation41_spill] sm:$0xff] %v7089_v55  ;;  %v7098_v10 = vshll.u32 %v2068_v22, 8  ;;  %v2079_v47 = vor.u32 %v2078_v50, %v2077_v37  ;;  %vm2094_vm4 = vcmp.lt.s32.totalorder %v7067_v13, 3  ;;  %v2105_v63 = vsel %vm2095_vm2, %v2091_v57, 1326507024 }
  0xad   : > { %v6447_v19 = vadd.s32 4294967169, %v986_v49  ;;  %v10626_v16 = vand.u32 65535, %v7034_v60  ;;  %v7109_v0 = vmul.u32 %v572_v59, %v7056_v15  ;;  %v2101_v37 = vsel %vm2095_vm2, %v2088_v61, 920167782 }
  0xae   : > { %10625 = vst [vmem:[#allocation42_spill] sm:$0xff] %v7098_v10  ;;  %v2096_v50 = vsel %vm2092_vm3, %v2076_v34, %v2079_v47  ;;  %v2098_v22 = vsel %vm2094_vm4, %v2082_v58, %v2097_v4  ;;  %v1759_v28 = vand.u32 8388607, %v10309_v14  ;;  %v1767_v57 = vsub.s32 32, %v1766_v25 }
  0xaf   : > { %v7106_v23 = vmul.u32 %v10626_v16, %v7046_v6  ;;  %10628 = vst [vmem:[#allocation44_spill] sm:$0xff] %v7109_v0  ;;  %vm2093_vm5 = vcmp.lt.s32.totalorder %v7067_v13, 2  ;;  %v2104_v59 = vsel %vm2092_vm3, %v2082_v58, %v2085_v38  ;;  %v2106_v49 = vsel %vm2094_vm4, %v2088_v61, %v2105_v63 }
  0xb0   : > { %v7126_v16 = vmul.f32 %v6828_v30, %v333_v39  ;;  %v7129_v34 = vmul.u32 %v594_v42, %v7046_v6  ;;  %v2100_v4 = vsel %vm2092_vm3, %v2079_v47, %v2082_v58  ;;  %v2102_v14 = vsel %vm2094_vm4, %v2085_v38, %v2101_v37 }
  0xb1   : > { %10627 = vst [vmem:[#allocation43_spill] sm:$0xff] %v7106_v23  ;;  %v992_v56 = vadd.s32 1, %v6447_v19  ;;  %v7136_v52 = vmul.u32 %v594_v42, %v7056_v15  ;;  %v7140_v48 = vsel %vm2093_vm5, %v2096_v50, %v2098_v22  ;;  %v7143_v61 = vand.u32 65535, %v7098_v10 }
  0xb2   : > { %10629 = vst [vmem:[#allocation45_spill] sm:$0xff] %v7126_v16  ;;  %v7146_v63 = vshrl.u32 %v7098_v10, 16  ;;  %v10635_v58 = vshll.u32 %v7089_v55, 16  ;;  %v7155_v38 = vsel %vm2093_vm5, %v2104_v59, %v2106_v49  ;;  %v10638_v42 = vmov 1326507024  }
  0xb3   : > { %10630 = vst [vmem:[#allocation46_spill] sm:$0xff] %v7129_v34  ;;  %v1782_v19 = vshrl.u32 %v10638_v42, %v1767_v57  ;;  %v7161_v37 = vsel %vm2093_vm5, %v2100_v4, %v2102_v14  ;;  %v1760_v50 = vor.u32 8388608, %v1759_v28  ;;  %v10640_v22 = vmov 2102212464  }
  0xb4   : > { %10631 = vst [vmem:[#allocation47_spill] sm:$0xff] %v7136_v52  ;;  %v7151_v47 = vadd.s32 %v10635_v58, %v7106_v23  ;;  %v1776_v51 = vshrl.u32 %v10640_v22, %v1767_v57  ;;  %v2217_v2 = vand.u32 2139095040, %v7126_v16  ;;  %v10641_v24 = vmov 920167782  }
  0xb5   : > { %10632 = vst [vmem:[#allocation48_spill] sm:$0xff] %v7140_v48  ;;  %v1779_v8 = vshrl.u32 %v10641_v24, %v1767_v57  ;;  %v1781_v59 = vshll.u32 %v10641_v24, %v1766_v25  ;;  %vm993_vm6 = vcmp.gt.s32.totalorder %v992_v56, 0  ;;  %v2112_v49 = vshrl.u32 %v7155_v38, 16 }
  0xb6   : > { %10633 = vst [vmem:[#allocation49_spill] sm:$0xff] %v7143_v61  ;;  %v1765_v39 = vshrl.u32 %v1764_v7, 5  ;;  %v10642_v5 = vmov 2131351028   ;;  %v10643_v4 = vmov 2475754826   ;;  %v1778_v20 = vshll.u32 %v10640_v22, %v1766_v25 }
  0xb7   : > { %10634 = vst [vmem:[#allocation50_spill] sm:$0xff] %v7146_v63  ;;  %v1773_v13 = vshrl.u32 %v10642_v5, %v1767_v57  ;;  %v1775_v14 = vshll.u32 %v10642_v5, %v1766_v25  ;;  %v1770_v12 = vshrl.u32 %v10643_v4, %v1767_v57  ;;  %v1783_v53 = vor.u32 %v1782_v19, %v1781_v59  ;;  %v323_v19 = vpop.permute.xlu0 %322 }
  0xb8   : > { %10636 = vst [vmem:[#allocation51_spill] sm:$0xff] %v7151_v47  ;;  %v1772_v58 = vshll.u32 %v10643_v4, %v1766_v25  ;;  %v994_v18 = vsel %vm993_vm6, %v992_v56, 0  ;;  %v2218_v32 = vshrl.u32 %v2217_v2, 23  ;;  %v2134_v7 = vshrl.u32 %v7161_v37, 16 }
  0xb9   : > { %10637 = vst [vmem:[#allocation52_spill] sm:$0xff] %v7155_v38  ;;  %v1777_v54 = vor.u32 %v1776_v51, %v1775_v14  ;;  %v1769_v17 = vshll.u32 %v10623_v62, %v1766_v25  ;;  %v1780_v26 = vor.u32 %v1779_v8, %v1778_v20  ;;  %v7180_v33 = vmul.u32 %v2112_v49, %v7143_v61 }
  0xba   : > { %10639 = vst [vmem:[#allocation53_spill] sm:$0xff] %v7161_v37  ;;  %v1774_v28 = vor.u32 %v1773_v13, %v1772_v58  ;;  %vm1787_vm7 = vcmp.lt.s32.totalorder %v1765_v39, 4  ;;  %v7182_v46 = vshll.u32 %v1760_v50, 8  ;;  %v10646_v51 = vand.u32 65535, %v7155_v38 }
  0xbb   : > { %10644 = vst [vmem:[#allocation54_spill] sm:$0xff] %v7180_v33  ;;  %v1771_v2 = vor.u32 %v1770_v12, %v1769_v17  ;;  %v1797_v59 = vsel %vm1787_vm7, %v1783_v53, 1326507024  ;;  %v996_v14 = vand.u32 31, %v994_v18  ;;  %v1768_v40 = vshrl.u32 %v10623_v62, %v1767_v57 }
  0xbc   : > { %10645 = vst [vmem:[#allocation55_spill] sm:$0xff] %v7182_v46  ;;  %v7187_v56 = vmul.u32 %v10646_v51, %v7143_v61  ;;  %v1789_v25 = vsel %vm1787_vm7, %v1777_v54, 2102212464  ;;  %v10648_v8 = vand.u32 2147483647, %v7028_v11  ;;  %v6471_v31 = vadd.s32 4294967169, %v2218_v32 }
  0xbd   : > { %vm1784_vm8 = vcmp.lt.s32.totalorder %v1765_v39, 1  ;;  %vm1786_vm9 = vcmp.lt.s32.totalorder %v1765_v39, 3  ;;  %v1793_v50 = vsel %vm1787_vm7, %v1780_v26, 920167782  ;;  %v7193_v58 = vmul.f32 %v6828_v30, %v323_v19 }
  0xbe   : > { %10647 = vst [vmem:[#allocation56_spill] sm:$0xff] %v7187_v56  ;;  %v989_v20 = vand.u32 8388607, %v10648_v8  ;;  %v7196_v13 = vmul.u32 %v2112_v49, %v7146_v63  ;;  %v1796_v53 = vsel %vm1784_vm8, %v1774_v28, %v1777_v54  ;;  %v1798_v12 = vsel %vm1786_vm9, %v1780_v26, %v1797_v59 }
  0xbf   : > { %10649 = vst [vmem:[#allocation57_spill] sm:$0xff] %v7193_v58  ;;  %vm1785_vm10 = vcmp.lt.s32.totalorder %v1765_v39, 2  ;;  %v1788_v57 = vsel %vm1784_vm8, %v1768_v40, %v1771_v2  ;;  %v1790_v51 = vsel %vm1786_vm9, %v1774_v28, %v1789_v25  ;;  %v997_v44 = vsub.s32 32, %v996_v14 }
  0xc0   : > { %10650 = vst [vmem:[#allocation58_spill] sm:$0xff] %v7196_v13  ;;  %v1792_v11 = vsel %vm1784_vm8, %v1771_v2, %v1774_v28  ;;  %v1794_v8 = vsel %vm1786_vm9, %v1777_v54, %v1793_v50  ;;  %v990_v32 = vor.u32 8388608, %v989_v20  ;;  %v2224_v36 = vadd.s32 1, %v6471_v31 }
  0xc1   : > { %v7200_v35 = vmul.u32 %v2134_v7, %v7143_v61  ;;  %v7203_v19 = vmul.u32 %v2134_v7, %v7146_v63  ;;  %v7206_v49 = vsel %vm1785_vm10, %v1796_v53, %v1798_v12  ;;  %v1909_v17 = vand.u32 2139095040, %v7193_v58 }
  0xc2   : > { %v7210_v26 = vsel %vm1785_vm10, %v1788_v57, %v1790_v51  ;;  %v7213_v40 = vand.u32 65535, %v7182_v46  ;;  %v7216_v54 = vshrl.u32 %v7182_v46, 16  ;;  %v10654_v28 = vshll.u32 %v7180_v33, 16 }
  0xc3   : > { %10651 = vst [vmem:[#allocation59_spill] sm:$0xff] %v7200_v35  ;;  %v7225_v2 = vsel %vm1785_vm10, %v1792_v11, %v1794_v8  ;;  %v1011_v59 = vshll.u32 %v10641_v24, %v996_v14  ;;  %v1012_v25 = vshrl.u32 %v10638_v42, %v997_v44  ;;  %v1804_v20 = vshrl.u32 %v7206_v49, 16 }
  0xc4   : > { %10652 = vst [vmem:[#allocation60_spill] sm:$0xff] %v7203_v19  ;;  %v7222_v7 = vadd.s32 %v10654_v28, %v7187_v56  ;;  %v7230_v50 = vshrl.u32 %v994_v18, 5  ;;  %v7232_v53 = vshll.u32 %v990_v32, 8  ;;  %vm2225_vm11 = vcmp.gt.s32.totalorder %v2224_v36, 0 }
  0xc5   : > { %10653 = vst [vmem:[#allocation61_spill] sm:$0xff] %v7210_v26  ;;  %v1005_v57 = vshll.u32 %v10642_v5, %v996_v14  ;;  %v1006_v39 = vshrl.u32 %v10640_v22, %v997_v44  ;;  %v1910_v11 = vshrl.u32 %v1909_v17, 23  ;;  %v1002_v28 = vshll.u32 %v10643_v4, %v996_v14 }
  0xc6   : > { %10655 = vst [vmem:[#allocation62_spill] sm:$0xff] %v7222_v7  ;;  %v1003_v18 = vshrl.u32 %v10642_v5, %v997_v44  ;;  %v999_v32 = vshll.u32 %v10623_v62, %v996_v14  ;;  %v1000_v31 = vshrl.u32 %v10643_v4, %v997_v44  ;;  %v1013_v41 = vor.u32 %v1012_v25, %v1011_v59  ;;  %v308_v25 = vpop.permute.xlu2 %307 }
  0xc7   : > { %10656 = vst [vmem:[#allocation63_spill] sm:$0xff] %v7232_v53  ;;  %v2226_v21 = vsel %vm2225_vm11, %v2224_v36, 0  ;;  %v7245_v12 = vmul.u32 %v1804_v20, %v7213_v40  ;;  %v1008_v3 = vshll.u32 %v10640_v22, %v996_v14  ;;  %v1009_v17 = vshrl.u32 %v10641_v24, %v997_v44 }
  0xc8   : > { %vm1017_vm12 = vcmp.lt.s32.totalorder %v7230_v50, 4  ;;  %v1826_v8 = vshrl.u32 %v7225_v2, 16  ;;  %v998_v51 = vshrl.u32 %v10623_v62, %v997_v44  ;;  %v1007_v45 = vor.u32 %v1006_v39, %v1005_v57 }
  0xc9   : > { %v6465_v1 = vadd.s32 4294967169, %v1910_v11  ;;  %v1004_v9 = vor.u32 %v1003_v18, %v1002_v28  ;;  %vm1014_vm13 = vcmp.lt.s32.totalorder %v7230_v50, 1  ;;  %v7254_v36 = vand.u32 65535, %v7232_v53 }
  0xca   : > { %v2228_v59 = vand.u32 31, %v2226_v21  ;;  %v1001_v52 = vor.u32 %v1000_v31, %v999_v32  ;;  %vm1016_vm14 = vcmp.lt.s32.totalorder %v7230_v50, 3  ;;  %v1019_v14 = vsel %vm1017_vm12, %v1007_v45, 2102212464 }
  0xcb   : > { %10657 = vst [vmem:[#allocation64_spill] sm:$0xff] %v7254_v36  ;;  %v1027_v34 = vsel %vm1017_vm12, %v1013_v41, 1326507024  ;;  %v10658_v44 = vand.u32 65535, %v7206_v49  ;;  %v1010_v11 = vor.u32 %v1009_v17, %v1008_v3  ;;  %v10659_v28 = vand.u32 2147483647, %v7126_v16 }
  0xcc   : > { %vm1015_vm15 = vcmp.lt.s32.totalorder %v7230_v50, 2  ;;  %v1018_v31 = vsel %vm1014_vm13, %v998_v51, %v1001_v52  ;;  %v1916_v32 = vadd.s32 1, %v6465_v1  ;;  %v7273_v6 = vmul.f32 %v6828_v30, %v308_v25 }
  0xcd   : > { %v7264_v57 = vmul.u32 %v10658_v44, %v7213_v40  ;;  %v2221_v18 = vand.u32 8388607, %v10659_v28  ;;  %v1020_v41 = vsel %vm1016_vm14, %v1004_v9, %v1019_v14  ;;  %v1026_v44 = vsel %vm1014_vm13, %v1004_v9, %v1007_v45 }
  0xce   : > { %10660 = vst [vmem:[#allocation65_spill] sm:$0xff] %v7273_v6  ;;  %v1028_v3 = vsel %vm1016_vm14, %v1010_v11, %v1027_v34  ;;  %v2229_v17 = vsub.s32 32, %v2228_v59  ;;  %v7282_v28 = vmul.u32 %v1804_v20, %v7216_v54  ;;  %v7285_v39 = vmul.u32 %v1826_v8, %v7213_v40 }
  0xcf   : > { %v7288_v1 = vmul.u32 %v1826_v8, %v7216_v54  ;;  %v7291_v51 = vshrl.u32 %v7232_v53, 16  ;;  %v10662_v25 = vshll.u32 %v7245_v12, 16  ;;  %v1022_v34 = vsel %vm1014_vm13, %v1001_v52, %v1004_v9 }
  0xd0   : > { %v1023_v20 = vsel %vm1017_vm12, %v1010_v11, 920167782  ;;  %v2222_v16 = vor.u32 8388608, %v2221_v18  ;;  %v7304_v43 = vsel %vm1015_vm15, %v1018_v31, %v1020_v41  ;;  %v7308_v8 = vsel %vm1015_vm15, %v1026_v44, %v1028_v3 }
  0xd1   : > { %10661 = vst [vmem:[#allocation66_spill] sm:$0xff] %v7291_v51  ;;  %v7296_v14 = vadd.s32 %v10662_v25, %v7264_v57  ;;  %vm1917_vm0 = vcmp.gt.s32.totalorder %v1916_v32, 0  ;;  %v1447_v27 = vand.u32 2139095040, %v7273_v6  ;;  %v2237_v25 = vshll.u32 %v10642_v5, %v2228_v59 }
  0xd2   : > { %10663 = vst [vmem:[#allocation67_spill] sm:$0xff] %v7304_v43  ;;  %v2238_v0 = vshrl.u32 %v10640_v22, %v2229_v17  ;;  %v2243_v9 = vshll.u32 %v10641_v24, %v2228_v59  ;;  %v2244_v52 = vshrl.u32 %v10638_v42, %v2229_v17  ;;  %v1024_v11 = vsel %vm1016_vm14, %v1007_v45, %v1023_v20 }
  0xd3   : > { %10664 = vst [vmem:[#allocation68_spill] sm:$0xff] %v7308_v8  ;;  %v2227_v18 = vshrl.u32 %v2226_v21, 5  ;;  %v2240_v31 = vshll.u32 %v10640_v22, %v2228_v59  ;;  %v2241_v41 = vshrl.u32 %v10641_v24, %v2229_v17  ;;  %v1034_v44 = vshrl.u32 %v7308_v8, 16 }
  0xd4   : > { %v2231_v3 = vshll.u32 %v10623_v62, %v2228_v59  ;;  %v2232_v47 = vshrl.u32 %v10643_v4, %v2229_v17  ;;  %v1918_v48 = vsel %vm1917_vm0, %v1916_v32, 0  ;;  %v2234_v10 = vshll.u32 %v10643_v4, %v2228_v59 }
  0xd5   : > { %v2235_v60 = vshrl.u32 %v10642_v5, %v2229_v17  ;;  %v7324_v15 = vshll.u32 %v2222_v16, 8  ;;  %v1448_v23 = vshrl.u32 %v1447_v27, 23  ;;  %v7328_v45 = vsel %vm1015_vm15, %v1022_v34, %v1024_v11 }
  0xd6   : > { %10666 = vst [vmem:[#allocation70_spill] sm:$0xff] %v7328_v45  ;;  %v2239_v20 = vor.u32 %v2238_v0, %v2237_v25  ;;  %v2245_v55 = vor.u32 %v2244_v52, %v2243_v9  ;;  %v10361_v19 = vand.u32 65535, %v7308_v8  ;;  %v2242_v13 = vor.u32 %v2241_v41, %v2240_v31 }
  0xd7   : > { %10665 = vst [vmem:[#allocation69_spill] sm:$0xff] %v7324_v15  ;;  %vm2249_vm1 = vcmp.lt.s32.totalorder %v2227_v18, 4  ;;  %v7333_v32 = vand.u32 31, %v1918_v48  ;;  %v7336_v59 = vmul.u32 %v1034_v44, %v7254_v36  ;;  %v2230_v16 = vshrl.u32 %v10623_v62, %v2229_v17 }
  0xd8   : > { %v2233_v50 = vor.u32 %v2232_v47, %v2231_v3  ;;  %v1056_v34 = vshrl.u32 %v7328_v45, 16  ;;  %v2236_v11 = vor.u32 %v2235_v60, %v2234_v10  ;;  %vm2246_vm2 = vcmp.lt.s32.totalorder %v2227_v18, 1  ;;  %v348_v47 = vpop.permute.xlu0 %347 }
  0xd9   : > { %10667 = vst [vmem:[#allocation71_spill] sm:$0xff] %v7336_v59  ;;  %v6456_v0 = vadd.s32 4294967169, %v1448_v23  ;;  %vm2248_vm3 = vcmp.lt.s32.totalorder %v2227_v18, 3  ;;  %v2251_v25 = vsel %vm2249_vm1, %v2239_v20, 2102212464  ;;  %v7342_v52 = vand.u32 65535, %v7324_v15 }
  0xda   : > { %v2259_v9 = vsel %vm2249_vm1, %v2245_v55, 1326507024  ;;  %v2255_v31 = vsel %vm2249_vm1, %v2242_v13, 920167782  ;;  %v7345_v41 = vshrl.u32 %v7324_v15, 16  ;;  %v7349_v17 = vsub.s32 32, %v7333_v32 }
  0xdb   : > { %10668 = vst [vmem:[#allocation72_spill] sm:$0xff] %v7342_v52  ;;  %v7354_v60 = vmul.u32 %v10361_v19, %v7254_v36  ;;  %vm2247_vm4 = vcmp.lt.s32.totalorder %v2227_v18, 2  ;;  %v2250_v10 = vsel %vm2246_vm2, %v2230_v16, %v2233_v50  ;;  %v2252_v23 = vsel %vm2248_vm3, %v2236_v11, %v2251_v25 }
  0xdc   : > { %10669 = vst [vmem:[#allocation73_spill] sm:$0xff] %v7345_v41  ;;  %v2258_v3 = vsel %vm2246_vm2, %v2236_v11, %v2239_v20  ;;  %v2260_v27 = vsel %vm2248_vm3, %v2242_v13, %v2259_v9  ;;  %v1454_v21 = vadd.s32 1, %v6456_v0  ;;  %v7362_v43 = vmul.u32 %v1034_v44, %v7291_v51 }
  0xdd   : > { %10670 = vst [vmem:[#allocation74_spill] sm:$0xff] %v7354_v60  ;;  %v2254_v53 = vsel %vm2246_vm2, %v2233_v50, %v2236_v11  ;;  %v2256_v19 = vsel %vm2248_vm3, %v2239_v20, %v2255_v31  ;;  %v7367_v45 = vmul.f32 %v6828_v30, %v348_v47  ;;  %v7370_v55 = vmul.u32 %v1056_v34, %v7254_v36 }
  0xde   : > { %10671 = vst [vmem:[#allocation75_spill] sm:$0xff] %v7362_v43  ;;  %v7373_v16 = vmul.u32 %v1056_v34, %v7291_v51  ;;  %v10675_v25 = vand.u32 2147483647, %v7193_v58  ;;  %v1936_v44 = vshrl.u32 %v10638_v42, %v7349_v17  ;;  %v10676_v50 = vshll.u32 %v7336_v59, 16 }
  0xdf   : > { %10672 = vst [vmem:[#allocation76_spill] sm:$0xff] %v7367_v45  ;;  %v7385_v20 = vsel %vm2247_vm4, %v2250_v10, %v2252_v23  ;;  %v7388_v0 = vsel %vm2247_vm4, %v2258_v3, %v2260_v27  ;;  %v7392_v9 = vsel %vm2247_vm4, %v2254_v53, %v2256_v19  ;;  %v1927_v31 = vshrl.u32 %v10642_v5, %v7349_v17 }
  0xe0   : > { %10673 = vst [vmem:[#allocation77_spill] sm:$0xff] %v7370_v55  ;;  %v1913_v13 = vand.u32 8388607, %v10675_v25  ;;  %v7382_v11 = vadd.s32 %v10676_v50, %v7354_v60  ;;  %v1935_v47 = vshll.u32 %v10641_v24, %v7333_v32  ;;  %vm1455_vm5 = vcmp.gt.s32.totalorder %v1454_v21, 0  ;;  %v273_v55 = vpop.permute.xlu1 %272 }
  0xe1   : > { %10674 = vst [vmem:[#allocation78_spill] sm:$0xff] %v7373_v16  ;;  %v7398_v25 = vshrl.u32 %v1918_v48, 5  ;;  %v1930_v10 = vshrl.u32 %v10640_v22, %v7349_v17  ;;  %v1933_v27 = vshrl.u32 %v10641_v24, %v7349_v17  ;;  %v2679_v23 = vand.u32 2139095040, %v7367_v45 }
  0xe2   : > { %10677 = vst [vmem:[#allocation79_spill] sm:$0xff] %v7382_v11  ;;  %v1914_v53 = vor.u32 8388608, %v1913_v13  ;;  %v1926_v18 = vshll.u32 %v10643_v4, %v7333_v32  ;;  %v1937_v3 = vor.u32 %v1936_v44, %v1935_v47  ;;  %v2266_v50 = vshrl.u32 %v7388_v0, 16 }
  0xe3   : > { %10678 = vst [vmem:[#allocation80_spill] sm:$0xff] %v7385_v20  ;;  %v1929_v48 = vshll.u32 %v10642_v5, %v7333_v32  ;;  %v1932_v34 = vshll.u32 %v10640_v22, %v7333_v32  ;;  %v1456_v16 = vsel %vm1455_vm5, %v1454_v21, 0  ;;  %v2288_v36 = vshrl.u32 %v7392_v9, 16 }
  0xe4   : > { %10679 = vst [vmem:[#allocation81_spill] sm:$0xff] %v7388_v0  ;;  %v1924_v13 = vshrl.u32 %v10643_v4, %v7349_v17  ;;  %v1928_v43 = vor.u32 %v1927_v31, %v1926_v18  ;;  %vm1941_vm6 = vcmp.lt.s32.totalorder %v7398_v25, 4  ;;  %v2680_v11 = vshrl.u32 %v2679_v23, 23 }
  0xe5   : > { %10680 = vst [vmem:[#allocation82_spill] sm:$0xff] %v7392_v9  ;;  %v1931_v44 = vor.u32 %v1930_v10, %v1929_v48  ;;  %v1934_v47 = vor.u32 %v1933_v27, %v1932_v34  ;;  %v1951_v21 = vsel %vm1941_vm6, %v1937_v3, 1326507024  ;;  %v1458_v51 = vand.u32 31, %v1456_v16 }
  0xe6   : > { %v7423_v60 = vmul.f32 %v6828_v30, %v273_v55  ;;  %v10682_v19 = vand.u32 65535, %v7388_v0  ;;  %v7431_v31 = vmul.u32 %v2266_v50, %v7342_v52  ;;  %v1923_v34 = vshll.u32 %v10623_v62, %v7333_v32 }
  0xe7   : > { %v7435_v10 = vshll.u32 %v1914_v53, 8  ;;  %v7438_v27 = vmul.u32 %v2266_v50, %v7345_v41  ;;  %v7441_v23 = vmul.u32 %v2288_v36, %v7342_v52  ;;  %vm1938_vm7 = vcmp.lt.s32.totalorder %v7398_v25, 1 }
  0xe8   : > { %10681 = vst [vmem:[#allocation83_spill] sm:$0xff] %v7423_v60  ;;  %v7428_v59 = vmul.u32 %v10682_v19, %v7342_v52  ;;  %vm1940_vm8 = vcmp.lt.s32.totalorder %v7398_v25, 3  ;;  %v1925_v55 = vor.u32 %v1924_v13, %v1923_v34  ;;  %v1950_v19 = vsel %vm1938_vm7, %v1928_v43, %v1931_v44  ;;  %v288_v33 = vpop.permute.xlu1 %287 }
  0xe9   : > { %10684 = vst [vmem:[#allocation85_spill] sm:$0xff] %v7431_v31  ;;  %v1952_v18 = vsel %vm1940_vm8, %v1934_v47, %v1951_v21  ;;  %v6480_v32 = vadd.s32 4294967169, %v2680_v11  ;;  %v7450_v53 = vmul.u32 %v2288_v36, %v7345_v41  ;;  %v1943_v3 = vsel %vm1941_vm6, %v1931_v44, 2102212464 }
  0xea   : > { %10683 = vst [vmem:[#allocation84_spill] sm:$0xff] %v7428_v59  ;;  %v1459_v50 = vsub.s32 32, %v1458_v51  ;;  %v369_v48 = vand.u32 2139095040, %v7423_v60  ;;  %v1922_v8 = vshrl.u32 %v10623_v62, %v7349_v17  ;;  %vm1939_vm9 = vcmp.lt.s32.totalorder %v7398_v25, 2 }
  0xeb   : > { %10685 = vst [vmem:[#allocation86_spill] sm:$0xff] %v7435_v10  ;;  %v1947_v13 = vsel %vm1941_vm6, %v1934_v47, 920167782  ;;  %v7461_v21 = vand.u32 65535, %v7435_v10  ;;  %v7466_v11 = vsel %vm1939_vm9, %v1950_v19, %v1952_v18  ;;  %v7469_v34 = vshrl.u32 %v7435_v10, 16 }
  0xec   : > { %10686 = vst [vmem:[#allocation87_spill] sm:$0xff] %v7438_v27  ;;  %v10690_v20 = vand.u32 2147483647, %v7273_v6  ;;  %v1942_v15 = vsel %vm1938_vm7, %v1922_v8, %v1925_v55  ;;  %v1944_v47 = vsel %vm1940_vm8, %v1928_v43, %v1943_v3  ;;  %v2686_v36 = vadd.s32 1, %v6480_v32 }
  0xed   : > { %10687 = vst [vmem:[#allocation88_spill] sm:$0xff] %v7441_v23  ;;  %v1948_v19 = vsel %vm1940_vm8, %v1931_v44, %v1947_v13  ;;  %v1473_v18 = vshll.u32 %v10641_v24, %v1458_v51  ;;  %v1474_v52 = vshrl.u32 %v10638_v42, %v1459_v50  ;;  %v370_v23 = vshrl.u32 %v369_v48, 23 }
  0xee   : > { %10688 = vst [vmem:[#allocation89_spill] sm:$0xff] %v7450_v53  ;;  %v1451_v17 = vand.u32 8388607, %v10690_v20  ;;  %v1946_v53 = vsel %vm1938_vm7, %v1925_v55, %v1928_v43  ;;  %v1958_v20 = vshrl.u32 %v7466_v11, 16  ;;  %v1457_v6 = vshrl.u32 %v1456_v16, 5 }
  0xef   : > { %10689 = vst [vmem:[#allocation90_spill] sm:$0xff] %v7461_v21  ;;  %v1470_v8 = vshll.u32 %v10640_v22, %v1458_v51  ;;  %v1471_v9 = vshrl.u32 %v10641_v24, %v1459_v50  ;;  %v1461_v3 = vshll.u32 %v10623_v62, %v1458_v51  ;;  %v1467_v43 = vshll.u32 %v10642_v5, %v1458_v51 }
  0xf0   : > { %v1468_v55 = vshrl.u32 %v10640_v22, %v1459_v50  ;;  %v1462_v32 = vshrl.u32 %v10643_v4, %v1459_v50  ;;  %v1464_v13 = vshll.u32 %v10643_v4, %v1458_v51  ;;  %v1465_v48 = vshrl.u32 %v10642_v5, %v1459_v50 }
  0xf1   : > { %vm2687_vm10 = vcmp.gt.s32.totalorder %v2686_v36, 0  ;;  %v10691_v16 = vshll.u32 %v7431_v31, 16  ;;  %v1452_v0 = vor.u32 8388608, %v1451_v17  ;;  %v1475_v41 = vor.u32 %v1474_v52, %v1473_v18 }
  0xf2   : > { %v6435_v7 = vadd.s32 4294967169, %v370_v23  ;;  %v7500_v58 = vsel %vm1939_vm9, %v1942_v15, %v1944_v47  ;;  %v7504_v44 = vsel %vm1939_vm9, %v1946_v53, %v1948_v19  ;;  %v1472_v51 = vor.u32 %v1471_v9, %v1470_v8 }
  0xf3   : > { %v7496_v27 = vadd.s32 %v10691_v16, %v7428_v59  ;;  %10693 = vst [vmem:[#allocation92_spill] sm:$0xff] %v7500_v58  ;;  %vm1479_vm11 = vcmp.lt.s32.totalorder %v1457_v6, 4  ;;  %v7507_v35 = vmul.u32 %v1958_v20, %v7461_v21  ;;  %v1469_v37 = vor.u32 %v1468_v55, %v1467_v43 }
  0xf4   : > { %10694 = vst [vmem:[#allocation93_spill] sm:$0xff] %v7504_v44  ;;  %v10695_v16 = vand.u32 2147483647, %v7367_v45  ;;  %v2688_v17 = vsel %vm2687_vm10, %v2686_v36, 0  ;;  %v1460_v52 = vshrl.u32 %v10623_v62, %v1459_v50  ;;  %v1463_v23 = vor.u32 %v1462_v32, %v1461_v3 }
  0xf5   : > { %10692 = vst [vmem:[#allocation91_spill] sm:$0xff] %v7496_v27  ;;  %v1466_v18 = vor.u32 %v1465_v48, %v1464_v13  ;;  %vm1476_vm12 = vcmp.lt.s32.totalorder %v1457_v6, 1  ;;  %vm1478_vm13 = vcmp.lt.s32.totalorder %v1457_v6, 3  ;;  %v1481_v15 = vsel %vm1479_vm11, %v1469_v37, 2102212464 }
  0xf6   : > { %v2683_v27 = vand.u32 8388607, %v10695_v16  ;;  %v1489_v25 = vsel %vm1479_vm11, %v1475_v41, 1326507024  ;;  %v376_v53 = vadd.s32 1, %v6435_v7  ;;  %v7514_v19 = vshll.u32 %v1452_v0, 8 }
  0xf7   : > { %v1485_v47 = vsel %vm1479_vm11, %v1472_v51, 920167782  ;;  %v2690_v8 = vand.u32 31, %v2688_v17  ;;  %v10388_v43 = vand.u32 65535, %v7466_v11  ;;  %v1980_v36 = vshrl.u32 %v7504_v44, 16 }
  0xf8   : > { %10696 = vst [vmem:[#allocation94_spill] sm:$0xff] %v7514_v19  ;;  %vm1477_vm14 = vcmp.lt.s32.totalorder %v1457_v6, 2  ;;  %v2684_v50 = vor.u32 8388608, %v2683_v27  ;;  %v1480_v3 = vsel %vm1476_vm12, %v1460_v52, %v1463_v23  ;;  %v1482_v55 = vsel %vm1478_vm13, %v1466_v18, %v1481_v15 }
  0xf9   : > { %v1488_v41 = vsel %vm1476_vm12, %v1466_v18, %v1469_v37  ;;  %v1490_v7 = vsel %vm1478_vm13, %v1472_v51, %v1489_v25  ;;  %v10389_v32 = vshll.u32 %v7507_v35, 16  ;;  %v1484_v0 = vsel %vm1476_vm12, %v1463_v23, %v1466_v18 }
  0xfa   : > { %v1486_v13 = vsel %vm1478_vm13, %v1469_v37, %v1485_v47  ;;  %vm377_vm15 = vcmp.gt.s32.totalorder %v376_v53, 0  ;;  %v7527_v16 = vand.u32 65535, %v7514_v19  ;;  %v7530_v27 = vshrl.u32 %v7514_v19, 16 }
  0xfb   : > { %v2691_v52 = vsub.s32 32, %v2690_v8  ;;  %v7535_v51 = vmul.u32 %v10388_v43, %v7461_v21  ;;  %v7538_v15 = vsel %vm1477_vm14, %v1480_v3, %v1482_v55  ;;  %v7541_v37 = vsel %vm1477_vm14, %v1488_v41, %v1490_v7  ;;  %v283_v7 = vpop.permute.xlu0 %282 }
  0xfc   : > { %10697 = vst [vmem:[#allocation95_spill] sm:$0xff] %v7527_v16  ;;  %v7543_v23 = vshll.u32 %v2684_v50, 8  ;;  %v7546_v18 = vmul.u32 %v1958_v20, %v7469_v34  ;;  %v7549_v25 = vsel %vm1477_vm14, %v1484_v0, %v1486_v13  ;;  %v10397_v47 = vand.u32 65535, %v7541_v37 }
  0xfd   : > { %10698 = vst [vmem:[#allocation96_spill] sm:$0xff] %v7530_v27  ;;  %v378_v9 = vsel %vm377_vm15, %v376_v53, 0  ;;  %v7555_v48 = vadd.s32 %v10389_v32, %v7535_v51  ;;  %v7558_v3 = vmul.u32 %v1980_v36, %v7461_v21  ;;  %v7561_v50 = vmul.u32 %v1980_v36, %v7469_v34 }
  0xfe   : > { %10699 = vst [vmem:[#allocation97_spill] sm:$0xff] %v7538_v15  ;;  %v1496_v6 = vshrl.u32 %v7541_v37, 16  ;;  %v2706_v41 = vshrl.u32 %v10638_v42, %v2691_v52  ;;  %v1518_v0 = vshrl.u32 %v7549_v25, 16  ;;  %v7571_v13 = vand.u32 65535, %v7543_v23 }
  0xff   : > { %10700 = vst [vmem:[#allocation98_spill] sm:$0xff] %v7541_v37  ;;  %v7574_v36 = vshrl.u32 %v7543_v23, 16  ;;  %v380_v43 = vand.u32 31, %v378_v9  ;;  %v7579_v32 = vmul.u32 %v10397_v47, %v7527_v16  ;;  %v2694_v55 = vshrl.u32 %v10643_v4, %v2691_v52 }
 0x100   : > { %10701 = vst [vmem:[#allocation99_spill] sm:$0xff] %v7543_v23  ;;  %v2700_v53 = vshrl.u32 %v10640_v22, %v2691_v52  ;;  %v2705_v20 = vshll.u32 %v10641_v24, %v2690_v8  ;;  %v7584_v15 = vshrl.u32 %v2688_v17, 5  ;;  %v2697_v19 = vshrl.u32 %v10642_v5, %v2691_v52 }
 0x101   : > { %10702 = vst [vmem:[#allocation100_spill] sm:$0xff] %v7546_v18  ;;  %v7589_v45 = vmul.f32 %v6828_v30, %v283_v7  ;;  %v7592_v59 = vmul.u32 %v1496_v6, %v7527_v16  ;;  %v2693_v47 = vshll.u32 %v10623_v62, %v2690_v8  ;;  %v2699_v37 = vshll.u32 %v10642_v5, %v2690_v8 }
 0x102   : > { %10703 = vst [vmem:[#allocation101_spill] sm:$0xff] %v7549_v25  ;;  %v2703_v25 = vshrl.u32 %v10641_v24, %v2691_v52  ;;  %v2707_v31 = vor.u32 %v2706_v41, %v2705_v20  ;;  %v7597_v61 = vmul.u32 %v1496_v6, %v7530_v27  ;;  %v2696_v17 = vshll.u32 %v10643_v4, %v2690_v8 }
 0x103   : > { %10704 = vst [vmem:[#allocation102_spill] sm:$0xff] %v7555_v48  ;;  %v2702_v38 = vshll.u32 %v10640_v22, %v2690_v8  ;;  %v381_v63 = vsub.s32 32, %v380_v43  ;;  %v7602_v58 = vmul.u32 %v1518_v0, %v7527_v16  ;;  %v7605_v7 = vmul.u32 %v1518_v0, %v7530_v27 }
 0x104   : > { %10705 = vst [vmem:[#allocation103_spill] sm:$0xff] %v7558_v3  ;;  %v2695_v10 = vor.u32 %v2694_v55, %v2693_v47  ;;  %v2701_v56 = vor.u32 %v2700_v53, %v2699_v37  ;;  %v2698_v29 = vor.u32 %v2697_v19, %v2696_v17  ;;  %vm2711_vm0 = vcmp.lt.s32.totalorder %v7584_v15, 4 }
 0x105   : > { %10706 = vst [vmem:[#allocation104_spill] sm:$0xff] %v7561_v50  ;;  %v2704_v26 = vor.u32 %v2703_v25, %v2702_v38  ;;  %v677_v20 = vand.u32 2139095040, %v7589_v45  ;;  %v2692_v8 = vshrl.u32 %v10623_v62, %v2691_v52  ;;  %v2721_v41 = vsel %vm2711_vm0, %v2707_v31, 1326507024 }
 0x106   : > { %10707 = vst [vmem:[#allocation105_spill] sm:$0xff] %v7571_v13  ;;  %vm2708_vm1 = vcmp.lt.s32.totalorder %v7584_v15, 1  ;;  %v396_v19 = vshrl.u32 %v10638_v42, %v381_v63  ;;  %v7620_v37 = vmul.f32 %v6828_v30, %v288_v33  ;;  %vm2709_vm2 = vcmp.lt.s32.totalorder %v7584_v15, 2 }
 0x107   : > { %10708 = vst [vmem:[#allocation106_spill] sm:$0xff] %v7574_v36  ;;  %v678_v38 = vshrl.u32 %v677_v20, 23  ;;  %vm2710_vm3 = vcmp.lt.s32.totalorder %v7584_v15, 3  ;;  %v2712_v52 = vsel %vm2708_vm1, %v2692_v8, %v2695_v10  ;;  %v2713_v31 = vsel %vm2711_vm0, %v2701_v56, 2102212464  ;;  %v298_v8 = vpop.permute.xlu0 %297 }
 0x108   : > { %10709 = vst [vmem:[#allocation107_spill] sm:$0xff] %v7579_v32  ;;  %v2722_v25 = vsel %vm2710_vm3, %v2704_v26, %v2721_v41  ;;  %v395_v47 = vshll.u32 %v10641_v24, %v380_v43  ;;  %v7633_v55 = vshrl.u32 %v378_v9, 5  ;;  %v387_v53 = vshrl.u32 %v10642_v5, %v381_v63 }
 0x109   : > { %10710 = vst [vmem:[#allocation108_spill] sm:$0xff] %v7589_v45  ;;  %v6441_v33 = vadd.s32 4294967169, %v678_v38  ;;  %v390_v17 = vshrl.u32 %v10640_v22, %v381_v63  ;;  %v393_v20 = vshrl.u32 %v10641_v24, %v381_v63  ;;  %v2714_v6 = vsel %vm2710_vm3, %v2698_v29, %v2713_v31 }
 0x10a   : > { %10711 = vst [vmem:[#allocation109_spill] sm:$0xff] %v7592_v59  ;;  %v831_v41 = vand.u32 2139095040, %v7620_v37  ;;  %v384_v16 = vshrl.u32 %v10643_v4, %v381_v63  ;;  %v389_v9 = vshll.u32 %v10642_v5, %v380_v43  ;;  %v392_v38 = vshll.u32 %v10640_v22, %v380_v43 }
 0x10b   : > { %10712 = vst [vmem:[#allocation110_spill] sm:$0xff] %v7597_v61  ;;  %v10715_v61 = vand.u32 2147483647, %v7423_v60  ;;  %v684_v27 = vadd.s32 1, %v6441_v33  ;;  %v2717_v60 = vsel %vm2711_vm0, %v2704_v26, 920167782  ;;  %v383_v31 = vshll.u32 %v10623_v62, %v380_v43 }
 0x10c   : > { %10713 = vst [vmem:[#allocation111_spill] sm:$0xff] %v7602_v58  ;;  %v397_v58 = vor.u32 %v396_v19, %v395_v47  ;;  %v7653_v19 = vmul.f32 %v6828_v30, %v298_v8  ;;  %v391_v50 = vor.u32 %v390_v17, %v389_v9  ;;  %v394_v3 = vor.u32 %v393_v20, %v392_v38 }
 0x10d   : > { %10714 = vst [vmem:[#allocation112_spill] sm:$0xff] %v7605_v7  ;;  %v7615_v0 = vand.u32 8388607, %v10715_v61  ;;  %v2720_v61 = vsel %vm2708_vm1, %v2698_v29, %v2701_v56  ;;  %v386_v7 = vshll.u32 %v10643_v4, %v380_v43  ;;  %vm401_vm4 = vcmp.lt.s32.totalorder %v7633_v55, 4 }
 0x10e   : > { %10716 = vst [vmem:[#allocation113_spill] sm:$0xff] %v7620_v37  ;;  %v7649_v46 = vsel %vm2709_vm2, %v2720_v61, %v2722_v25  ;;  %v2716_v33 = vsel %vm2708_vm1, %v2695_v10, %v2698_v29  ;;  %v411_v26 = vsel %vm401_vm4, %v397_v58, 1326507024  ;;  %v832_v61 = vshrl.u32 %v831_v41, 23 }
 0x10f   : > { %10717 = vst [vmem:[#allocation114_spill] sm:$0xff] %v7649_v46  ;;  %v388_v47 = vor.u32 %v387_v53, %v386_v7  ;;  %v374_v21 = vor.u32 8388608, %v7615_v0  ;;  %v2718_v43 = vsel %vm2710_vm3, %v2701_v56, %v2717_v60  ;;  %v2728_v25 = vshrl.u32 %v7649_v46, 16 }
 0x110   : > { %10718 = vst [vmem:[#allocation115_spill] sm:$0xff] %v7653_v19  ;;  %v385_v8 = vor.u32 %v384_v16, %v383_v31  ;;  %vm685_vm5 = vcmp.gt.s32.totalorder %v684_v27, 0  ;;  %v7666_v7 = vsel %vm2709_vm2, %v2712_v52, %v2714_v6  ;;  %vm398_vm6 = vcmp.lt.s32.totalorder %v7633_v55, 1 }
 0x111   : > { %10719 = vst [vmem:[#allocation116_spill] sm:$0xff] %v7666_v7  ;;  %vm400_vm7 = vcmp.lt.s32.totalorder %v7633_v55, 3  ;;  %v1139_v29 = vand.u32 2139095040, %v7653_v19  ;;  %v382_v58 = vshrl.u32 %v10623_v62, %v381_v63  ;;  %v407_v10 = vsel %vm401_vm4, %v394_v3, 920167782 }
 0x112   : > { %v410_v56 = vsel %vm398_vm6, %v388_v47, %v391_v50  ;;  %v412_v60 = vsel %vm400_vm7, %v394_v3, %v411_v26  ;;  %v7678_v16 = vsel %vm2709_vm2, %v2716_v33, %v2718_v43  ;;  %v403_v6 = vsel %vm401_vm4, %v391_v50, 2102212464 }
 0x113   : > { %10720 = vst [vmem:[#allocation117_spill] sm:$0xff] %v7678_v16  ;;  %v686_v0 = vsel %vm685_vm5, %v684_v27, 0  ;;  %v6444_v52 = vadd.s32 4294967169, %v832_v61  ;;  %v10422_v53 = vand.u32 65535, %v7649_v46  ;;  %v7684_v63 = vmul.u32 %v2728_v25, %v7571_v13 }
 0x114   : > { %vm399_vm8 = vcmp.lt.s32.totalorder %v7633_v55, 2  ;;  %v402_v17 = vsel %vm398_vm6, %v382_v58, %v385_v8  ;;  %v406_v20 = vsel %vm398_vm6, %v385_v8, %v388_v47  ;;  %v408_v3 = vsel %vm400_vm7, %v391_v50, %v407_v10 }
 0x115   : > { %10721 = vst [vmem:[#allocation118_spill] sm:$0xff] %v7684_v63  ;;  %v7691_v15 = vsel %vm399_vm8, %v410_v56, %v412_v60  ;;  %v1140_v41 = vshrl.u32 %v1139_v29, 23  ;;  %v404_v27 = vsel %vm400_vm7, %v388_v47, %v403_v6  ;;  %v7695_v9 = vshll.u32 %v374_v21, 8 }
 0x116   : > { %10722 = vst [vmem:[#allocation119_spill] sm:$0xff] %v7691_v15  ;;  %v10424_v38 = vand.u32 2147483647, %v7589_v45  ;;  %v688_v31 = vand.u32 31, %v686_v0  ;;  %v10724_v33 = vshll.u32 %v7592_v59, 16  ;;  %v2750_v50 = vshrl.u32 %v7678_v16, 16 }
 0x117   : > { %10723 = vst [vmem:[#allocation120_spill] sm:$0xff] %v7695_v9  ;;  %v838_v43 = vadd.s32 1, %v6444_v52  ;;  %v10423_v8 = vshll.u32 %v7684_v63, 16  ;;  %v7710_v21 = vsel %vm399_vm8, %v406_v20, %v408_v3  ;;  %v418_v29 = vshrl.u32 %v7691_v15, 16 }
 0x118   : > { %v7701_v26 = vadd.s32 %v10724_v33, %v7579_v32  ;;  %10726 = vst [vmem:[#allocation122_spill] sm:$0xff] %v7710_v21  ;;  %v7716_v58 = vmul.u32 %v10422_v53, %v7571_v13  ;;  %v7720_v10 = vsel %vm399_vm8, %v402_v17, %v404_v27  ;;  %v10430_v56 = vand.u32 65535, %v7691_v15 }
 0x119   : > { %10728 = vst [vmem:[#allocation124_spill] sm:$0xff] %v7720_v10  ;;  %v6450_v60 = vadd.s32 4294967169, %v1140_v41  ;;  %v7724_v6 = vand.u32 65535, %v7695_v9  ;;  %v681_v52 = vand.u32 8388607, %v10424_v38  ;;  %v689_v20 = vsub.s32 32, %v688_v31 }
 0x11a   : > { %10725 = vst [vmem:[#allocation121_spill] sm:$0xff] %v7701_v26  ;;  %v7730_v33 = vmul.u32 %v2728_v25, %v7574_v36  ;;  %v7733_v61 = vmul.u32 %v2750_v50, %v7571_v13  ;;  %v440_v55 = vshrl.u32 %v7710_v21, 16  ;;  %vm839_vm9 = vcmp.gt.s32.totalorder %v838_v43, 0 }
 0x11b   : > { %10727 = vst [vmem:[#allocation123_spill] sm:$0xff] %v7716_v58  ;;  %v7739_v17 = vadd.s32 %v10423_v8, %v7716_v58  ;;  %v7742_v41 = vmul.u32 %v2750_v50, %v7574_v36  ;;  %v7745_v27 = vshrl.u32 %v7695_v9, 16  ;;  %v7748_v25 = vmul.u32 %v418_v29, %v7724_v6 }
 0x11c   : > { %10729 = vst [vmem:[#allocation125_spill] sm:$0xff] %v7724_v6  ;;  %v7753_v47 = vmul.u32 %v10430_v56, %v7724_v6  ;;  %v1146_v38 = vadd.s32 1, %v6450_v60  ;;  %v682_v3 = vor.u32 8388608, %v681_v52  ;;  %v698_v50 = vshrl.u32 %v10640_v22, %v689_v20 }
 0x11d   : > { %10730 = vst [vmem:[#allocation126_spill] sm:$0xff] %v7730_v33  ;;  %v10735_v26 = vand.u32 2147483647, %v7620_v37  ;;  %v840_v59 = vsel %vm839_vm9, %v838_v43, 0  ;;  %v7762_v7 = vmul.u32 %v418_v29, %v7745_v27  ;;  %v7765_v23 = vmul.u32 %v440_v55, %v7724_v6  ;;  %v303_v33 = vpop.permute.xlu1 %302 }
 0x11e   : > { %10731 = vst [vmem:[#allocation127_spill] sm:$0xff] %v7733_v61  ;;  %v7768_v56 = vmul.u32 %v440_v55, %v7745_v27  ;;  %v7772_v52 = vshrl.u32 %v686_v0, 5  ;;  %v692_v8 = vshrl.u32 %v10643_v4, %v689_v20  ;;  %v695_v43 = vshrl.u32 %v10642_v5, %v689_v20 }
 0x11f   : > { %10732 = vst [vmem:[#allocation128_spill] sm:$0xff] %v7739_v17  ;;  %v835_v32 = vand.u32 8388607, %v10735_v26  ;;  %v697_v26 = vshll.u32 %v10642_v5, %v688_v31  ;;  %v701_v29 = vshrl.u32 %v10641_v24, %v689_v20  ;;  %vm1147_vm10 = vcmp.gt.s32.totalorder %v1146_v38, 0 }
 0x120   : > { %10733 = vst [vmem:[#allocation129_spill] sm:$0xff] %v7742_v41  ;;  %v842_v41 = vand.u32 31, %v840_v59  ;;  %v704_v55 = vshrl.u32 %v10638_v42, %v689_v20  ;;  %v7779_v13 = vshll.u32 %v682_v3, 8  ;;  %v691_v0 = vshll.u32 %v10623_v62, %v688_v31 }
 0x121   : > { %10734 = vst [vmem:[#allocation130_spill] sm:$0xff] %v7745_v27  ;;  %v699_v16 = vor.u32 %v698_v50, %v697_v26  ;;  %v836_v53 = vor.u32 8388608, %v835_v32  ;;  %v694_v60 = vshll.u32 %v10643_v4, %v688_v31  ;;  %v700_v61 = vshll.u32 %v10640_v22, %v688_v31 }
 0x122   : > { %10736 = vst [vmem:[#allocation131_spill] sm:$0xff] %v7762_v7  ;;  %v10740_v17 = vand.u32 2147483647, %v7653_v19  ;;  %v703_v36 = vshll.u32 %v10641_v24, %v688_v31  ;;  %vm709_vm11 = vcmp.lt.s32.totalorder %v7772_v52, 4  ;;  %v1148_v58 = vsel %vm1147_vm10, %v1146_v38, 0 }
 0x123   : > { %10737 = vst [vmem:[#allocation132_spill] sm:$0xff] %v7765_v23  ;;  %v7789_v50 = vmul.f32 %v6828_v30, %v303_v33  ;;  %v693_v3 = vor.u32 %v692_v8, %v691_v0  ;;  %v696_v26 = vor.u32 %v695_v43, %v694_v60  ;;  %v702_v32 = vor.u32 %v701_v29, %v700_v61 }
 0x124   : > { %10738 = vst [vmem:[#allocation133_spill] sm:$0xff] %v7768_v56  ;;  %v1143_v46 = vand.u32 8388607, %v10740_v17  ;;  %v7791_v63 = vsub.s32 32, %v842_v41  ;;  %v10742_v37 = vshll.u32 %v7748_v25, 16  ;;  %v705_v19 = vor.u32 %v704_v55, %v703_v36 }
 0x125   : > { %10739 = vst [vmem:[#allocation134_spill] sm:$0xff] %v7779_v13  ;;  %v711_v31 = vsel %vm709_vm11, %v699_v16, 2102212464  ;;  %v7800_v17 = vshll.u32 %v836_v53, 8  ;;  %v690_v38 = vshrl.u32 %v10623_v62, %v689_v20  ;;  %v7804_v33 = vand.u32 65535, %v7779_v13 }
 0x126   : > { %10741 = vst [vmem:[#allocation135_spill] sm:$0xff] %v7789_v50  ;;  %v7796_v45 = vadd.s32 %v10742_v37, %v7753_v47  ;;  %v7807_v61 = vshrl.u32 %v7779_v13, 16  ;;  %v7809_v8 = vand.u32 31, %v1148_v58  ;;  %vm706_vm12 = vcmp.lt.s32.totalorder %v7772_v52, 1 }
 0x127   : > { %10744 = vst [vmem:[#allocation137_spill] sm:$0xff] %v7800_v17  ;;  %vm708_vm13 = vcmp.lt.s32.totalorder %v7772_v52, 3  ;;  %v1144_v36 = vor.u32 8388608, %v1143_v46  ;;  %v710_v53 = vsel %vm706_vm12, %v690_v38, %v693_v3  ;;  %v715_v60 = vsel %vm709_vm11, %v702_v32, 920167782 }
 0x128   : > { %10743 = vst [vmem:[#allocation136_spill] sm:$0xff] %v7796_v45  ;;  %v712_v20 = vsel %vm708_vm13, %v696_v26, %v711_v31  ;;  %v858_v43 = vshrl.u32 %v10638_v42, %v7791_v63  ;;  %vm707_vm14 = vcmp.lt.s32.totalorder %v7772_v52, 2  ;;  %v719_v29 = vsel %vm709_vm11, %v705_v19, 1326507024 }
 0x129   : > { %v7826_v46 = vand.u32 65535, %v7800_v17  ;;  %v7829_v55 = vshrl.u32 %v7800_v17, 16  ;;  %v714_v0 = vsel %vm706_vm12, %v693_v3, %v696_v26  ;;  %v7833_v31 = vshrl.u32 %v840_v59, 5 }
 0x12a   : > { %v857_v38 = vshll.u32 %v10641_v24, %v842_v41  ;;  %v7837_v37 = vsub.s32 32, %v7809_v8  ;;  %v7841_v10 = vsel %vm707_vm14, %v710_v53, %v712_v20  ;;  %v716_v19 = vsel %vm708_vm13, %v699_v16, %v715_v60 }
 0x12b   : > { %10745 = vst [vmem:[#allocation138_spill] sm:$0xff] %v7826_v46  ;;  %v718_v9 = vsel %vm706_vm12, %v696_v26, %v699_v16  ;;  %v849_v3 = vshrl.u32 %v10642_v5, %v7791_v63  ;;  %v720_v59 = vsel %vm708_vm13, %v702_v32, %v719_v29  ;;  %v852_v56 = vshrl.u32 %v10640_v22, %v7791_v63 }
 0x12c   : > { %10746 = vst [vmem:[#allocation139_spill] sm:$0xff] %v7841_v10  ;;  %v855_v6 = vshrl.u32 %v10641_v24, %v7791_v63  ;;  %v859_v53 = vor.u32 %v858_v43, %v857_v38  ;;  %v845_v20 = vshll.u32 %v10623_v62, %v842_v41  ;;  %v848_v60 = vshll.u32 %v10643_v4, %v842_v41 }
 0x12d   : > { %v7857_v23 = vshll.u32 %v1144_v36, 8  ;;  %v1293_v16 = vand.u32 2139095040, %v7789_v50  ;;  %v7862_v26 = vsel %vm707_vm14, %v714_v0, %v716_v19  ;;  %v851_v32 = vshll.u32 %v10642_v5, %v842_v41 }
 0x12e   : > { %v854_v29 = vshll.u32 %v10640_v22, %v842_v41  ;;  %v1166_v21 = vshrl.u32 %v10638_v42, %v7837_v37  ;;  %v7870_v43 = vsel %vm707_vm14, %v718_v9, %v720_v59  ;;  %v7874_v38 = vor.u32 %v849_v3, %v848_v60 }
 0x12f   : > { %10747 = vst [vmem:[#allocation140_spill] sm:$0xff] %v7857_v23  ;;  %vm863_vm15 = vcmp.lt.s32.totalorder %v7833_v31, 4  ;;  %v853_v0 = vor.u32 %v852_v56, %v851_v32  ;;  %v1165_v41 = vshll.u32 %v10641_v24, %v7809_v8  ;;  %v7881_v7 = vshrl.u32 %v1148_v58, 5 }
 0x130   : > { %v856_v19 = vor.u32 %v855_v6, %v854_v29  ;;  %v873_v45 = vsel %vm863_vm15, %v859_v53, 1326507024  ;;  %v1157_v9 = vshrl.u32 %v10642_v5, %v7837_v37  ;;  %v1160_v52 = vshrl.u32 %v10640_v22, %v7837_v37 }
 0x131   : > { %v1163_v3 = vshrl.u32 %v10641_v24, %v7837_v37  ;;  %v846_v56 = vshrl.u32 %v10643_v4, %v7791_v63  ;;  %vm860_vm0 = vcmp.lt.s32.totalorder %v7833_v31, 1  ;;  %v1167_v6 = vor.u32 %v1166_v21, %v1165_v41 }
 0x132   : > { %v1294_v59 = vshrl.u32 %v1293_v16, 23  ;;  %vm862_vm1 = vcmp.lt.s32.totalorder %v7833_v31, 3  ;;  %v1156_v58 = vshll.u32 %v10643_v4, %v7809_v8  ;;  %v1159_v53 = vshll.u32 %v10642_v5, %v7809_v8 }
 0x133   : > { %v1162_v60 = vshll.u32 %v10640_v22, %v7809_v8  ;;  %v726_v32 = vshrl.u32 %v7870_v43, 16  ;;  %v872_v29 = vsel %vm860_vm0, %v7874_v38, %v853_v0  ;;  %v874_v21 = vsel %vm862_vm1, %v856_v19, %v873_v45 }
 0x134   : > { %v6453_v16 = vadd.s32 4294967169, %v1294_v59  ;;  %v7905_v41 = vor.u32 %v1157_v9, %v1156_v58  ;;  %v1161_v36 = vor.u32 %v1160_v52, %v1159_v53  ;;  %vm1171_vm2 = vcmp.lt.s32.totalorder %v7881_v7, 4 }
 0x135   : > { %v1164_v10 = vor.u32 %v1163_v3, %v1162_v60  ;;  %v847_v13 = vor.u32 %v846_v56, %v845_v20  ;;  %vm861_vm3 = vcmp.lt.s32.totalorder %v7833_v31, 2  ;;  %v1154_v15 = vshrl.u32 %v10643_v4, %v7837_v37  ;;  %v5325_v56 = vld [vmem:[#allocation2 + $0x78] sm:$0xff] }
 0x136   : > { %v1181_v27 = vsel %vm1171_vm2, %v1167_v6, 1326507024  ;;  %v10460_v44 = vand.u32 65535, %v7870_v43  ;;  %v844_v45 = vshrl.u32 %v10623_v62, %v7791_v63  ;;  %v869_v9 = vsel %vm863_vm15, %v856_v19, 920167782  ;;  %v5324_v6 = vld [vmem:[#allocation2 + $0x70] sm:$0xff]  ;;  %6597 = vmatpush.msra.mxu1 %v5325_v56  ;;  %5383 = vmatpush.msra.mxu0 %v5325_v56 }
 0x137   : > { %v7920_v52 = vsel %vm861_vm3, %v872_v29, %v874_v21  ;;  %v1153_v20 = vshll.u32 %v10623_v62, %v7809_v8  ;;  %vm1168_vm4 = vcmp.lt.s32.totalorder %v7881_v7, 1  ;;  %vm1170_vm5 = vcmp.lt.s32.totalorder %v7881_v7, 3  ;;  %v313_v21 = vpop.permute.xlu0 %312 }
 0x138   : > { %10748 = vst [vmem:[#allocation141_spill] sm:$0xff] %v7920_v52  ;;  %v1300_v3 = vadd.s32 1, %v6453_v16  ;;  %v7927_v59 = vmul.u32 %v726_v32, %v7804_v33  ;;  %v748_v63 = vshrl.u32 %v7862_v26, 16  ;;  %v1180_v19 = vsel %vm1168_vm4, %v7905_v41, %v1161_v36  ;;  %v5323_v16 = vld [vmem:[#allocation2 + $0x68] sm:$0xff]  ;;  %6598 = vmatpush.msra.mxu1 %v5324_v6  ;;  %5384 = vmatpush.msra.mxu0 %v5324_v6 }
 0x139   : > { %v1182_v58 = vsel %vm1170_vm5, %v1164_v10, %v1181_v27  ;;  %v865_v8 = vsel %vm863_vm15, %v853_v0, 2102212464  ;;  %v868_v53 = vsel %vm860_vm0, %v847_v13, %v7874_v38  ;;  %v870_v60 = vsel %vm862_vm1, %v853_v0, %v869_v9  ;;  %v5322_v9 = vld [vmem:[#allocation2 + $0x60] sm:$0xff] }
 0x13a   : > { %v1155_v29 = vor.u32 %v1154_v15, %v1153_v20  ;;  %v7945_v48 = vmul.u32 %v10460_v44, %v7804_v33  ;;  %v10461_v27 = vshrl.u32 %v7920_v52, 16  ;;  %vm1169_vm6 = vcmp.lt.s32.totalorder %v7881_v7, 2  ;;  %6599 = vmatpush.msra.mxu1 %v5323_v16  ;;  %5385 = vmatpush.msra.mxu0 %v5323_v16 }
 0x13b   : > { %v1177_v56 = vsel %vm1171_vm2, %v1164_v10, 920167782  ;;  %v7952_v18 = vmul.u32 %v726_v32, %v7807_v61  ;;  %v864_v15 = vsel %vm860_vm0, %v844_v45, %v847_v13  ;;  %v7958_v0 = vsel %vm1169_vm6, %v1180_v19, %v1182_v58  ;;  %v5321_v58 = vld [vmem:[#allocation2 + $0x58] sm:$0xff] }
 0x13c   : > { %10749 = vst [vmem:[#allocation142_spill] sm:$0xff] %v7958_v0  ;;  %vm1301_vm7 = vcmp.gt.s32.totalorder %v1300_v3, 0  ;;  %v866_v10 = vsel %vm862_vm1, %v7874_v38, %v865_v8  ;;  %v7966_v6 = vsel %vm861_vm3, %v868_v53, %v870_v60  ;;  %v7969_v32 = vmul.f32 %v6828_v30, %v313_v21  ;;  %6600 = vmatpush.msra.mxu1 %v5322_v9 }
 0x13d   : > { %10750 = vst [vmem:[#allocation143_spill] sm:$0xff] %v7966_v6  ;;  %v10462_v13 = vshll.u32 %v7927_v59, 16  ;;  %v7973_v45 = vmul.u32 %v748_v63, %v7804_v33  ;;  %v1176_v19 = vsel %vm1168_vm4, %v1155_v29, %v7905_v41  ;;  %v1178_v38 = vsel %vm1170_vm5, %v1161_v36, %v1177_v56  ;;  %5386 = vmatpush.msra.mxu0 %v5322_v9  ;;  %v5320_v9 = vld [vmem:[#allocation2 + $0x50] sm:$0xff] }
 0x13e   : > { %10751 = vst [vmem:[#allocation144_spill] sm:$0xff] %v7969_v32  ;;  %v7983_v30 = vmul.u32 %v10461_v27, %v7826_v46  ;;  %v1173_v8 = vsel %vm1171_vm2, %v1161_v36, 2102212464  ;;  %v1188_v53 = vshrl.u32 %v7958_v0, 16  ;;  %v7989_v60 = vsel %vm1301_vm7, %v1300_v3, 0  ;;  %6601 = vmatpush.msra.mxu1 %v5321_v58 }
 0x13f   : > { %v10752_v21 = vshll.u32 %v7245_v12, 16  ;;  %v8000_v56 = vsel %vm861_vm3, %v864_v15, %v866_v10  ;;  %v902_v36 = vshrl.u32 %v7966_v6, 16  ;;  %v1152_v20 = vshrl.u32 %v10623_v62, %v7837_v37  ;;  %5387 = vmatpush.msra.mxu0 %v5321_v58 }
 0x140   : > { %10755 = vst [vmem:[#allocation145_spill] sm:$0xff] %v8000_v56  ;;  %v10756_v3 = vand.u32 2147483647, %v7789_v50  ;;  %v1601_v31 = vand.u32 2139095040, %v7969_v32  ;;  %v8017_v15 = vmul.u32 %v748_v63, %v7807_v61  ;;  %v1174_v10 = vsel %vm1170_vm5, %v7905_v41, %v1173_v8  ;;  %6602 = vmatpush.msra.mxu1 %v5320_v9 }
 0x141   : > { %vm7994_vm8 = vc.u32 %v7264_v57, %v10752_v21  ;;  %v8010_v57 = vsel %vm1169_vm6, %v1176_v19, %v1178_v38  ;;  %v8013_v21 = vand.u32 65535, %v7857_v23  ;;  %v1172_v37 = vsel %vm1168_vm4, %v1152_v20, %v1155_v29  ;;  %v5319_v38 = vld [vmem:[#allocation2 + $0x48] sm:$0xff]  ;;  %5388 = vmatpush.msra.mxu0 %v5320_v9 }
 0x142   : > { %v1297_v44 = vand.u32 8388607, %v10756_v3  ;;  %10757 = vst [vmem:[#allocation146_spill] sm:$0xff] %v8010_v57  ;;  %v1304_v19 = vand.u32 31, %v7989_v60  ;;  %v8028_v3 = vadd.s32 %v10462_v13, %v7945_v48  ;;  %v8036_v29 = vmul.u32 %v902_v36, %v7826_v46  ;;  %v5318_v13 = vld [vmem:[#allocation2 + $0x40] sm:$0xff]  ;;  %6603 = vmatpush.msra.mxu1 %v5319_v38 }
 0x143   : > { %10758 = vst [vmem:[#allocation147_spill] sm:$0xff] %v8013_v21  ;;  %v8033_v27 = vmul.u32 %v1188_v53, %v8013_v21  ;;  %v1210_v20 = vshrl.u32 %v8010_v57, 16  ;;  %v10761_v58 = vand.u32 65535, %v7920_v52  ;;  %v8048_v63 = vsel %vm1169_vm6, %v1172_v37, %v1174_v10  ;;  %5389 = vmatpush.msra.mxu0 %v5319_v38 }
 0x144   : > { %10760 = vst [vmem:[#allocation149_spill] sm:$0xff] %v8036_v29  ;;  %v1298_v8 = vor.u32 8388608, %v1297_v44  ;;  %v10472_v9 = vand.u32 65535, %v7958_v0  ;;  %v1602_v6 = vshrl.u32 %v1601_v31, 23  ;;  %v8052_v41 = vmul.u32 %v902_v36, %v7829_v55  ;;  %6604 = vmatpush.msra.mxu1 %v5318_v13 }
 0x145   : > { %10759 = vst [vmem:[#allocation148_spill] sm:$0xff] %v8033_v27  ;;  %v8044_v50 = vmul.u32 %v10761_v58, %v7826_v46  ;;  %v1305_v56 = vsub.s32 32, %v1304_v19  ;;  %v10764_v17 = vand.u32 65535, %v7206_v49  ;;  %v10765_v7 = vshrl.u32 %v7920_v52, 16  ;;  %5390 = vmatpush.msra.mxu0 %v5318_v13 }
 0x146   : > { %10762 = vst [vmem:[#allocation150_spill] sm:$0xff] %v8048_v63  ;;  %v10767_v31 = vshll.u32 %v7983_v30, 16  ;;  %v8071_v36 = vshrl.u32 %v7857_v23, 16  ;;  %v8080_v44 = vshll.u32 %v1298_v8, 8  ;;  %v6459_v49 = vadd.s32 4294967169, %v1602_v6 }
 0x147   : > { %10763 = vst [vmem:[#allocation151_spill] sm:$0xff] %v8052_v41  ;;  %v8058_v58 = vmul.u32 %v10764_v17, %v7216_v54  ;;  %v8063_v37 = vmul.u32 %v10765_v7, %v7829_v55  ;;  %v8076_v17 = vmul.u32 %v1210_v20, %v8013_v21  ;;  %v1314_v38 = vshrl.u32 %v10640_v22, %v1305_v56 }
 0x148   : > { %v8068_v10 = vadd.s32 %v10767_v31, %v8044_v50  ;;  %10769 = vst [vmem:[#allocation154_spill] sm:$0xff] %v8071_v36  ;;  %v8085_v31 = vmul.u32 %v10472_v9, %v8013_v21  ;;  %v8088_v41 = vmul.u32 %v1188_v53, %v8071_v36  ;;  %v8091_v13 = vmul.u32 %v1210_v20, %v8071_v36 }
 0x149   : > { %10766 = vst [vmem:[#allocation152_spill] sm:$0xff] %v8063_v37  ;;  %v1810_v8 = vshrl.u32 %v7245_v12, 16  ;;  %v1811_v7 = vshll.u32 %v8058_v58, 16  ;;  %v10776_v9 = vshll.u32 %v8033_v27, 16  ;;  %v1317_v53 = vshrl.u32 %v10641_v24, %v1305_v56 }
 0x14a   : > { %10768 = vst [vmem:[#allocation153_spill] sm:$0xff] %v8068_v10  ;;  %v10778_v23 = vmov 0   ;;  %v1308_v12 = vshrl.u32 %v10643_v4, %v1305_v56  ;;  %v1316_v21 = vshll.u32 %v10640_v22, %v1304_v19  ;;  %v1320_v20 = vshrl.u32 %v10638_v42, %v1305_v56 }
 0x14b   : > { %10770 = vst [vmem:[#allocation155_spill] sm:$0xff] %v8076_v17  ;;  %v10775_v17 = vand.u32 2147483647, %v7969_v32  ;;  %v8101_v63 = vadd.s32 %v10776_v9, %v8085_v31  ;;  %v1814_v6 = vsel %vm7994_vm8, 1, %v10778_v23  ;;  %v8109_v32 = vshrl.u32 %v7989_v60, 5 }
 0x14c   : > { %10771 = vst [vmem:[#allocation156_spill] sm:$0xff] %v8080_v44  ;;  %v1311_v9 = vshrl.u32 %v10642_v5, %v1305_v56  ;;  %v1307_v16 = vshll.u32 %v10623_v62, %v1304_v19  ;;  %v8121_v60 = vshrl.u32 %v8080_v44, 16  ;;  %v1816_v0 = vadd.s32 %v1814_v6, %v7282_v28 }
 0x14d   : > { %10772 = vst [vmem:[#allocation157_spill] sm:$0xff] %v8085_v31  ;;  %v1605_v57 = vand.u32 8388607, %v10775_v17  ;;  %v1313_v17 = vshll.u32 %v10642_v5, %v1304_v19  ;;  %v10781_v36 = vshll.u32 %v7507_v35, 16  ;;  %v1310_v27 = vshll.u32 %v10643_v4, %v1304_v19 }
 0x14e   : > { %10773 = vst [vmem:[#allocation158_spill] sm:$0xff] %v8088_v41  ;;  %v1608_v41 = vadd.s32 1, %v6459_v49  ;;  %v1318_v46 = vor.u32 %v1317_v53, %v1316_v21  ;;  %v1319_v49 = vshll.u32 %v10641_v24, %v1304_v19  ;;  %vm1817_vm10 = vc.u32 %v7296_v14, %v1811_v7 }
 0x14f   : > { %10774 = vst [vmem:[#allocation159_spill] sm:$0xff] %v8091_v13  ;;  %v8114_v13 = vand.u32 65535, %v8080_v44  ;;  %vm8127_vm9 = vc.u32 %v7535_v51, %v10781_v36  ;;  %v10784_v29 = vand.u32 65535, %v7225_v2  ;;  %v1312_v36 = vor.u32 %v1311_v9, %v1310_v27 }
 0x150   : > { %10777 = vst [vmem:[#allocation160_spill] sm:$0xff] %v8101_v63  ;;  %v1315_v63 = vor.u32 %v1314_v38, %v1313_v17  ;;  %v1309_v38 = vor.u32 %v1308_v12, %v1307_v16  ;;  %v1606_v17 = vor.u32 8388608, %v1605_v57  ;;  %v1321_v10 = vor.u32 %v1320_v20, %v1319_v49 }
 0x151   : > { %10779 = vst [vmem:[#allocation161_spill] sm:$0xff] %v8114_v13  ;;  %v1827_v28 = vmul.u32 %v10784_v29, %v7213_v40  ;;  %v10785_v6 = vmov %v10784_v29  ;;  %vm1325_vm11 = vcmp.lt.s32.totalorder %v8109_v32, 4  ;;  %vm1609_vm12 = vcmp.gt.s32.totalorder %v1608_v41, 0 }
 0x152   : > { %10780 = vst [vmem:[#allocation162_spill] sm:$0xff] %v8121_v60  ;;  %v1829_v51 = vmul.u32 %v10785_v6, %v7216_v54  ;;  %v1306_v21 = vshrl.u32 %v10623_v62, %v1305_v56  ;;  %vm1322_vm13 = vcmp.lt.s32.totalorder %v8109_v32, 1  ;;  %v1327_v14 = vsel %vm1325_vm11, %v1315_v63, 2102212464 }
 0x153   : > { %v1818_v57 = vsel %vm1817_vm10, 1, %v10778_v23  ;;  %vm1323_vm14 = vcmp.lt.s32.totalorder %v8109_v32, 2  ;;  %v1331_v40 = vsel %vm1325_vm11, %v1318_v46, 920167782  ;;  %v1831_v2 = vshll.u32 %v7285_v39, 16 }
 0x154   : > { %v1820_v54 = vadd.s32 %v1818_v57, %v1816_v0  ;;  %vm1324_vm15 = vcmp.lt.s32.totalorder %v8109_v32, 3  ;;  %v1326_v27 = vsel %vm1322_vm13, %v1306_v21, %v1309_v38  ;;  %v1610_v56 = vsel %vm1609_vm12, %v1608_v41, 0 }
 0x155   : > { %v8153_v19 = vshll.u32 %v1606_v17, 8  ;;  %v1328_v29 = vsel %vm1324_vm15, %v1312_v36, %v1327_v14  ;;  %v1330_v7 = vsel %vm1322_vm13, %v1309_v38, %v1312_v36  ;;  %v1335_v53 = vsel %vm1325_vm11, %v1321_v10, 1326507024 }
 0x156   : > { %vm1835_vm0 = vc.u32 %v1827_v28, %v1831_v2  ;;  %v1332_v0 = vsel %vm1324_vm15, %v1315_v63, %v1331_v40  ;;  %v1833_v20 = vshll.u32 %v1829_v51, 16  ;;  %v1837_v9 = vadd.s32 %v1831_v2, %v1827_v28  ;;  %v10795_v2 = vld [vmem:[#allocation100_spill] sm:$0xff] }
 0x157   : > { %10786 = vst [vmem:[#allocation163_spill] sm:$0xff] %v8153_v19  ;;  %v1836_v12 = vsel %vm1835_vm0, 1, %v10778_v23  ;;  %v10787_v41 = vshll.u32 %v7748_v25, 16  ;;  %v1334_v49 = vsel %vm1322_vm13, %v1312_v36, %v1315_v63  ;;  %v1821_v38 = vadd.s32 %v1820_v54, %v1810_v8 }
 0x158   : > { %v1838_v10 = vadd.s32 %v1836_v12, %v7288_v1  ;;  %v10790_v17 = vand.u32 65535, %v7466_v11  ;;  %v8179_v28 = vsel %vm1323_vm14, %v1326_v27, %v1328_v29  ;;  %v8183_v21 = vshrl.u32 %v1610_v56, 5  ;;  %v10796_v29 = vld [vmem:[#allocation102_spill] sm:$0xff] }
 0x159   : > { %vm8167_vm1 = vc.u32 %v7753_v47, %v10787_v41  ;;  %10791 = vst [vmem:[#allocation164_spill] sm:$0xff] %v8179_v28  ;;  %v1336_v47 = vsel %vm1324_vm15, %v1318_v46, %v1335_v53  ;;  %vm1839_vm2 = vc.u32 %v1837_v9, %v1833_v20  ;;  %v8187_v63 = vsel %vm1323_vm14, %v1330_v7, %v1332_v0  ;;  %v10801_v41 = vld [vmem:[#allocation103_spill] sm:$0xff] }
 0x15a   : > { %v1961_v6 = vmul.u32 %v10790_v17, %v7469_v34  ;;  %10792 = vst [vmem:[#allocation165_spill] sm:$0xff] %v8183_v21  ;;  %v8189_v8 = vand.u32 31, %v1610_v56  ;;  %v1840_v1 = vsel %vm1839_vm2, 1, %v10778_v23  ;;  %v1832_v36 = vshrl.u32 %v7285_v39, 16  ;;  %v10797_v56 = vld [vmem:[#allocation93_spill] sm:$0xff] }
 0x15b   : > { %10793 = vst [vmem:[#allocation166_spill] sm:$0xff] %v8187_v63  ;;  %v1834_v14 = vshrl.u32 %v1829_v51, 16  ;;  %v1842_v57 = vadd.s32 %v1840_v1, %v1838_v10  ;;  %v1968_v46 = vsel %vm8127_vm9, 1, %v10778_v23  ;;  %v10794_v40 = vshrl.u32 %v8058_v58, 16  ;;  %v10799_v51 = vld [vmem:[#allocation90_spill] sm:$0xff] }
 0x15c   : > { %v1965_v11 = vshll.u32 %v1961_v6, 16  ;;  %v1970_v27 = vadd.s32 %v1968_v46, %v10795_v2  ;;  %v10798_v7 = vand.u32 65535, %v10797_v56  ;;  %v1985_v10 = vshll.u32 %v10801_v41, 16  ;;  %v10803_v2 = vld [vmem:[#allocation119_spill] sm:$0xff] }
 0x15d   : > { %v8198_v54 = vadd.s32 %v1821_v38, %v10794_v40  ;;  %v1843_v0 = vadd.s32 %v1842_v57, %v1832_v36  ;;  %v8210_v58 = vadd.s32 %v1837_v9, %v1833_v20  ;;  %v1964_v38 = vshrl.u32 %v7507_v35, 16  ;;  %v10802_v57 = vld [vmem:[#allocation130_spill] sm:$0xff]  ;;  %v10806_v9 = vld [vmem:[#allocation104_spill] sm:$0xff] }
 0x15e   : > { %vm1971_vm3 = vc.u32 %v10796_v29, %v1965_v11  ;;  %v1983_v53 = vmul.u32 %v10798_v7, %v7469_v34  ;;  %v10800_v12 = vmov %v10798_v7  ;;  %v1966_v17 = vshrl.u32 %v1961_v6, 16 }
 0x15f   : > { %v1972_v39 = vsel %vm1971_vm3, 1, %v10778_v23  ;;  %v1981_v31 = vmul.u32 %v10800_v12, %v10799_v51  ;;  %v1844_v11 = vadd.s32 %v1843_v0, %v1834_v14  ;;  %vm1847_vm5 = vc.u32 %v8198_v54, %v8210_v58 }
 0x160   : > { %v1974_v1 = vadd.s32 %v1972_v39, %v1970_v27  ;;  %v1987_v46 = vshll.u32 %v1983_v53, 16  ;;  %v10804_v29 = vand.u32 65535, %v10803_v2  ;;  %v8221_v20 = vsel %vm1323_vm14, %v1334_v49, %v1336_v47  ;;  %v10807_v49 = vld [vmem:[#allocation55_spill] sm:$0xff]  ;;  %v10808_v47 = vld [vmem:[#allocation61_spill] sm:$0xff] }
 0x161   : > { %vm1989_vm4 = vc.u32 %v1981_v31, %v1985_v10  ;;  %v1991_v40 = vadd.s32 %v1985_v10, %v1981_v31  ;;  %10805 = vst [vmem:[#allocation100_spill] sm:$0xff] %v8221_v20  ;;  %v1848_v35 = vadd.s32 1, %v1844_v11  ;;  %v1986_v7 = vshrl.u32 %v10801_v41, 16  ;;  %v10811_v41 = vld [vmem:[#allocation136_spill] sm:$0xff] }
 0x162   : > { %v1975_v34 = vadd.s32 %v1974_v1, %v1964_v38  ;;  %v1990_v36 = vsel %vm1989_vm4, 1, %v10778_v23  ;;  %v421_v56 = vmul.u32 %v10804_v29, %v10802_v57  ;;  %v428_v32 = vsel %vm8167_vm1, 1, %v10778_v23 }
 0x163   : > { %v1992_v6 = vadd.s32 %v1990_v36, %v10806_v9  ;;  %vm1993_vm6 = vc.u32 %v1991_v40, %v1987_v46  ;;  %v1849_v39 = vsel %vm1847_vm5, %v1848_v35, %v1844_v11  ;;  %v10809_v31 = vmul.u32 %v10807_v49, %v10808_v47  ;;  %v10812_v11 = vld [vmem:[#allocation122_spill] sm:$0xff]  ;;  %v10814_v35 = vld [vmem:[#allocation132_spill] sm:$0xff] }
 0x164   : > { %v8226_v27 = vadd.s32 %v1975_v34, %v1966_v17  ;;  %v1994_v0 = vsel %vm1993_vm6, 1, %v10778_v23  ;;  %v425_v12 = vshll.u32 %v421_v56, 16  ;;  %v1988_v38 = vshrl.u32 %v1983_v53, 16  ;;  %v10810_v17 = vld [vmem:[#allocation131_spill] sm:$0xff] }
 0x165   : > { %v1996_v51 = vadd.s32 %v1994_v0, %v1992_v6  ;;  %v1850_v10 = vadd.s32 %v1849_v39, %v10809_v31  ;;  %v8236_v1 = vadd.s32 %v1991_v40, %v1987_v46  ;;  %v430_v34 = vadd.s32 %v428_v32, %v10810_v17  ;;  %v10815_v39 = vld [vmem:[#allocation125_spill] sm:$0xff] }
 0x166   : > { %vm431_vm7 = vc.u32 %v10811_v41, %v425_v12  ;;  %v10813_v2 = vand.u32 65535, %v10812_v11  ;;  %v445_v9 = vshll.u32 %v10814_v35, 16  ;;  %v1342_v49 = vshrl.u32 %v8221_v20, 16 }
 0x167   : > { %v1997_v36 = vadd.s32 %v1996_v51, %v1986_v7  ;;  %v1851_v6 = vadd.s32 536870912, %v1850_v10  ;;  %v432_v0 = vsel %vm431_vm7, 1, %v10778_v23  ;;  %vm2001_vm8 = vc.u32 %v8226_v27, %v8236_v1 }
 0x168   : > { %v443_v29 = vmul.u32 %v10813_v2, %v10802_v57  ;;  %v10816_v53 = vmov %v10813_v2  ;;  %v424_v7 = vshrl.u32 %v7748_v25, 16  ;;  %v434_v51 = vadd.s32 %v432_v0, %v430_v34  ;;  %v10818_v2 = vld [vmem:[#allocation20_spill] sm:$0xff]  ;;  %v10819_v0 = vld [vmem:[#allocation54_spill] sm:$0xff] }
 0x169   : > { %v441_v46 = vmul.u32 %v10816_v53, %v10815_v39  ;;  %v1998_v40 = vadd.s32 %v1997_v36, %v1988_v38  ;;  %v1852_v12 = vshrl.u32 %v1851_v6, 30  ;;  %v10817_v38 = vld [vmem:[#allocation133_spill] sm:$0xff]  ;;  %vm1754_vm11 = vcmp.lt.s32.totalorder %v10818_v2, 0  ;;  %v10821_v53 = vld [vmem:[#allocation56_spill] sm:$0xff] }
 0x16a   : > { %v447_v57 = vshll.u32 %v443_v29, 16  ;;  %v435_v11 = vadd.s32 %v434_v51, %v424_v7  ;;  %v1364_v25 = vshrl.u32 %v8187_v63, 16  ;;  %v8259_v34 = vsub.s32 32, %v8189_v8  ;;  %v10824_v51 = vld [vmem:[#allocation86_spill] sm:$0xff] }
 0x16b   : > { %vm449_vm9 = vc.u32 %v441_v46, %v445_v9  ;;  %v451_v32 = vadd.s32 %v445_v9, %v441_v46  ;;  %v2002_v31 = vadd.s32 1, %v1998_v40  ;;  %v1853_v41 = vshll.u32 %v1852_v12, 30 }
 0x16c   : > { %v450_v17 = vsel %vm449_vm9, 1, %v10778_v23  ;;  %v10820_v39 = vshll.u32 %v10819_v0, 16  ;;  %v426_v47 = vshrl.u32 %v421_v56, 16  ;;  %v1876_v63 = vsub.s32 4, %v1852_v12 }
 0x16d   : > { %v452_v36 = vadd.s32 %v450_v17, %v10817_v38  ;;  %vm453_vm10 = vc.u32 %v451_v32, %v447_v57  ;;  %v2003_v9 = vsel %vm2001_vm8, %v2002_v31, %v1998_v40  ;;  %v8272_v7 = vsub.s32 %v1850_v10, %v1853_v41  ;;  %v10825_v17 = vld [vmem:[#allocation92_spill] sm:$0xff] }
 0x16e   : > { %v454_v6 = vsel %vm453_vm10, 1, %v10778_v23  ;;  %vm8268_vm12 = vc.u32 %v10821_v53, %v10820_v39  ;;  %v10826_v38 = vmul.u32 %v10824_v51, %v10825_v17  ;;  %v8279_v40 = vshll.u32 %v10623_v62, %v8189_v8  ;;  %v10833_v62 = vld [vmem:[#allocation52_spill] sm:$0xff] }
 0x16f   : > { %v456_v16 = vadd.s32 %v454_v6, %v452_v36  ;;  %v8283_v31 = vshll.u32 %v10643_v4, %v8189_v8  ;;  %v8287_v39 = vshll.u32 %v10642_v5, %v8189_v8  ;;  %v446_v10 = vshrl.u32 %v10814_v35, 16  ;;  %v10832_v35 = vld [vmem:[#allocation50_spill] sm:$0xff] }
 0x170   : > { %v2004_v14 = vadd.s32 %v2003_v9, %v10826_v38  ;;  %v10827_v41 = vand.u32 2147483647, %v10818_v2  ;;  %vm1855_vm14 = vcmp.lt.s32.totalorder %v8272_v7, 0  ;;  %v1856_v56 = vsub.s32 0, %v8272_v7  ;;  %v10862_v9 = vld [vmem:[#allocation38_spill] sm:$0xff] }
 0x171   : > { %v436_v6 = vadd.s32 %v435_v11, %v426_v47  ;;  %v10830_v53 = vand.u32 65535, %v8221_v20  ;;  %v448_v17 = vshrl.u32 %v443_v29, 16  ;;  %v457_v38 = vadd.s32 %v456_v16, %v446_v10 }
 0x172   : > { %vm8292_vm13 = vcmp.le.f32.partialorder %v10827_v41, 0.7853982  ;;  %v2005_v36 = vadd.s32 536870912, %v2004_v14  ;;  %v10834_v28 = vand.u32 65535, %v10833_v62  ;;  %v1857_v44 = vsel %vm1855_vm14, %v1856_v56, %v8272_v7 }
 0x173   : > { %v8301_v51 = vmul.u32 %v10830_v53, %v8114_v13  ;;  %v455_v21 = vadd.s32 %v451_v32, %v447_v57  ;;  %v8312_v47 = vmul.u32 %v1342_v49, %v8114_v13  ;;  %v8315_v11 = vmul.u32 %v1342_v49, %v8121_v60 }
 0x174   : > { %v8306_v41 = vmul.u32 %v10834_v28, %v10832_v35  ;;  %v8309_v19 = vshrl.u32 %v2005_v36, 30  ;;  %v1858_v53 = vclz %v1857_v44  ;;  %v458_v29 = vadd.s32 %v457_v38, %v448_v17  ;;  %v10839_v38 = vld [vmem:[#allocation49_spill] sm:$0xff] }
 0x175   : > { %10831 = vst [vmem:[#allocation102_spill] sm:$0xff] %v8301_v51  ;;  %v8318_v16 = vmul.u32 %v1364_v25, %v8114_v13  ;;  %v8321_v62 = vmul.u32 %v1364_v25, %v8121_v60  ;;  %vm461_vm15 = vc.u32 %v436_v6, %v455_v21  ;;  %v8326_v57 = vshrl.u32 %v10643_v4, %v8259_v34 }
 0x176   : > { %10835 = vst [vmem:[#allocation93_spill] sm:$0xff] %v8312_v47  ;;  %v2007_v28 = vshll.u32 %v8309_v19, 30  ;;  %v8330_v32 = vshrl.u32 %v10642_v5, %v8259_v34  ;;  %v6463_v49 = vadd.s32 4294967294, %v1858_v53  ;;  %v462_v44 = vadd.s32 1, %v458_v29  ;;  %v10840_v5 = vld [vmem:[#allocation53_spill] sm:$0xff] }
 0x177   : > { %10836 = vst [vmem:[#allocation90_spill] sm:$0xff] %v8315_v11  ;;  %v1846_v10 = vadd.s32 %v8210_v58, %v8198_v54  ;;  %v1877_v25 = vsel %vm1754_vm11, %v1876_v63, %v1852_v12  ;;  %v2119_v36 = vshll.u32 %v8306_v41, 16  ;;  %v2000_v4 = vadd.s32 %v8236_v1, %v8226_v27  ;;  %v10842_v58 = vld [vmem:[#allocation59_spill] sm:$0xff] }
 0x178   : > { %10837 = vst [vmem:[#allocation103_spill] sm:$0xff] %v8318_v16  ;;  %v8336_v56 = vsub.s32 %v2004_v14, %v2007_v28  ;;  %vm6464_vm0 = vcmp.lt.s32.totalorder %v6463_v49, 0  ;;  %v463_v17 = vsel %vm461_vm15, %v462_v44, %v458_v29  ;;  %v2139_v63 = vshll.u32 %v10842_v58, 16  ;;  %v10843_v14 = vld [vmem:[#allocation57_spill] sm:$0xff]  ;;  %v10845_v29 = vld [vmem:[#allocation120_spill] sm:$0xff] }
 0x179   : > { %10838 = vst [vmem:[#allocation130_spill] sm:$0xff] %v8321_v62  ;;  %v10841_v62 = vand.u32 65535, %v10840_v5  ;;  %v1861_v13 = vsel %vm6464_vm0, 0, %v6463_v49  ;;  %vm1908_vm2 = vcmp.lt.s32.totalorder %v10843_v14, 0  ;;  %v8350_v16 = vsel %vm8292_vm13, 0, %v1877_v25 }
 0x17a   : > { %vm2009_vm1 = vcmp.lt.s32.totalorder %v8336_v56, 0  ;;  %v2010_v54 = vsub.s32 0, %v8336_v56  ;;  %v1862_v12 = vsub.s32 32, %v1861_v13  ;;  %v1866_v28 = vsub.s32 4294967266, %v1861_v13  ;;  %10844 = vst [vmem:[#allocation119_spill] sm:$0xff] %v8350_v16 }
 0x17b   : > { %v2135_v53 = vmul.u32 %v10841_v62, %v10839_v38  ;;  %v2122_v27 = vsel %vm8268_vm12, 1, %v10778_v23  ;;  %v10846_v62 = vld [vmem:[#allocation124_spill] sm:$0xff]  ;;  %v10848_v38 = vld [vmem:[#allocation62_spill] sm:$0xff]  ;;  %v10849_v11 = vand.u32 65535, %v10840_v5  ;;  %v1863_v25 = vshll.u32 %v8272_v7, %v1861_v13 }
 0x17c   : > { %v2011_v1 = vsel %vm2009_vm1, %v2010_v54, %v8336_v56  ;;  %v10847_v49 = vmul.u32 %v10845_v29, %v10846_v62  ;;  %vm2125_vm3 = vc.u32 %v10848_v38, %v2119_v36  ;;  %v1864_v60 = vshrl.u32 %v1846_v10, %v1862_v12  ;;  %v10853_v36 = vld [vmem:[#allocation58_spill] sm:$0xff]  ;;  %v5317_v7 = vld [vmem:[#allocation2 + $0x38] sm:$0xff]  ;;  %v5316_v10 = vld [vmem:[#allocation2 + $0x30] sm:$0xff] }
 0x17d   : > { %v8363_v20 = vmul.u32 %v10849_v11, %v10832_v35  ;;  %v1867_v51 = vadd.s32 127, %v1866_v28  ;;  %v2012_v47 = vclz %v2011_v1  ;;  %v10850_v46 = vand.u32 2147483647, %v10843_v14  ;;  %5496 = vmatpush.msrb.mxu1 %v5317_v7  ;;  %v10854_v7 = vld [vmem:[#allocation60_spill] sm:$0xff] }
 0x17e   : > { %v464_v44 = vadd.s32 %v463_v17, %v10847_v49  ;;  %v8372_v29 = vadd.s32 %v455_v21, %v436_v6  ;;  %v2124_v62 = vadd.s32 %v2122_v27, %v10853_v36  ;;  %vm2143_vm5 = vc.u32 %v2135_v53, %v2139_v63 }
 0x17f   : > { %vm8368_vm4 = vcmp.le.f32.partialorder %v10850_v46, 0.7853982  ;;  %v1865_v5 = vor.u32 %v1864_v60, %v1863_v25  ;;  %v1868_v35 = vshll.u32 %v1867_v51, 23  ;;  %v6466_v11 = vadd.s32 4294967294, %v2012_v47  ;;  %5497 = vmatpush.msrb.mxu1 %v5316_v10 }
 0x180   : > { %v465_v17 = vadd.s32 536870912, %v464_v44  ;;  %v2126_v13 = vsel %vm2125_vm3, 1, %v10778_v23  ;;  %v2030_v12 = vsub.s32 4, %v8309_v19  ;;  %v2118_v1 = vshrl.u32 %v10819_v0, 16 }
 0x181   : > { %v2141_v21 = vshll.u32 %v8363_v20, 16  ;;  %v1869_v6 = vor.u32 4788187, %v1868_v35  ;;  %v4369_v49 = vadd.s32 3, %v8350_v16  ;;  %vm6467_vm6 = vcmp.lt.s32.totalorder %v6466_v11, 0 }
 0x182   : > { %v8377_v28 = vshrl.u32 %v465_v17, 30  ;;  %v2144_v60 = vsel %vm2143_vm5, 1, %v10778_v23  ;;  %v2015_v51 = vsel %vm6467_vm6, 0, %v6466_v11  ;;  %v2128_v27 = vadd.s32 %v2126_v13, %v2124_v62  ;;  %v10855_v13 = vld [vmem:[#allocation83_spill] sm:$0xff] }
 0x183   : > { %v2145_v38 = vadd.s32 %v2139_v63, %v2135_v53  ;;  %v1870_v25 = vand.u32 2147483647, %v1869_v6  ;;  %v1872_v46 = vcvt.s32.f32 %v1865_v5  ;;  %v2016_v17 = vsub.s32 32, %v2015_v51  ;;  %v10857_v6 = vld [vmem:[#allocation41_spill] sm:$0xff] }
 0x184   : > { %v467_v47 = vshll.u32 %v8377_v28, 30  ;;  %v2020_v36 = vsub.s32 4294967266, %v2015_v51  ;;  %v2031_v0 = vsel %vm1908_vm2, %v2030_v12, %v8309_v19  ;;  %v2146_v16 = vadd.s32 %v2144_v60, %v10854_v7 }
 0x185   : > { %vm2147_vm7 = vc.u32 %v2145_v38, %v2141_v21  ;;  %v1873_v37 = vmul.f32 %v1872_v46, %v1870_v25  ;;  %v2017_v11 = vshll.u32 %v8336_v56, %v2015_v51  ;;  %v2018_v52 = vshrl.u32 %v2000_v4, %v2016_v17  ;;  %v10859_v4 = vld [vmem:[#allocation43_spill] sm:$0xff] }
 0x186   : > { %v8387_v35 = vsub.s32 %v464_v44, %v467_v47  ;;  %v2021_v62 = vadd.s32 127, %v2020_v36  ;;  %v2129_v63 = vadd.s32 %v2128_v27, %v2118_v1  ;;  %v2148_v5 = vsel %vm2147_vm7, 1, %v10778_v23  ;;  %v5315_v1 = vld [vmem:[#allocation2 + $0x28] sm:$0xff] }
 0x187   : > { %vm368_vm9 = vcmp.lt.s32.totalorder %v10855_v13, 0  ;;  %v1874_v19 = vxor.u32 2147483648, %v1873_v37  ;;  %v2019_v44 = vor.u32 %v2018_v52, %v2017_v11  ;;  %v8397_v12 = vsel %vm8368_vm4, 0, %v2031_v0  ;;  %5498 = vmatpush.msrb.mxu1 %v5315_v1 }
 0x188   : > { %vm469_vm8 = vcmp.lt.s32.totalorder %v8387_v35, 0  ;;  %v470_v53 = vsub.s32 0, %v8387_v35  ;;  %v2022_v10 = vshll.u32 %v2021_v62, 23  ;;  %10856 = vst [vmem:[#allocation104_spill] sm:$0xff] %v8397_v12  ;;  %v10858_v56 = vshll.u32 %v10857_v6, 16 }
 0x189   : > { %v8406_v51 = vand.u32 3, %v4369_v49  ;;  %v2120_v27 = vshrl.u32 %v8306_v41, 16  ;;  %v2150_v52 = vadd.s32 %v2148_v5, %v2146_v16  ;;  %v1875_v25 = vsel %vm1754_vm11, %v1874_v19, %v1873_v37  ;;  %v10863_v19 = vld [vmem:[#allocation32_spill] sm:$0xff] }
 0x18a   : > { %vm8402_vm10 = vc.u32 %v10859_v4, %v10858_v56  ;;  %v471_v47 = vsel %vm469_vm8, %v470_v53, %v8387_v35  ;;  %v2023_v46 = vor.u32 4788187, %v2022_v10  ;;  %v2140_v36 = vshrl.u32 %v10842_v58, 16 }
 0x18b   : > { %v472_v17 = vclz %v471_v47  ;;  %v8416_v0 = vsel %vm8292_vm13, %v10818_v2, %v1875_v25  ;;  %v2026_v49 = vcvt.s32.f32 %v2019_v44  ;;  %v4524_v7 = vadd.s32 3, %v8397_v12  ;;  %v10880_v47 = vld [vmem:[#allocation40_spill] sm:$0xff]  ;;  %v11045_v12 = vld [vmem:[#allocation105_spill] sm:$0xff] }
 0x18c   : > { %v8419_v11 = vadd.s32 %v2129_v63, %v2120_v27  ;;  %v1880_v41 = vmul.f32 %v8416_v0, %v8416_v0  ;;  %v2024_v16 = vand.u32 2147483647, %v2023_v46  ;;  %v2151_v62 = vadd.s32 %v2150_v52, %v2140_v36 }
 0x18d   : > { %v6436_v37 = vadd.s32 4294967294, %v472_v17  ;;  %v490_v53 = vsub.s32 4, %v8377_v28  ;;  %v2142_v58 = vshrl.u32 %v8363_v20, 16  ;;  %v8425_v5 = vadd.s32 %v2145_v38, %v2141_v21 }
 0x18e   : > { %v10864_v10 = vand.u32 65535, %v10863_v19  ;;  %v1881_v56 = vmul.f32 -0.001358992, %v1880_v41  ;;  %v1888_v63 = vmul.f32 -0.00019511016, %v1880_v41  ;;  %v2027_v4 = vmul.f32 %v2026_v49, %v2024_v16 }
 0x18f   : > { %v10865_v1 = vand.u32 2147483647, %v10855_v13  ;;  %vm6437_vm12 = vcmp.lt.s32.totalorder %v6436_v37, 0  ;;  %v8438_v27 = vand.u32 3, %v4524_v7  ;;  %v2152_v21 = vadd.s32 %v2151_v62, %v2142_v58 }
 0x190   : > { %v8430_v44 = vmul.u32 %v10864_v10, %v10862_v9  ;;  %v475_v20 = vsel %vm6437_vm12, 0, %v6436_v37  ;;  %vm2155_vm13 = vc.u32 %v8419_v11, %v8425_v5  ;;  %v1882_v38 = vadd.f32 0.041655596, %v1881_v56 }
 0x191   : > { %vm8434_vm11 = vcmp.le.f32.partialorder %v10865_v1, 0.7853982  ;;  %v1889_v52 = vadd.f32 0.008332121, %v1888_v63  ;;  %v2028_v25 = vxor.u32 2147483648, %v2027_v4  ;;  %v476_v46 = vsub.s32 32, %v475_v20 }
 0x192   : > { %v480_v17 = vsub.s32 4294967266, %v475_v20  ;;  %v491_v36 = vsel %vm368_vm9, %v490_v53, %v8377_v28  ;;  %v2156_v49 = vadd.s32 1, %v2152_v21  ;;  %v579_v16 = vshll.u32 %v8430_v44, 16 }
 0x193   : > { %v1883_v19 = vmul.f32 %v1882_v38, %v1880_v41  ;;  %v1890_v7 = vmul.f32 %v1889_v52, %v1880_v41  ;;  %v2029_v37 = vsel %vm1908_vm2, %v2028_v25, %v2027_v4  ;;  %v478_v62 = vshrl.u32 %v8372_v29, %v476_v46  ;;  %v10868_v4 = vld [vmem:[#allocation42_spill] sm:$0xff] }
 0x194   : > { %v8452_v58 = vsel %vm8368_vm4, %v10843_v14, %v2029_v37  ;;  %v477_v10 = vshll.u32 %v8387_v35, %v475_v20  ;;  %v481_v56 = vadd.s32 127, %v480_v17  ;;  %v2157_v28 = vsel %vm2155_vm13, %v2156_v49, %v2152_v21  ;;  %v10869_v20 = vld [vmem:[#allocation48_spill] sm:$0xff]  ;;  %v10871_v21 = vld [vmem:[#allocation51_spill] sm:$0xff] }
 0x195   : > { %v1884_v53 = vadd.f32 -0.4999988, %v1883_v19  ;;  %v1891_v63 = vadd.f32 -0.16666654, %v1890_v7  ;;  %v2034_v1 = vmul.f32 %v8452_v58, %v8452_v58  ;;  %v582_v29 = vsel %vm8402_vm10, 1, %v10778_v23 }
 0x196   : > { %vm4372_vm14 = vcmp.eq.s32.totalorder %v8406_v51, 0  ;;  %vm4375_vm15 = vcmp.eq.s32.totalorder %v8406_v51, 2  ;;  %v479_v54 = vor.u32 %v478_v62, %v477_v10  ;;  %v482_v35 = vshll.u32 %v481_v56, 23  ;;  %v10874_v62 = vld [vmem:[#allocation44_spill] sm:$0xff] }
 0x197   : > { %v10870_v38 = vmul.u32 %v10868_v4, %v10869_v20  ;;  %vm8469_vm0 = vc.u32 %v10871_v21, %v579_v16  ;;  %v1885_v46 = vmul.f32 %v1884_v53, %v1880_v41  ;;  %v1892_v17 = vmul.f32 %v1891_v63, %v1880_v41 }
 0x198   : > { %vm4371_vm1 = vcmp.lt.s32.totalorder %v8406_v51, 2  ;;  %v2035_v60 = vmul.f32 -0.001358992, %v2034_v1  ;;  %v2042_v49 = vmul.f32 -0.00019511016, %v2034_v1  ;;  %vm10533_vm2 = vweird.f32 %v10818_v2 }
 0x199   : > { %v2158_v52 = vadd.s32 %v2157_v28, %v10870_v38  ;;  %v483_v19 = vor.u32 4788187, %v482_v35  ;;  %v8477_v7 = vsel %vm8434_vm11, 0, %v491_v36  ;;  %v584_v10 = vadd.s32 %v582_v29, %v10874_v62  ;;  %v10877_v29 = vld [vmem:[#allocation9_spill] sm:$0xff] }
 0x19a   : > { %v8480_v16 = vadd.f32 1.0, %v1885_v46  ;;  %v1893_v56 = vadd.f32 1.0, %v1892_v17  ;;  %v2036_v28 = vadd.f32 0.041655596, %v2035_v60  ;;  %v2043_v53 = vadd.f32 0.008332121, %v2042_v49 }
 0x19b   : > { %v2159_v37 = vadd.s32 536870912, %v2158_v52  ;;  %v484_v41 = vand.u32 2147483647, %v483_v19  ;;  %v486_v63 = vcvt.s32.f32 %v479_v54  ;;  %v586_v20 = vsel %vm8469_vm0, 1, %v10778_v23 }
 0x19c   : > { %10875 = vst [vmem:[#allocation55_spill] sm:$0xff] %v8480_v16  ;;  %v8486_v35 = vmul.f32 %v1893_v56, %v8416_v0  ;;  %v10502_v36 = vxor.u32 2147483648, %v8480_v16  ;;  %v2037_v38 = vmul.f32 %v2036_v28, %v2034_v1  ;;  %v2044_v21 = vmul.f32 %v2043_v53, %v2034_v1 }
 0x19d   : > { %v2160_v4 = vshrl.u32 %v2159_v37, 30  ;;  %vm2062_vm3 = vcmp.lt.s32.totalorder %v10877_v29, 0  ;;  %vm5326_vm4 = vcmask 523264   ;;  %v487_v46 = vmul.f32 %v486_v63, %v484_v41 }
 0x19e   : > { %10876 = vst [vmem:[#allocation61_spill] sm:$0xff] %v8486_v35  ;;  %v2974_v17 = vadd.s32 3, %v8477_v7  ;;  %v10503_v54 = vxor.u32 2147483648, %v8486_v35  ;;  %v2038_v49 = vadd.f32 -0.4999988, %v2037_v38  ;;  %v578_v25 = vshrl.u32 %v10857_v6, 16 }
 0x19f   : > { %v2161_v60 = vshll.u32 %v2160_v4, 30  ;;  %v2045_v19 = vadd.f32 -0.16666654, %v2044_v21  ;;  %vm4527_vm5 = vcmp.eq.s32.totalorder %v8438_v27, 0  ;;  %vm4530_vm6 = vcmp.eq.s32.totalorder %v8438_v27, 2 }
 0x1a0   : > { %v488_v0 = vxor.u32 2147483648, %v487_v46  ;;  %v2184_v62 = vsub.s32 4, %v2160_v4  ;;  %v588_v56 = vadd.s32 %v586_v20, %v584_v10  ;;  %v4374_v28 = vsel %vm4372_vm14, %v8480_v16, %v10503_v54  ;;  %v11046_v16 = vld [vmem:[#allocation117_spill] sm:$0xff] }
 0x1a1   : > { %v8495_v37 = vsub.s32 %v2158_v52, %v2161_v60  ;;  %v4377_v6 = vsel %vm4375_vm15, %v10502_v36, %v8486_v35  ;;  %v2039_v53 = vmul.f32 %v2038_v49, %v2034_v1  ;;  %v2046_v41 = vmul.f32 %v2045_v19, %v2034_v1 }
 0x1a2   : > { %vm4526_vm7 = vcmp.lt.s32.totalorder %v8438_v27, 2  ;;  %v4378_v52 = vsel %vm4371_vm1, %v4374_v28, %v4377_v6  ;;  %vm10527_vm8 = vweird.f32 %v10843_v14  ;;  %v489_v10 = vsel %vm368_vm9, %v488_v0, %v487_v46  ;;  %v10893_v14 = vld [vmem:[#allocation47_spill] sm:$0xff] }
 0x1a3   : > { %vm2163_vm10 = vcmp.lt.s32.totalorder %v8495_v37, 0  ;;  %v2164_v63 = vsub.s32 0, %v8495_v37  ;;  %v4379_v20 = vsel %vm10533_vm2, nan, %v4378_v52  ;;  %v8517_v38 = vadd.f32 1.0, %v2039_v53 }
 0x1a4   : > { %v2047_v1 = vadd.f32 1.0, %v2046_v41  ;;  %v8522_v51 = vsel %vm8434_vm11, %v10855_v13, %v489_v10  ;;  %6540 = vmatmul.msk.f32.vlgmr.msra.gmra.mxu1 %vm5326_vm4, %v4379_v20  ;;  %v580_v60 = vshrl.u32 %v8430_v44, 16  ;;  %v589_v49 = vadd.s32 %v588_v56, %v578_v25  ;;  %v10882_v56 = vld [vmem:[#allocation36_spill] sm:$0xff] }
 0x1a5   : > { %10878 = vst [vmem:[#allocation131_spill] sm:$0xff] %v8517_v38  ;;  %v494_v21 = vmul.f32 %v8522_v51, %v8522_v51  ;;  %v2165_v46 = vsel %vm2163_vm10, %v2164_v63, %v8495_v37  ;;  %v10504_v0 = vxor.u32 2147483648, %v8517_v38  ;;  %v10881_v6 = vand.u32 65535, %v10880_v47 }
 0x1a6   : > { %v8530_v19 = vmul.f32 %v2047_v1, %v8452_v58  ;;  %v2166_v28 = vclz %v2165_v46  ;;  %v8538_v10 = vand.u32 3, %v2974_v17  ;;  %v2154_v63 = vadd.s32 %v8425_v5, %v8419_v11  ;;  %v10884_v46 = vld [vmem:[#allocation85_spill] sm:$0xff]  ;;  %v10889_v5 = vld [vmem:[#allocation46_spill] sm:$0xff] }
 0x1a7   : > { %v8536_v53 = vmul.u32 %v10881_v6, %v10862_v9  ;;  %v495_v41 = vmul.f32 -0.001358992, %v494_v21  ;;  %v502_v52 = vmul.f32 -0.00019511016, %v494_v21  ;;  %v2185_v58 = vsel %vm2062_vm3, %v2184_v62, %v2160_v4 }
 0x1a8   : > { %10879 = vst [vmem:[#allocation136_spill] sm:$0xff] %v8530_v19  ;;  %v10505_v44 = vxor.u32 2147483648, %v8530_v19  ;;  %v6469_v25 = vadd.s32 4294967294, %v2166_v28  ;;  %v10883_v20 = vmov %v10881_v6  ;;  %v10885_v9 = vshll.u32 %v10884_v46, 16  ;;  %v10886_v6 = vld [vmem:[#allocation84_spill] sm:$0xff] }
 0x1a9   : > { %v595_v1 = vmul.u32 %v10883_v20, %v10882_v56  ;;  %v496_v17 = vadd.f32 0.041655596, %v495_v41  ;;  %v503_v54 = vadd.f32 0.008332121, %v502_v52  ;;  %v8555_v11 = vadd.s32 %v589_v49, %v580_v60 }
 0x1aa   : > { %vm8551_vm9 = vc.u32 %v10886_v6, %v10885_v9  ;;  %v599_v28 = vshll.u32 %v10889_v5, 16  ;;  %v4529_v4 = vsel %vm4527_vm5, %v8517_v38, %v10505_v44  ;;  %v4532_v62 = vsel %vm4530_vm6, %v10504_v0, %v8530_v19 }
 0x1ab   : > { %vm6470_vm11 = vcmp.lt.s32.totalorder %v6469_v25, 0  ;;  %v601_v47 = vshll.u32 %v8536_v53, 16  ;;  %v4533_v60 = vsel %vm4526_vm7, %v4529_v4, %v4532_v62  ;;  %v497_v49 = vmul.f32 %v496_v17, %v494_v21 }
 0x1ac   : > { %v504_v41 = vmul.f32 %v503_v54, %v494_v21  ;;  %v10890_v52 = vand.u32 2147483647, %v10877_v29  ;;  %v2169_v20 = vsel %vm6470_vm11, 0, %v6469_v25  ;;  %v4534_v9 = vsel %vm10527_vm8, nan, %v4533_v60 }
 0x1ad   : > { %v2170_v6 = vsub.s32 32, %v2169_v20  ;;  %v2174_v0 = vsub.s32 4294967266, %v2169_v20  ;;  %v600_v44 = vshrl.u32 %v10889_v5, 16  ;;  %6541 = vmatmul.msk.f32.gmra.mxu1 %vm5326_vm4, %v4534_v9  ;;  %v498_v27 = vadd.f32 -0.4999988, %v497_v49 }
 0x1ae   : > { %vm8573_vm12 = vcmp.le.f32.partialorder %v10890_v52, 0.7853982  ;;  %v505_v4 = vadd.f32 -0.16666654, %v504_v41  ;;  %vm603_vm13 = vc.u32 %v595_v1, %v599_v28  ;;  %v605_v54 = vadd.s32 %v599_v28, %v595_v1 }
 0x1af   : > { %v2171_v17 = vshll.u32 %v8495_v37, %v2169_v20  ;;  %v2172_v62 = vshrl.u32 %v2154_v63, %v2170_v6  ;;  %v2175_v52 = vadd.s32 127, %v2174_v0  ;;  %v604_v38 = vsel %vm603_vm13, 1, %v10778_v23  ;;  %v5314_v63 = vld [vmem:[#allocation2 + $0x20] sm:$0xff] }
 0x1b0   : > { %v499_v25 = vmul.f32 %v498_v27, %v494_v21  ;;  %v506_v19 = vmul.f32 %v505_v4, %v494_v21  ;;  %v606_v60 = vadd.s32 %v604_v38, %v10893_v14  ;;  %vm607_vm14 = vc.u32 %v605_v54, %v601_v47  ;;  %5499 = vmatpush.msrb.mxu1 %v5314_v63  ;;  %v10894_v20 = vld [vmem:[#allocation73_spill] sm:$0xff] }
 0x1b1   : > { %vm509_vm15 = vweird.f32 %v10855_v13  ;;  %v2173_v5 = vor.u32 %v2172_v62, %v2171_v17  ;;  %v2176_v2 = vshll.u32 %v2175_v52, 23  ;;  %v602_v49 = vshrl.u32 %v8536_v53, 16  ;;  %v10898_v52 = vld [vmem:[#allocation87_spill] sm:$0xff] }
 0x1b2   : > { %v608_v41 = vsel %vm607_vm14, 1, %v10778_v23  ;;  %v8587_v1 = vadd.f32 1.0, %v499_v25  ;;  %v507_v37 = vadd.f32 1.0, %v506_v19  ;;  %v8589_v0 = vadd.s32 %v605_v54, %v601_v47  ;;  %v10895_v19 = vld [vmem:[#allocation81_spill] sm:$0xff] }
 0x1b3   : > { %v610_v28 = vadd.s32 %v608_v41, %v606_v60  ;;  %vm2976_vm0 = vcmp.lt.s32.totalorder %v8538_v10, 2  ;;  %vm2977_vm1 = vcmp.eq.s32.totalorder %v8538_v10, 0  ;;  %vm2980_vm5 = vcmp.eq.s32.totalorder %v8538_v10, 2  ;;  %v10901_v41 = vld [vmem:[#allocation91_spill] sm:$0xff] }
 0x1b4   : > { %v2177_v14 = vor.u32 4788187, %v2176_v2  ;;  %v8595_v38 = vmul.f32 %v507_v37, %v8522_v51  ;;  %v10517_v21 = vxor.u32 2147483648, %v8587_v1  ;;  %v10896_v9 = vand.u32 65535, %v10895_v19  ;;  %v10902_v37 = vld [vmem:[#allocation88_spill] sm:$0xff] }
 0x1b5   : > { %v611_v53 = vadd.s32 %v610_v28, %v600_v44  ;;  %v2180_v27 = vcvt.s32.f32 %v2173_v5  ;;  %v8603_v4 = vsel %vm8573_vm12, 0, %v2185_v58  ;;  %v2276_v2 = vsel %vm8551_vm9, 1, %v10778_v23  ;;  %v10899_v58 = vld [vmem:[#allocation82_spill] sm:$0xff]  ;;  %v10903_v19 = vld [vmem:[#allocation72_spill] sm:$0xff] }
 0x1b6   : > { %v2269_v47 = vmul.u32 %v10896_v9, %v10894_v20  ;;  %v2178_v6 = vand.u32 2147483647, %v2177_v14  ;;  %10897 = vst [vmem:[#allocation122_spill] sm:$0xff] %v8603_v4  ;;  %v10518_v51 = vxor.u32 2147483648, %v8595_v38  ;;  %vm615_vm6 = vc.u32 %v8555_v11, %v8589_v0 }
 0x1b7   : > { %v612_v54 = vadd.s32 %v611_v53, %v602_v49  ;;  %v2982_v17 = vsel %vm2980_vm5, %v10517_v21, %v8595_v38  ;;  %v2278_v25 = vadd.s32 %v2276_v2, %v10898_v52  ;;  %v10900_v60 = vand.u32 65535, %v10899_v58  ;;  %v10908_v58 = vld [vmem:[#allocation29_spill] sm:$0xff]  ;;  %v10976_v21 = vld [vmem:[#allocation138_spill] sm:$0xff] }
 0x1b8   : > { %v2273_v44 = vshll.u32 %v2269_v47, 16  ;;  %v2181_v62 = vmul.f32 %v2180_v27, %v2178_v6  ;;  %v2979_v36 = vsel %vm2977_vm1, %v8587_v1, %v10518_v51  ;;  %v2293_v63 = vshll.u32 %v10902_v37, 16 }
 0x1b9   : > { %v2291_v5 = vmul.u32 %v10900_v60, %v10894_v20  ;;  %v616_v49 = vadd.s32 1, %v612_v54  ;;  %v2983_v28 = vsel %vm2976_vm0, %v2979_v36, %v2982_v17  ;;  %v10904_v20 = vmov %v10900_v60  ;;  %v10909_v60 = vld [vmem:[#allocation39_spill] sm:$0xff] }
 0x1ba   : > { %vm2279_vm7 = vc.u32 %v10901_v41, %v2273_v44  ;;  %v2182_v14 = vxor.u32 2147483648, %v2181_v62  ;;  %v2289_v9 = vmul.u32 %v10904_v20, %v10903_v19  ;;  %v2984_v6 = vsel %vm509_vm15, nan, %v2983_v28 }
 0x1bb   : > { %v2280_v53 = vsel %vm2279_vm7, 1, %v10778_v23  ;;  %v617_v27 = vsel %vm615_vm6, %v616_v49, %v612_v54  ;;  %v2272_v2 = vshrl.u32 %v10884_v46, 16  ;;  %v10905_v44 = vshll.u32 %v7927_v59, 16  ;;  %6531 = vmatmul.msk.f32.vlgmr.msra.gmra.mxu0 %vm5326_vm4, %v2984_v6 }
 0x1bc   : > { %v2282_v52 = vadd.s32 %v2280_v53, %v2278_v25  ;;  %v2183_v17 = vsel %vm2062_vm3, %v2182_v14, %v2181_v62  ;;  %v10910_v36 = vmul.u32 %v10908_v58, %v10909_v60  ;;  %v2295_v54 = vshll.u32 %v2291_v5, 16  ;;  %v10911_v14 = vld [vmem:[#allocation89_spill] sm:$0xff] }
 0x1bd   : > { %vm8637_vm10 = vc.u32 %v7945_v48, %v10905_v44  ;;  %vm2297_vm9 = vc.u32 %v2289_v9, %v2293_v63  ;;  %v2186_v46 = vsel %vm8573_vm12, %v10877_v29, %v2183_v17  ;;  %v2299_v49 = vadd.s32 %v2293_v63, %v2289_v9 }
 0x1be   : > { %v618_v41 = vadd.s32 %v617_v27, %v10910_v36  ;;  %v2283_v25 = vadd.s32 %v2282_v52, %v2272_v2  ;;  %v2298_v48 = vsel %vm2297_vm9, 1, %v10778_v23  ;;  %v8653_v28 = vshrl.u32 %v10640_v22, %v8259_v34 }
 0x1bf   : > { %v2188_v53 = vmul.f32 %v2186_v46, %v2186_v46  ;;  %v2300_v19 = vadd.s32 %v2298_v48, %v10911_v14  ;;  %v8658_v20 = vshll.u32 %v10640_v22, %v8189_v8  ;;  %v4679_v6 = vadd.s32 3, %v8603_v4 }
 0x1c0   : > { %v619_v62 = vadd.s32 536870912, %v618_v41  ;;  %v2274_v56 = vshrl.u32 %v2269_v47, 16  ;;  %vm2301_vm3 = vc.u32 %v2299_v49, %v2295_v54  ;;  %v2294_v44 = vshrl.u32 %v10902_v37, 16 }
 0x1c1   : > { %v2189_v27 = vmul.f32 -0.001358992, %v2188_v53  ;;  %v2196_v2 = vmul.f32 -0.00019511016, %v2188_v53  ;;  %v2302_v63 = vsel %vm2301_vm3, 1, %v10778_v23  ;;  %v10912_v58 = vand.u32 65535, %v7870_v43 }
 0x1c2   : > { %v8661_v52 = vshrl.u32 %v619_v62, 30  ;;  %v8664_v9 = vadd.s32 %v2283_v25, %v2274_v56  ;;  %v2304_v17 = vadd.s32 %v2302_v63, %v2300_v19  ;;  %v8674_v47 = vshrl.u32 %v10641_v24, %v8259_v34 }
 0x1c3   : > { %v8670_v22 = vmul.u32 %v10912_v58, %v7807_v61  ;;  %v2190_v60 = vadd.f32 0.041655596, %v2189_v27  ;;  %v2197_v36 = vadd.f32 0.008332121, %v2196_v2  ;;  %v8679_v25 = vor.u32 %v8326_v57, %v8279_v40 }
 0x1c4   : > { %v621_v48 = vshll.u32 %v8661_v52, 30  ;;  %v2296_v62 = vshrl.u32 %v2291_v5, 16  ;;  %v8681_v37 = vadd.s32 %v2299_v49, %v2295_v54  ;;  %v2305_v14 = vadd.s32 %v2304_v17, %v2294_v44 }
 0x1c5   : > { %v8685_v43 = vor.u32 %v8330_v32, %v8283_v31  ;;  %v2191_v19 = vmul.f32 %v2190_v60, %v2188_v53  ;;  %v2198_v56 = vmul.f32 %v2197_v36, %v2188_v53  ;;  %v4680_v58 = vand.u32 3, %v4679_v6  ;;  %v10914_v60 = vld [vmem:[#allocation69_spill] sm:$0xff]  ;;  %v10915_v36 = vld [vmem:[#allocation80_spill] sm:$0xff] }
 0x1c6   : > { %v622_v63 = vsub.s32 %v618_v41, %v621_v48  ;;  %v2306_v27 = vadd.s32 %v2305_v14, %v2296_v62  ;;  %vm2309_vm11 = vc.u32 %v8664_v9, %v8681_v37  ;;  %v733_v2 = vshll.u32 %v8670_v22, 16  ;;  %v10917_v14 = vld [vmem:[#allocation7_spill] sm:$0xff] }
 0x1c7   : > { %v2192_v40 = vadd.f32 -0.4999988, %v2191_v19  ;;  %v2199_v57 = vadd.f32 -0.16666654, %v2198_v56  ;;  %v8692_v54 = vshll.u32 %v10641_v24, %v8189_v8  ;;  %v8696_v31 = vshrl.u32 %v10638_v42, %v8259_v34 }
 0x1c8   : > { %vm623_vm12 = vcmp.lt.s32.totalorder %v622_v63, 0  ;;  %v624_v5 = vsub.s32 0, %v622_v63  ;;  %v2310_v32 = vadd.s32 1, %v2306_v27  ;;  %v736_v41 = vsel %vm8637_vm10, 1, %v10778_v23 }
 0x1c9   : > { %v2193_v49 = vmul.f32 %v2192_v40, %v2188_v53  ;;  %v2200_v6 = vmul.f32 %v2199_v57, %v2188_v53  ;;  %vm739_vm13 = vc.u32 %v8028_v3, %v733_v2  ;;  %vm10526_vm14 = vweird.f32 %v10877_v29  ;;  %v11015_v29 = vld [vmem:[#allocation64_spill] sm:$0xff] }
 0x1ca   : > { %v625_v44 = vsel %vm623_vm12, %v624_v5, %v622_v63  ;;  %vm4681_vm0 = vcmp.lt.s32.totalorder %v4680_v58, 2  ;;  %v2311_v24 = vsel %vm2309_vm11, %v2310_v32, %v2306_v27  ;;  %v10916_v10 = vmul.u32 %v10914_v60, %v10915_v36 }
 0x1cb   : > { %v626_v17 = vclz %v625_v44  ;;  %v8706_v42 = vadd.f32 1.0, %v2193_v49  ;;  %v2201_v8 = vadd.f32 1.0, %v2200_v6  ;;  %v738_v53 = vadd.s32 %v736_v41, %v7952_v18  ;;  %v10919_v49 = vld [vmem:[#allocation16_spill] sm:$0xff]  ;;  %v10921_v44 = vld [vmem:[#allocation19_spill] sm:$0xff] }
 0x1cc   : > { %v2312_v48 = vadd.s32 %v2311_v24, %v10916_v10  ;;  %vm4682_vm1 = vcmp.eq.s32.totalorder %v4680_v58, 0  ;;  %vm4685_vm5 = vcmp.eq.s32.totalorder %v4680_v58, 2  ;;  %v740_v62 = vsel %vm739_vm13, 1, %v10778_v23 }
 0x1cd   : > { %10913 = vst [vmem:[#allocation132_spill] sm:$0xff] %v8706_v42  ;;  %v6439_v3 = vadd.s32 4294967294, %v626_v17  ;;  %vm522_vm6 = vcmp.lt.s32.totalorder %v10917_v14, 0  ;;  %v8714_v19 = vmul.f32 %v2201_v8, %v2186_v46  ;;  %v10512_v56 = vxor.u32 2147483648, %v8706_v42 }
 0x1ce   : > { %v614_v27 = vadd.s32 %v8589_v0, %v8555_v11  ;;  %v2313_v2 = vadd.s32 536870912, %v2312_v48  ;;  %v644_v40 = vsub.s32 4, %v8661_v52  ;;  %v732_v18 = vshrl.u32 %v7927_v59, 16 }
 0x1cf   : > { %10918 = vst [vmem:[#allocation125_spill] sm:$0xff] %v8714_v19  ;;  %vm6440_vm7 = vcmp.lt.s32.totalorder %v6439_v3, 0  ;;  %v753_v57 = vshll.u32 %v7973_v45, 16  ;;  %v10513_v5 = vxor.u32 2147483648, %v8714_v19  ;;  %v742_v46 = vadd.s32 %v740_v62, %v738_v53 }
 0x1d0   : > { %v629_v32 = vsel %vm6440_vm7, 0, %v6439_v3  ;;  %v8723_v41 = vshrl.u32 %v2313_v2, 30  ;;  %v10920_v6 = vshll.u32 %v10919_v49, 16  ;;  %v10924_v59 = vand.u32 65535, %v7862_v26 }
 0x1d1   : > { %v630_v11 = vsub.s32 32, %v629_v32  ;;  %v634_v0 = vsub.s32 4294967266, %v629_v32  ;;  %v4684_v36 = vsel %vm4682_vm1, %v8706_v42, %v10513_v5  ;;  %v4687_v10 = vsel %vm4685_vm5, %v10512_v56, %v8714_v19  ;;  %v11043_v42 = vld [vmem:[#allocation67_spill] sm:$0xff] }
 0x1d2   : > { %vm8728_vm10 = vc.u32 %v10921_v44, %v10920_v6  ;;  %v749_v24 = vmul.u32 %v10924_v59, %v7804_v33  ;;  %v10925_v8 = vmov %v10924_v59  ;;  %v631_v53 = vshll.u32 %v622_v63, %v629_v32 }
 0x1d3   : > { %v751_v60 = vmul.u32 %v10925_v8, %v7807_v61  ;;  %v2315_v3 = vshll.u32 %v8723_v41, 30  ;;  %v4688_v62 = vsel %vm4681_vm0, %v4684_v36, %v4687_v10  ;;  %v632_v33 = vshrl.u32 %v614_v27, %v630_v11 }
 0x1d4   : > { %v635_v2 = vadd.s32 127, %v634_v0  ;;  %vm757_vm9 = vc.u32 %v749_v24, %v753_v57  ;;  %v4689_v61 = vsel %vm10526_vm14, nan, %v4688_v62  ;;  %v743_v6 = vadd.s32 %v742_v46, %v732_v18 }
 0x1d5   : > { %v8750_v26 = vsub.s32 %v2312_v48, %v2315_v3  ;;  %v758_v44 = vsel %vm757_vm9, 1, %v10778_v23  ;;  %6542 = vmatmul.msk.f32.gmra.mxu1 %vm5326_vm4, %v4689_v61  ;;  %v633_v59 = vor.u32 %v632_v33, %v631_v53  ;;  %v755_v63 = vshll.u32 %v751_v60, 16 }
 0x1d6   : > { %v636_v8 = vshll.u32 %v635_v2, 23  ;;  %v759_v32 = vadd.s32 %v753_v57, %v749_v24  ;;  %v734_v27 = vshrl.u32 %v8670_v22, 16  ;;  %v760_v11 = vadd.s32 %v758_v44, %v8017_v15  ;;  %v10929_v44 = vld [vmem:[#allocation45_spill] sm:$0xff] }
 0x1d7   : > { %vm2317_vm3 = vcmp.lt.s32.totalorder %v8750_v26, 0  ;;  %v2318_v58 = vsub.s32 0, %v8750_v26  ;;  %v10926_v48 = vand.u32 2147483647, %v10917_v14  ;;  %v645_v0 = vsel %vm522_vm6, %v644_v40, %v8661_v52 }
 0x1d8   : > { %v637_v46 = vor.u32 4788187, %v636_v8  ;;  %vm761_vm12 = vc.u32 %v759_v32, %v755_v63  ;;  %v8768_v24 = vadd.s32 %v743_v6, %v734_v27  ;;  %v754_v22 = vshrl.u32 %v7973_v45, 16 }
 0x1d9   : > { %vm8760_vm11 = vcmp.le.f32.partialorder %v10926_v48, 0.7853982  ;;  %v2319_v57 = vsel %vm2317_vm3, %v2318_v58, %v8750_v26  ;;  %v762_v15 = vsel %vm761_vm12, 1, %v10778_v23  ;;  %v640_v10 = vcvt.s32.f32 %v633_v59 }
 0x1da   : > { %v638_v36 = vand.u32 2147483647, %v637_v46  ;;  %v2320_v53 = vclz %v2319_v57  ;;  %v764_v3 = vadd.s32 %v762_v15, %v760_v11  ;;  %v8774_v62 = vor.u32 %v8653_v28, %v8287_v39  ;;  %v10930_v39 = vld [vmem:[#allocation13_spill] sm:$0xff]  ;;  %v10931_v28 = vld [vmem:[#allocation10_spill] sm:$0xff] }
 0x1db   : > { %v8778_v52 = vsel %vm8760_vm11, 0, %v645_v0  ;;  %v2308_v40 = vadd.s32 %v8681_v37, %v8664_v9  ;;  %v8782_v33 = vadd.s32 %v759_v32, %v755_v63  ;;  %v756_v61 = vshrl.u32 %v751_v60, 16  ;;  %v10933_v63 = vld [vmem:[#allocation11_spill] sm:$0xff]  ;;  %v10934_v32 = vld [vmem:[#allocation14_spill] sm:$0xff]  ;;  %v10936_v0 = vld [vmem:[#allocation21_spill] sm:$0xff] }
 0x1dc   : > { %v641_v45 = vmul.f32 %v640_v10, %v638_v36  ;;  %v6472_v2 = vadd.s32 4294967294, %v2320_v53  ;;  %v765_v6 = vadd.s32 %v764_v3, %v754_v22  ;;  %vm2216_vm13 = vcmp.lt.s32.totalorder %v10929_v44, 0 }
 0x1dd   : > { %v2338_v59 = vsub.s32 4, %v8723_v41  ;;  %vm769_vm0 = vc.u32 %v8768_v24, %v8782_v33  ;;  %v10932_v8 = vand.u32 65535, %v10931_v28  ;;  %v2430_v9 = vsel %vm8728_vm10, 1, %v10778_v23 }
 0x1de   : > { %v642_v37 = vxor.u32 2147483648, %v641_v45  ;;  %vm6473_vm1 = vcmp.lt.s32.totalorder %v6472_v2, 0  ;;  %v766_v60 = vadd.s32 %v765_v6, %v756_v61  ;;  %v10935_v27 = vand.u32 65535, %v10934_v32  ;;  %v10938_v61 = vld [vmem:[#allocation24_spill] sm:$0xff]  ;;  %v10939_v6 = vld [vmem:[#allocation22_spill] sm:$0xff] }
 0x1df   : > { %v8791_v58 = vmul.u32 %v10932_v8, %v10930_v39  ;;  %v2323_v48 = vsel %vm6473_vm1, 0, %v6472_v2  ;;  %v2432_v57 = vadd.s32 %v2430_v9, %v10936_v0  ;;  %v2447_v28 = vshll.u32 %v10939_v6, 16  ;;  %v5313_v0 = vld [vmem:[#allocation2 + $0x18] sm:$0xff] }
 0x1e0   : > { %v2443_v11 = vmul.u32 %v10935_v27, %v10933_v63  ;;  %v10937_v22 = vmov %v10935_v27  ;;  %v643_v17 = vsel %vm522_vm6, %v642_v37, %v641_v45  ;;  %v2324_v36 = vsub.s32 32, %v2323_v48  ;;  %5500 = vmatpush.msrb.mxu1 %v5313_v0 }
 0x1e1   : > { %v2427_v46 = vshll.u32 %v8791_v58, 16  ;;  %v8804_v15 = vmul.u32 %v10937_v22, %v10930_v39  ;;  %v2325_v10 = vshll.u32 %v8750_v26, %v2323_v48  ;;  %v2328_v53 = vsub.s32 4294967266, %v2323_v48  ;;  %v10940_v22 = vld [vmem:[#allocation134_spill] sm:$0xff] }
 0x1e2   : > { %v8812_v3 = vsel %vm8760_vm11, %v10917_v14, %v643_v17  ;;  %v770_v2 = vadd.s32 1, %v766_v60  ;;  %v2326_v8 = vshrl.u32 %v2308_v40, %v2324_v36  ;;  %v3129_v26 = vadd.s32 3, %v8778_v52  ;;  %v10941_v40 = vld [vmem:[#allocation139_spill] sm:$0xff] }
 0x1e3   : > { %vm2433_vm5 = vc.u32 %v10938_v61, %v2427_v46  ;;  %v648_v39 = vmul.f32 %v8812_v3, %v8812_v3  ;;  %v2329_v9 = vadd.s32 127, %v2328_v53  ;;  %v2426_v37 = vshrl.u32 %v10919_v49, 16 }
 0x1e4   : > { %v2434_v45 = vsel %vm2433_vm5, 1, %v10778_v23  ;;  %v771_v18 = vsel %vm769_vm0, %v770_v2, %v766_v60  ;;  %v2428_v63 = vshrl.u32 %v8791_v58, 16  ;;  %v2327_v48 = vor.u32 %v2326_v8, %v2325_v10 }
 0x1e5   : > { %v649_v32 = vmul.f32 -0.001358992, %v648_v39  ;;  %v656_v27 = vmul.f32 -0.00019511016, %v648_v39  ;;  %v2330_v46 = vshll.u32 %v2329_v9, 23  ;;  %v10942_v17 = vmul.u32 %v10940_v22, %v10941_v40  ;;  %v10944_v40 = vld [vmem:[#allocation108_spill] sm:$0xff] }
 0x1e6   : > { %v2436_v53 = vadd.s32 %v2434_v45, %v2432_v57  ;;  %v2449_v61 = vshll.u32 %v8804_v15, 16  ;;  %vm2451_vm6 = vc.u32 %v2443_v11, %v2447_v28  ;;  %v2339_v49 = vsel %vm2216_vm13, %v2338_v59, %v8723_v41  ;;  %v10943_v57 = vld [vmem:[#allocation23_spill] sm:$0xff] }
 0x1e7   : > { %v772_v36 = vadd.s32 %v771_v18, %v10942_v17  ;;  %v650_v56 = vadd.f32 0.041655596, %v649_v32  ;;  %v657_v5 = vadd.f32 0.008332121, %v656_v27  ;;  %v2331_v60 = vor.u32 4788187, %v2330_v46 }
 0x1e8   : > { %v2334_v58 = vcvt.s32.f32 %v2327_v48  ;;  %v2452_v2 = vsel %vm2451_vm6, 1, %v10778_v23  ;;  %v2453_v8 = vadd.s32 %v2447_v28, %v2443_v11  ;;  %vm676_vm7 = vcmp.lt.s32.totalorder %v10944_v40, 0 }
 0x1e9   : > { %v773_v10 = vadd.s32 536870912, %v772_v36  ;;  %v651_v9 = vmul.f32 %v650_v56, %v648_v39  ;;  %v658_v22 = vmul.f32 %v657_v5, %v648_v39  ;;  %v2332_v18 = vand.u32 2147483647, %v2331_v60 }
 0x1ea   : > { %v2454_v45 = vadd.s32 %v2452_v2, %v10943_v57  ;;  %v2437_v27 = vadd.s32 %v2436_v53, %v2426_v37  ;;  %v2448_v46 = vshrl.u32 %v10939_v6, 16  ;;  %vm2455_vm10 = vc.u32 %v2453_v8, %v2449_v61 }
 0x1eb   : > { %v774_v32 = vshrl.u32 %v773_v10, 30  ;;  %v652_v17 = vadd.f32 -0.4999988, %v651_v9  ;;  %v659_v41 = vadd.f32 -0.16666654, %v658_v22  ;;  %v2335_v59 = vmul.f32 %v2334_v58, %v2332_v18 }
 0x1ec   : > { %v2456_v48 = vsel %vm2455_vm10, 1, %v10778_v23  ;;  %v3130_v0 = vand.u32 3, %v3129_v26  ;;  %v10945_v11 = vand.u32 2147483647, %v10929_v44  ;;  %v10948_v6 = vand.u32 2147483647, %v10944_v40 }
 0x1ed   : > { %v775_v5 = vshll.u32 %v774_v32, 30  ;;  %v2458_v28 = vadd.s32 %v2456_v48, %v2454_v45  ;;  %v653_v60 = vmul.f32 %v652_v17, %v648_v39  ;;  %v660_v10 = vmul.f32 %v659_v41, %v648_v39 }
 0x1ee   : > { %vm8839_vm9 = vcmp.le.f32.partialorder %v10945_v11, 0.7853982  ;;  %v2336_v37 = vxor.u32 2147483648, %v2335_v59  ;;  %vm8845_vm3 = vcmp.le.f32.partialorder %v10948_v6, 0.7853982  ;;  %v2450_v58 = vshrl.u32 %v8804_v15, 16 }
 0x1ef   : > { %vm663_vm11 = vweird.f32 %v10917_v14  ;;  %v8853_v26 = vsel %vm8839_vm9, 0, %v2339_v49  ;;  %v8855_v2 = vsub.s32 %v772_v36, %v775_v5  ;;  %v8857_v9 = vadd.s32 %v2437_v27, %v2428_v63 }
 0x1f0   : > { %10951 = vst [vmem:[#allocation133_spill] sm:$0xff] %v8853_v26  ;;  %v2459_v39 = vadd.s32 %v2458_v28, %v2448_v46  ;;  %v8859_v22 = vadd.f32 1.0, %v653_v60  ;;  %v661_v18 = vadd.f32 1.0, %v660_v10  ;;  %v2337_v57 = vsel %vm2216_vm13, %v2336_v37, %v2335_v59 }
 0x1f1   : > { %v798_v45 = vsub.s32 4, %v774_v32  ;;  %v8866_v15 = vsel %vm8839_vm9, %v10929_v44, %v2337_v57  ;;  %vm777_vm12 = vcmp.lt.s32.totalorder %v8855_v2, 0  ;;  %v778_v36 = vsub.s32 0, %v8855_v2 }
 0x1f2   : > { %v8870_v49 = vadd.s32 %v2453_v8, %v2449_v61  ;;  %v10952_v63 = vshll.u32 %v7983_v30, 16  ;;  %v8880_v46 = vmul.f32 %v661_v18, %v8812_v3  ;;  %v10516_v17 = vxor.u32 2147483648, %v8859_v22 }
 0x1f3   : > { %v2342_v41 = vmul.f32 %v8866_v15, %v8866_v15  ;;  %v2460_v59 = vadd.s32 %v2459_v39, %v2450_v58  ;;  %vm3131_vm13 = vcmp.lt.s32.totalorder %v3130_v0, 2  ;;  %vm3135_vm1 = vcmp.eq.s32.totalorder %v3130_v0, 2 }
 0x1f4   : > { %vm8875_vm0 = vc.u32 %v8044_v50, %v10952_v63  ;;  %v4834_v61 = vadd.s32 3, %v8853_v26  ;;  %v779_v8 = vsel %vm777_vm12, %v778_v36, %v8855_v2  ;;  %v10514_v50 = vxor.u32 2147483648, %v8880_v46 }
 0x1f5   : > { %v2343_v48 = vmul.f32 -0.001358992, %v2342_v41  ;;  %v2350_v11 = vmul.f32 -0.00019511016, %v2342_v41  ;;  %v799_v3 = vsel %vm676_vm7, %v798_v45, %v774_v32  ;;  %vm3132_vm5 = vcmp.eq.s32.totalorder %v3130_v0, 0  ;;  %v10955_v0 = vld [vmem:[#allocation8_spill] sm:$0xff] }
 0x1f6   : > { %v3137_v56 = vsel %vm3135_vm1, %v10516_v17, %v8880_v46  ;;  %v780_v5 = vclz %v779_v8  ;;  %vm2463_vm6 = vc.u32 %v8857_v9, %v8870_v49  ;;  %v3134_v28 = vsel %vm3132_vm5, %v8859_v22, %v10514_v50 }
 0x1f7   : > { %v2344_v60 = vadd.f32 0.041655596, %v2343_v48  ;;  %v2351_v10 = vadd.f32 0.008332121, %v2350_v11  ;;  %v2464_v37 = vadd.s32 1, %v2460_v59  ;;  %v3138_v6 = vsel %vm3131_vm13, %v3134_v28, %v3137_v56  ;;  %v10958_v11 = vld [vmem:[#allocation141_spill] sm:$0xff] }
 0x1f8   : > { %v8899_v58 = vand.u32 3, %v4834_v61  ;;  %v6442_v32 = vadd.s32 4294967294, %v780_v5  ;;  %v8903_v39 = vsel %vm8845_vm3, 0, %v799_v3  ;;  %v3139_v18 = vsel %vm663_vm11, nan, %v3138_v6  ;;  %v10956_v61 = vld [vmem:[#allocation12_spill] sm:$0xff]  ;;  %v10960_v6 = vld [vmem:[#allocation5_spill] sm:$0xff] }
 0x1f9   : > { %v2345_v57 = vmul.f32 %v2344_v60, %v2342_v41  ;;  %v2352_v45 = vmul.f32 %v2351_v10, %v2342_v41  ;;  %v2465_v36 = vsel %vm2463_vm6, %v2464_v37, %v2460_v59  ;;  %v8909_v63 = vor.u32 %v8674_v47, %v8658_v20  ;;  %6532 = vmatmul.msk.f32.gmra.mxu0 %vm5326_vm4, %v3139_v18 }
 0x1fa   : > { %vm6443_vm10 = vcmp.lt.s32.totalorder %v6442_v32, 0  ;;  %v10957_v8 = vmul.u32 %v10955_v0, %v10956_v61  ;;  %v10959_v3 = vand.u32 65535, %v10958_v11  ;;  %v768_v59 = vadd.s32 %v8782_v33, %v8768_v24  ;;  %v10962_v11 = vld [vmem:[#allocation152_spill] sm:$0xff] }
 0x1fb   : > { %v2346_v5 = vadd.f32 -0.4999988, %v2345_v57  ;;  %v2353_v28 = vadd.f32 -0.16666654, %v2352_v45  ;;  %v783_v60 = vsel %vm6443_vm10, 0, %v6442_v32  ;;  %vm4837_vm9 = vcmp.eq.s32.totalorder %v8899_v58, 0 }
 0x1fc   : > { %v2466_v48 = vadd.s32 %v2465_v36, %v10957_v8  ;;  %v8918_v56 = vmul.u32 %v10959_v3, %v7829_v55  ;;  %v784_v20 = vsub.s32 32, %v783_v60  ;;  %v788_v47 = vsub.s32 4294967266, %v783_v60  ;;  %v10963_v3 = vld [vmem:[#allocation153_spill] sm:$0xff] }
 0x1fd   : > { %v3284_v10 = vadd.s32 3, %v8903_v39  ;;  %vm2370_vm12 = vcmp.lt.s32.totalorder %v10960_v6, 0  ;;  %v2347_v18 = vmul.f32 %v2346_v5, %v2342_v41  ;;  %v2354_v36 = vmul.f32 %v2353_v28, %v2342_v41 }
 0x1fe   : > { %v2467_v37 = vadd.s32 536870912, %v2466_v48  ;;  %vm4836_vm13 = vcmp.lt.s32.totalorder %v8899_v58, 2  ;;  %v785_v57 = vshll.u32 %v8855_v2, %v783_v60  ;;  %v887_v45 = vshll.u32 %v8918_v56, 16 }
 0x1ff   : > { %vm10525_vm1 = vweird.f32 %v10929_v44  ;;  %v786_v24 = vshrl.u32 %v768_v59, %v784_v20  ;;  %v789_v33 = vadd.s32 127, %v788_v47  ;;  %v890_v0 = vsel %vm8875_vm0, 1, %v10778_v23 }
 0x200   : > { %v2468_v32 = vshrl.u32 %v2467_v37, 30  ;;  %v8932_v61 = vadd.f32 1.0, %v2347_v18  ;;  %v2355_v8 = vadd.f32 1.0, %v2354_v36  ;;  %v892_v41 = vadd.s32 %v890_v0, %v10962_v11  ;;  %v10965_v36 = vld [vmem:[#allocation18_spill] sm:$0xff]  ;;  %v10968_v11 = vld [vmem:[#allocation27_spill] sm:$0xff] }
 0x201   : > { %vm893_vm5 = vc.u32 %v10963_v3, %v887_v45  ;;  %vm4840_vm6 = vcmp.eq.s32.totalorder %v8899_v58, 2  ;;  %v787_v2 = vor.u32 %v786_v24, %v785_v57  ;;  %v790_v5 = vshll.u32 %v789_v33, 23  ;;  %v10966_v45 = vld [vmem:[#allocation25_spill] sm:$0xff] }
 0x202   : > { %10961 = vst [vmem:[#allocation54_spill] sm:$0xff] %v8932_v61  ;;  %v2469_v28 = vshll.u32 %v2468_v32, 30  ;;  %v8938_v59 = vmul.f32 %v2355_v8, %v8866_v15  ;;  %v10519_v60 = vxor.u32 2147483648, %v8932_v61  ;;  %v2462_v27 = vadd.s32 %v8870_v49, %v8857_v9  ;;  %v10970_v9 = vld [vmem:[#allocation30_spill] sm:$0xff] }
 0x203   : > { %v894_v20 = vsel %vm893_vm5, 1, %v10778_v23  ;;  %v791_v47 = vor.u32 4788187, %v790_v5  ;;  %v8944_v37 = vand.u32 3, %v3284_v10  ;;  %v10967_v0 = vand.u32 65535, %v10966_v45 }
 0x204   : > { %10964 = vst [vmem:[#allocation56_spill] sm:$0xff] %v8938_v59  ;;  %v2470_v18 = vsub.s32 %v2466_v48, %v2469_v28  ;;  %v10515_v24 = vxor.u32 2147483648, %v8938_v59  ;;  %v2492_v15 = vsub.s32 4, %v2468_v32  ;;  %v886_v33 = vshrl.u32 %v7983_v30, 16 }
 0x205   : > { %v8949_v57 = vmul.u32 %v10967_v0, %v10965_v36  ;;  %v896_v8 = vadd.s32 %v894_v20, %v892_v41  ;;  %v10969_v3 = vshll.u32 %v10968_v11, 16  ;;  %v792_v10 = vand.u32 2147483647, %v791_v47  ;;  %v10973_v41 = vld [vmem:[#allocation143_spill] sm:$0xff]  ;;  %v10975_v47 = vld [vmem:[#allocation149_spill] sm:$0xff] }
 0x206   : > { %v794_v48 = vcvt.s32.f32 %v787_v2  ;;  %vm2471_vm10 = vcmp.lt.s32.totalorder %v2470_v18, 0  ;;  %v2472_v5 = vsub.s32 0, %v2470_v18  ;;  %v4839_v28 = vsel %vm4837_vm9, %v8932_v61, %v10515_v24 }
 0x207   : > { %vm8956_vm0 = vc.u32 %v10970_v9, %v10969_v3  ;;  %v4842_v30 = vsel %vm4840_vm6, %v10519_v60, %v8938_v59  ;;  %v10974_v20 = vand.u32 65535, %v10973_v41  ;;  %v907_v2 = vshll.u32 %v10975_v47, 16 }
 0x208   : > { %v4843_v0 = vsel %vm4836_vm13, %v4839_v28, %v4842_v30  ;;  %v795_v3 = vmul.f32 %v794_v48, %v792_v10  ;;  %v2473_v9 = vsel %vm2471_vm10, %v2472_v5, %v2470_v18  ;;  %v897_v50 = vadd.s32 %v896_v8, %v886_v33 }
 0x209   : > { %v905_v45 = vmul.u32 %v10974_v20, %v7829_v55  ;;  %v4844_v24 = vsel %vm10525_vm1, nan, %v4843_v0  ;;  %v2474_v17 = vclz %v2473_v9  ;;  %v10977_v51 = vmov %v10974_v20 }
 0x20a   : > { %v903_v60 = vmul.u32 %v10977_v51, %v10976_v21  ;;  %6543 = vmatmul.msk.f32.gmra.mxu1 %vm5326_vm4, %v4844_v24  ;;  %v796_v55 = vxor.u32 2147483648, %v795_v3  ;;  %v2493_v58 = vsel %vm2370_vm12, %v2492_v15, %v2468_v32  ;;  %v888_v10 = vshrl.u32 %v8918_v56, 16 }
 0x20b   : > { %v908_v33 = vshrl.u32 %v10975_v47, 16  ;;  %v6475_v8 = vadd.s32 4294967294, %v2474_v17  ;;  %v909_v48 = vshll.u32 %v905_v45, 16  ;;  %v10978_v21 = vand.u32 2147483647, %v10960_v6 }
 0x20c   : > { %vm911_vm9 = vc.u32 %v903_v60, %v907_v2  ;;  %v913_v5 = vadd.s32 %v907_v2, %v903_v60  ;;  %v797_v28 = vsel %vm676_vm7, %v796_v55, %v795_v3  ;;  %v8995_v24 = vadd.s32 %v897_v50, %v888_v10  ;;  %v10981_v60 = vld [vmem:[#allocation151_spill] sm:$0xff] }
 0x20d   : > { %vm8991_vm13 = vcmp.le.f32.partialorder %v10978_v21, 0.7853982  ;;  %v912_v32 = vsel %vm911_vm9, 1, %v10778_v23  ;;  %v2581_v56 = vshll.u32 %v8949_v57, 16  ;;  %v9002_v17 = vsel %vm8845_vm3, %v10944_v40, %v797_v28 }
 0x20e   : > { %vm6476_vm5 = vcmp.lt.s32.totalorder %v6475_v8, 0  ;;  %v914_v15 = vadd.s32 %v912_v32, %v10981_v60  ;;  %vm915_vm7 = vc.u32 %v913_v5, %v909_v48  ;;  %v802_v30 = vmul.f32 %v9002_v17, %v9002_v17 }
 0x20f   : > { %v2477_v41 = vsel %vm6476_vm5, 0, %v6475_v8  ;;  %v916_v50 = vsel %vm915_vm7, 1, %v10778_v23  ;;  %v9008_v20 = vadd.s32 %v913_v5, %v909_v48  ;;  %v910_v55 = vshrl.u32 %v905_v45, 16  ;;  %v10982_v5 = vld [vmem:[#allocation33_spill] sm:$0xff] }
 0x210   : > { %v2478_v47 = vsub.s32 32, %v2477_v41  ;;  %v2479_v2 = vshll.u32 %v2470_v18, %v2477_v41  ;;  %v2482_v0 = vsub.s32 4294967266, %v2477_v41  ;;  %v918_v3 = vadd.s32 %v916_v50, %v914_v15  ;;  %v10983_v18 = vld [vmem:[#allocation37_spill] sm:$0xff] }
 0x211   : > { %v803_v9 = vmul.f32 -0.001358992, %v802_v30  ;;  %v810_v53 = vmul.f32 -0.00019511016, %v802_v30  ;;  %vm923_vm3 = vc.u32 %v8995_v24, %v9008_v20  ;;  %v2584_v8 = vsel %vm8956_vm0, 1, %v10778_v23 }
 0x212   : > { %v2480_v10 = vshrl.u32 %v2462_v27, %v2478_v47  ;;  %v2483_v28 = vadd.s32 127, %v2482_v0  ;;  %v919_v21 = vadd.s32 %v918_v3, %v908_v33  ;;  %v2586_v60 = vadd.s32 %v2584_v8, %v10982_v5  ;;  %v5312_v27 = vld [vmem:[#allocation2 + $0x10] sm:$0xff]  ;;  %v10984_v33 = vld [vmem:[#allocation17_spill] sm:$0xff]  ;;  %v10985_v0 = vld [vmem:[#allocation26_spill] sm:$0xff] }
 0x213   : > { %v804_v32 = vadd.f32 0.041655596, %v803_v9  ;;  %v811_v48 = vadd.f32 0.008332121, %v810_v53  ;;  %vm2587_vm6 = vc.u32 %v10983_v18, %v2581_v56  ;;  %v10986_v3 = vand.u32 65535, %v10985_v0  ;;  %5501 = vmatpush.msrb.mxu1 %v5312_v27 }
 0x214   : > { %v2481_v15 = vor.u32 %v2480_v10, %v2479_v2  ;;  %v2484_v41 = vshll.u32 %v2483_v28, 23  ;;  %v920_v50 = vadd.s32 %v919_v21, %v910_v55  ;;  %v2588_v45 = vsel %vm2587_vm6, 1, %v10778_v23  ;;  %v10988_v21 = vld [vmem:[#allocation34_spill] sm:$0xff] }
 0x215   : > { %v805_v61 = vmul.f32 %v804_v32, %v802_v30  ;;  %v812_v44 = vmul.f32 %v811_v48, %v802_v30  ;;  %v2590_v47 = vadd.s32 %v2588_v45, %v2586_v60  ;;  %v2597_v49 = vmul.u32 %v10986_v3, %v10984_v33 }
 0x216   : > { %v2485_v59 = vor.u32 4788187, %v2484_v41  ;;  %v2488_v9 = vcvt.s32.f32 %v2481_v15  ;;  %v924_v53 = vadd.s32 1, %v920_v50  ;;  %v10987_v56 = vmov %v10986_v3  ;;  %v10991_v41 = vld [vmem:[#allocation145_spill] sm:$0xff] }
 0x217   : > { %v2599_v2 = vmul.u32 %v10987_v56, %v10965_v36  ;;  %v1629_v55 = vor.u32 %v8696_v31, %v8692_v54  ;;  %v806_v10 = vadd.f32 -0.4999988, %v805_v61  ;;  %v813_v28 = vadd.f32 -0.16666654, %v812_v44  ;;  %v10990_v36 = vld [vmem:[#allocation137_spill] sm:$0xff] }
 0x218   : > { %v2601_v8 = vshll.u32 %v10988_v21, 16  ;;  %v2486_v32 = vand.u32 2147483647, %v2485_v59  ;;  %v9029_v48 = vsel %vm8991_vm13, 0, %v2493_v58  ;;  %v925_v5 = vsel %vm923_vm3, %v924_v53, %v920_v50 }
 0x219   : > { %10989 = vst [vmem:[#allocation86_spill] sm:$0xff] %v9029_v48  ;;  %v2603_v60 = vshll.u32 %v2599_v2, 16  ;;  %v807_v18 = vmul.f32 %v806_v10, %v802_v30  ;;  %v814_v15 = vmul.f32 %v813_v28, %v802_v30  ;;  %vm3286_vm0 = vcmp.lt.s32.totalorder %v8944_v37, 2  ;;  %v10994_v10 = vld [vmem:[#allocation35_spill] sm:$0xff] }
 0x21a   : > { %v10992_v61 = vmul.u32 %v10990_v36, %v10991_v41  ;;  %v2582_v45 = vshrl.u32 %v8949_v57, 16  ;;  %vm10554_vm10 = vweird.f32 %v10944_v40  ;;  %v2489_v59 = vmul.f32 %v2488_v9, %v2486_v32  ;;  %v10995_v57 = vld [vmem:[#allocation71_spill] sm:$0xff]  ;;  %v10997_v9 = vld [vmem:[#allocation74_spill] sm:$0xff] }
 0x21b   : > { %v10993_v58 = vshrl.u32 %v10968_v11, 16  ;;  %vm2605_vm9 = vc.u32 %v2597_v49, %v2601_v8  ;;  %v2607_v33 = vadd.s32 %v2601_v8, %v2597_v49  ;;  %v9042_v50 = vadd.f32 1.0, %v807_v18 }
 0x21c   : > { %v926_v44 = vadd.s32 %v925_v5, %v10992_v61  ;;  %v815_v0 = vadd.f32 1.0, %v814_v15  ;;  %v2606_v3 = vsel %vm2605_vm9, 1, %v10778_v23  ;;  %v2490_v53 = vxor.u32 2147483648, %v2489_v59 }
 0x21d   : > { %v2591_v27 = vadd.s32 %v2590_v47, %v10993_v58  ;;  %v2602_v56 = vshrl.u32 %v10988_v21, 16  ;;  %v2608_v28 = vadd.s32 %v2606_v3, %v10994_v10  ;;  %vm2609_vm5 = vc.u32 %v2607_v33, %v2603_v60  ;;  %v11000_v21 = vld [vmem:[#allocation165_spill] sm:$0xff]  ;;  %v11001_v10 = vld [vmem:[#allocation66_spill] sm:$0xff] }
 0x21e   : > { %v927_v30 = vadd.s32 536870912, %v926_v44  ;;  %v10996_v5 = vshll.u32 %v10995_v57, 16  ;;  %v9055_v47 = vmul.f32 %v815_v0, %v9002_v17  ;;  %v10528_v49 = vxor.u32 2147483648, %v9042_v50 }
 0x21f   : > { %v2610_v32 = vsel %vm2609_vm5, 1, %v10778_v23  ;;  %vm1630_vm3 = vcmp.lt.s32.totalorder %v11000_v21, 1  ;;  %vm3287_vm6 = vcmp.eq.s32.totalorder %v8944_v37, 0  ;;  %vm3290_vm9 = vcmp.eq.s32.totalorder %v8944_v37, 2 }
 0x220   : > { %vm9050_vm7 = vc.u32 %v10997_v9, %v10996_v5  ;;  %v9058_v8 = vshrl.u32 %v927_v30, 30  ;;  %v2491_v18 = vsel %vm2370_vm12, %v2490_v53, %v2489_v59  ;;  %v2612_v15 = vadd.s32 %v2610_v32, %v2608_v28  ;;  %v11002_v28 = vld [vmem:[#allocation68_spill] sm:$0xff] }
 0x221   : > { %v10529_v36 = vxor.u32 2147483648, %v9055_v47  ;;  %v9070_v17 = vsel %vm8991_vm13, %v10960_v6, %v2491_v18  ;;  %v4989_v41 = vadd.s32 3, %v9029_v48  ;;  %v9076_v0 = vadd.s32 %v2591_v27, %v2582_v45 }
 0x222   : > { %v929_v61 = vshll.u32 %v9058_v8, 30  ;;  %v2496_v58 = vmul.f32 %v9070_v17, %v9070_v17  ;;  %v2604_v30 = vshrl.u32 %v2599_v2, 16  ;;  %v2613_v3 = vadd.s32 %v2612_v15, %v2602_v56 }
 0x223   : > { %v3289_v59 = vsel %vm3287_vm6, %v9042_v50, %v10529_v36  ;;  %v3292_v51 = vsel %vm3290_vm9, %v10528_v49, %v9055_v47  ;;  %v11003_v5 = vand.u32 65535, %v11002_v28  ;;  %v9093_v56 = vadd.s32 %v2607_v33, %v2603_v60  ;;  %v11004_v60 = vld [vmem:[#allocation113_spill] sm:$0xff]  ;;  %v11012_v49 = vld [vmem:[#allocation28_spill] sm:$0xff] }
 0x224   : > { %v9084_v53 = vsub.s32 %v926_v44, %v929_v61  ;;  %v3293_v45 = vsel %vm3286_vm0, %v3289_v59, %v3292_v51  ;;  %v2497_v2 = vmul.f32 -0.001358992, %v2496_v58  ;;  %v2504_v27 = vmul.f32 -0.00019511016, %v2496_v58 }
 0x225   : > { %v9089_v9 = vmul.u32 %v11003_v5, %v11001_v10  ;;  %vm1633_vm12 = vcmp.lt.s32.totalorder %v11000_v21, 4  ;;  %v3294_v32 = vsel %vm10554_vm10, nan, %v3293_v45  ;;  %v2614_v61 = vadd.s32 %v2613_v3, %v2604_v30 }
 0x226   : > { %vm931_vm13 = vcmp.lt.s32.totalorder %v9084_v53, 0  ;;  %v932_v44 = vsub.s32 0, %v9084_v53  ;;  %v1639_v18 = vsel %vm1633_vm12, %v8909_v63, 920167782  ;;  %6533 = vmatmul.msk.f32.gmra.mxu0 %vm5326_vm4, %v3294_v32  ;;  %v2498_v37 = vadd.f32 0.041655596, %v2497_v2 }
 0x227   : > { %v2505_v15 = vadd.f32 0.008332121, %v2504_v27  ;;  %vm830_vm0 = vcmp.lt.s32.totalorder %v11004_v60, 0  ;;  %vm10584_vm5 = vcmp.lt.s32.totalorder %v11000_v21, 3  ;;  %v4990_v33 = vand.u32 3, %v4989_v41 }
 0x228   : > { %v933_v59 = vsel %vm931_vm13, %v932_v44, %v9084_v53  ;;  %v1041_v51 = vshll.u32 %v9089_v9, 16  ;;  %v2499_v28 = vmul.f32 %v2498_v37, %v2496_v58  ;;  %vm2617_vm6 = vc.u32 %v9076_v0, %v9093_v56 }
 0x229   : > { %v2506_v5 = vmul.f32 %v2505_v15, %v2496_v58  ;;  %v934_v45 = vclz %v933_v59  ;;  %v9114_v30 = vsel %vm1630_vm3, %v8679_v25, %v8685_v43  ;;  %v9119_v41 = vsel %vm10584_vm5, %v8774_v62, %v1639_v18  ;;  %v11008_v59 = vld [vmem:[#allocation79_spill] sm:$0xff] }
 0x22a   : > { %v9126_v3 = vsel %vm1633_vm12, %v1629_v55, 1326507024  ;;  %v2618_v2 = vadd.s32 1, %v2614_v61  ;;  %v2500_v27 = vadd.f32 -0.4999988, %v2499_v28  ;;  %v1044_v18 = vsel %vm9050_vm7, 1, %v10778_v23 }
 0x22b   : > { %v2507_v32 = vadd.f32 -0.16666654, %v2506_v5  ;;  %v11005_v44 = vand.u32 2147483647, %v11004_v60  ;;  %v6445_v15 = vadd.s32 4294967294, %v934_v45  ;;  %vm4992_vm13 = vcmp.eq.s32.totalorder %v4990_v33, 0 }
 0x22c   : > { %v922_v54 = vadd.s32 %v9008_v20, %v8995_v24  ;;  %v952_v31 = vsub.s32 4, %v9058_v8  ;;  %v2619_v55 = vsel %vm2617_vm6, %v2618_v2, %v2614_v61  ;;  %vm9141_vm1 = vc.u32 %v11008_v59, %v1041_v51  ;;  %v11011_v45 = vld [vmem:[#allocation15_spill] sm:$0xff]  ;;  %v11016_v61 = vld [vmem:[#allocation70_spill] sm:$0xff] }
 0x22d   : > { %vm9130_vm9 = vcmp.le.f32.partialorder %v11005_v44, 0.7853982  ;;  %v2501_v5 = vmul.f32 %v2500_v27, %v2496_v58  ;;  %v2508_v44 = vmul.f32 %v2507_v32, %v2496_v58  ;;  %vm4991_vm14 = vcmp.lt.s32.totalorder %v4990_v33, 2  ;;  %v11014_v24 = vld [vmem:[#allocation75_spill] sm:$0xff] }
 0x22e   : > { %vm6446_vm8 = vcmp.lt.s32.totalorder %v6445_v15, 0  ;;  %v11013_v11 = vmul.u32 %v11011_v45, %v11012_v49  ;;  %vm10553_vm7 = vweird.f32 %v10960_v6  ;;  %v1046_v20 = vadd.s32 %v1044_v18, %v11014_v24  ;;  %v11020_v49 = vld [vmem:[#allocation77_spill] sm:$0xff] }
 0x22f   : > { %v937_v48 = vsel %vm6446_vm8, 0, %v6445_v15  ;;  %v11017_v2 = vand.u32 65535, %v11016_v61  ;;  %v9158_v58 = vadd.f32 1.0, %v2501_v5  ;;  %v2509_v32 = vadd.f32 1.0, %v2508_v44 }
 0x230   : > { %v2620_v36 = vadd.s32 %v2619_v55, %v11013_v11  ;;  %v938_v26 = vsub.s32 32, %v937_v48  ;;  %v1061_v55 = vshll.u32 %v11020_v49, 16  ;;  %vm4995_vm6 = vcmp.eq.s32.totalorder %v4990_v33, 2 }
 0x231   : > { %v1057_v51 = vmul.u32 %v11017_v2, %v11015_v29  ;;  %v11018_v59 = vmov %v11017_v2  ;;  %11019 = vst [vmem:[#allocation92_spill] sm:$0xff] %v9158_v58  ;;  %v942_v45 = vsub.s32 4294967266, %v937_v48  ;;  %v1048_v18 = vsel %vm9141_vm1, 1, %v10778_v23 }
 0x232   : > { %v9156_v27 = vmul.u32 %v11018_v59, %v11001_v10  ;;  %v2621_v15 = vadd.s32 536870912, %v2620_v36  ;;  %v9165_v29 = vmul.f32 %v2509_v32, %v9070_v17  ;;  %v10534_v11 = vxor.u32 2147483648, %v9158_v58 }
 0x233   : > { %v940_v10 = vshrl.u32 %v922_v54, %v938_v26  ;;  %v953_v5 = vsel %vm830_vm0, %v952_v31, %v9058_v8  ;;  %vm10583_vm8 = vcmp.lt.s32.totalorder %v11000_v21, 2  ;;  %v939_v44 = vshll.u32 %v9084_v53, %v937_v48 }
 0x234   : > { %11021 = vst [vmem:[#allocation50_spill] sm:$0xff] %v9165_v29  ;;  %v943_v24 = vadd.s32 127, %v942_v45  ;;  %v9173_v61 = vshrl.u32 %v2621_v15, 30  ;;  %v1040_v28 = vshrl.u32 %v10995_v57, 16  ;;  %v10535_v2 = vxor.u32 2147483648, %v9165_v29 }
 0x235   : > { %v1050_v17 = vadd.s32 %v1048_v18, %v1046_v20  ;;  %v1063_v59 = vshll.u32 %v9156_v27, 16  ;;  %vm1065_vm1 = vc.u32 %v1057_v51, %v1061_v55  ;;  %v941_v26 = vor.u32 %v940_v10, %v939_v44  ;;  %v11023_v10 = vld [vmem:[#allocation118_spill] sm:$0xff]  ;;  %v11025_v44 = vld [vmem:[#allocation123_spill] sm:$0xff] }
 0x236   : > { %v944_v54 = vshll.u32 %v943_v24, 23  ;;  %v9180_v8 = vsel %vm9130_vm9, 0, %v953_v5  ;;  %v2623_v31 = vshll.u32 %v9173_v61, 30  ;;  %v4994_v48 = vsel %vm4992_vm13, %v9158_v58, %v10535_v2  ;;  %v11028_v58 = vld [vmem:[#allocation78_spill] sm:$0xff] }
 0x237   : > { %11022 = vst [vmem:[#allocation52_spill] sm:$0xff] %v9180_v8  ;;  %v4997_v57 = vsel %vm4995_vm6, %v10534_v11, %v9165_v29  ;;  %v1066_v53 = vsel %vm1065_vm1, 1, %v10778_v23  ;;  %v1067_v20 = vadd.s32 %v1061_v55, %v1057_v51  ;;  %v1042_v18 = vshrl.u32 %v9089_v9, 16 }
 0x238   : > { %v4998_v32 = vsel %vm4991_vm14, %v4994_v48, %v4997_v57  ;;  %v945_v45 = vor.u32 4788187, %v944_v54  ;;  %v9193_v15 = vsub.s32 %v2620_v36, %v2623_v31  ;;  %v11024_v5 = vshll.u32 %v11023_v10, 16  ;;  %v11029_v48 = vld [vmem:[#allocation93_spill] sm:$0xff]  ;;  %v11041_v57 = vld [vmem:[#allocation127_spill] sm:$0xff] }
 0x239   : > { %v4999_v11 = vsel %vm10553_vm7, nan, %v4998_v32  ;;  %v1051_v2 = vadd.s32 %v1050_v17, %v1040_v28  ;;  %v1068_v51 = vadd.s32 %v1066_v53, %v11028_v58  ;;  %vm1069_vm13 = vc.u32 %v1067_v20, %v1063_v59 }
 0x23a   : > { %vm9199_vm2 = vc.u32 %v11025_v44, %v11024_v5  ;;  %6544 = vmatmul.msk.f32.gmra.mxu1 %vm5326_vm4, %v4999_v11  ;;  %v946_v36 = vand.u32 2147483647, %v945_v45  ;;  %v948_v33 = vcvt.s32.f32 %v941_v26  ;;  %vm2625_vm14 = vcmp.lt.s32.totalorder %v9193_v15, 0  ;;  %v11031_v44 = vld [vmem:[#allocation106_spill] sm:$0xff] }
 0x23b   : > { %v2626_v9 = vsub.s32 0, %v9193_v15  ;;  %v1642_v55 = vsel %vm1630_vm3, %v8685_v43, %v8774_v62  ;;  %v1644_v28 = vsel %vm10584_vm5, %v8909_v63, %v9126_v3  ;;  %v1062_v58 = vshrl.u32 %v11020_v49, 16  ;;  %v11030_v3 = vld [vmem:[#allocation6_spill] sm:$0xff] }
 0x23c   : > { %v1070_v11 = vsel %vm1069_vm13, 1, %v10778_v23  ;;  %v949_v17 = vmul.f32 %v948_v33, %v946_v36  ;;  %v3439_v26 = vadd.s32 3, %v9180_v8  ;;  %v9226_v53 = vsel %vm10583_vm8, %v9114_v30, %v9119_v41  ;;  %v11034_v30 = vld [vmem:[#allocation163_spill] sm:$0xff] }
 0x23d   : > { %v2627_v54 = vsel %vm2625_vm14, %v2626_v9, %v9193_v15  ;;  %v1072_v31 = vadd.s32 %v1070_v11, %v1068_v51  ;;  %v1064_v63 = vshrl.u32 %v9156_v27, 16  ;;  %vm2524_vm6 = vcmp.lt.s32.totalorder %v11030_v3, 0  ;;  %v11032_v51 = vld [vmem:[#allocation114_spill] sm:$0xff] }
 0x23e   : > { %v2628_v32 = vclz %v2627_v54  ;;  %v950_v49 = vxor.u32 2147483648, %v949_v17  ;;  %v9230_v45 = vadd.s32 %v1051_v2, %v1042_v18  ;;  %v9232_v5 = vadd.s32 %v1067_v20, %v1063_v59 }
 0x23f   : > { %v11033_v36 = vand.u32 65535, %v11032_v51  ;;  %v9241_v9 = vsel %vm10583_vm8, %v1642_v55, %v1644_v28  ;;  %v9244_v41 = vand.u32 65535, %v11034_v30  ;;  %v1073_v11 = vadd.s32 %v1072_v31, %v1062_v58 }
 0x240   : > { %v6478_v27 = vadd.s32 4294967294, %v2628_v32  ;;  %v951_v2 = vsel %vm830_vm0, %v950_v49, %v949_v17  ;;  %v9249_v59 = vand.u32 3, %v3439_v26  ;;  %v2616_v20 = vadd.s32 %v9093_v56, %v9076_v0 }
 0x241   : > { %v9237_v33 = vmul.u32 %v11033_v36, %v11031_v44  ;;  %v9256_v18 = vsel %vm9130_vm9, %v11004_v60, %v951_v2  ;;  %v2646_v55 = vsub.s32 4, %v9173_v61  ;;  %v1074_v28 = vadd.s32 %v1073_v11, %v1064_v63 }
 0x242   : > { %vm6479_vm1 = vcmp.lt.s32.totalorder %v6478_v27, 0  ;;  %v956_v58 = vmul.f32 %v9256_v18, %v9256_v18  ;;  %vm1077_vm0 = vc.u32 %v9230_v45, %v9232_v5  ;;  %v11035_v0 = vand.u32 2147483647, %v11030_v3 }
 0x243   : > { %v2631_v31 = vsel %vm6479_vm1, 0, %v6478_v27  ;;  %v2735_v17 = vshll.u32 %v9237_v33, 16  ;;  %v1078_v63 = vadd.s32 1, %v1074_v28  ;;  %v2738_v36 = vsel %vm9199_vm2, 1, %v10778_v23  ;;  %v11038_v27 = vld [vmem:[#allocation128_spill] sm:$0xff] }
 0x244   : > { %vm9266_vm13 = vcmp.le.f32.partialorder %v11035_v0, 0.7853982  ;;  %v2632_v37 = vsub.s32 32, %v2631_v31  ;;  %v2633_v26 = vshll.u32 %v9193_v15, %v2631_v31  ;;  %v2636_v32 = vsub.s32 4294967266, %v2631_v31  ;;  %v11042_v31 = vld [vmem:[#allocation63_spill] sm:$0xff] }
 0x245   : > { %v957_v49 = vmul.f32 -0.001358992, %v956_v58  ;;  %v964_v51 = vmul.f32 -0.00019511016, %v956_v58  ;;  %vm9275_vm9 = vc.u32 %v11038_v27, %v2735_v17  ;;  %v1079_v54 = vsel %vm1077_vm0, %v1078_v63, %v1074_v28  ;;  %v11048_v27 = vld [vmem:[#allocation126_spill] sm:$0xff] }
 0x246   : > { %v2634_v2 = vshrl.u32 %v2616_v20, %v2632_v37  ;;  %v2637_v0 = vadd.s32 127, %v2636_v32  ;;  %v2755_v6 = vshll.u32 %v11041_v57, 16  ;;  %v11044_v19 = vmul.u32 %v11042_v31, %v11043_v42  ;;  %v5311_v63 = vld [vmem:[#allocation2 + $0x8] sm:$0xff]  ;;  %v11052_v31 = vld [vmem:[#allocation157_spill] sm:$0xff] }
 0x247   : > { %v958_v29 = vadd.f32 0.041655596, %v957_v49  ;;  %v965_v15 = vadd.f32 0.008332121, %v964_v51  ;;  %v11047_v24 = vand.u32 65535, %v11046_v16  ;;  %v2740_v40 = vadd.s32 %v2738_v36, %v11048_v27  ;;  %5502 = vmatpush.msrb.mxu1 %v5311_v63 }
 0x248   : > { %v1080_v4 = vadd.s32 %v1079_v54, %v11044_v19  ;;  %v2635_v8 = vor.u32 %v2634_v2, %v2633_v26  ;;  %v2638_v17 = vshll.u32 %v2637_v0, 23  ;;  %v2742_v42 = vsel %vm9275_vm9, 1, %v10778_v23 }
 0x249   : > { %v2751_v35 = vmul.u32 %v11047_v24, %v11045_v12  ;;  %v11049_v20 = vmov %v11047_v24  ;;  %v959_v37 = vmul.f32 %v958_v29, %v956_v58  ;;  %v966_v32 = vmul.f32 %v965_v15, %v956_v58 }
 0x24a   : > { %v9290_v28 = vmul.u32 %v11049_v20, %v11031_v44  ;;  %v1081_v49 = vadd.s32 536870912, %v1080_v4  ;;  %v2639_v19 = vor.u32 4788187, %v2638_v17  ;;  %v2642_v54 = vcvt.s32.f32 %v2635_v8  ;;  %v11050_v8 = vld [vmem:[#allocation148_spill] sm:$0xff] }
 0x24b   : > { %v2647_v12 = vsel %vm2524_vm6, %v2646_v55, %v9173_v61  ;;  %vm2759_vm2 = vc.u32 %v2751_v35, %v2755_v6  ;;  %v960_v26 = vadd.f32 -0.4999988, %v959_v37  ;;  %v967_v16 = vadd.f32 -0.16666654, %v966_v32 }
 0x24c   : > { %v9298_v44 = vshrl.u32 %v1081_v49, 30  ;;  %v2760_v29 = vsel %vm2759_vm2, 1, %v10778_v23  ;;  %v2640_v51 = vand.u32 2147483647, %v2639_v19  ;;  %v2744_v36 = vadd.s32 %v2742_v42, %v2740_v40 }
 0x24d   : > { %v2757_v2 = vshll.u32 %v9290_v28, 16  ;;  %v2761_v11 = vadd.s32 %v2755_v6, %v2751_v35  ;;  %v961_v0 = vmul.f32 %v960_v26, %v956_v58  ;;  %v968_v15 = vmul.f32 %v967_v16, %v956_v58  ;;  %v11055_v6 = vld [vmem:[#allocation129_spill] sm:$0xff] }
 0x24e   : > { %vm3441_vm14 = vcmp.lt.s32.totalorder %v9249_v59, 2  ;;  %vm3442_vm1 = vcmp.eq.s32.totalorder %v9249_v59, 0  ;;  %v1083_v61 = vshll.u32 %v9298_v44, 30  ;;  %v11051_v55 = vshll.u32 %v11050_v8, 16 }
 0x24f   : > { %vm10582_vm9 = vweird.f32 %v11004_v60  ;;  %v2643_v40 = vmul.f32 %v2642_v54, %v2640_v51  ;;  %v2734_v35 = vshrl.u32 %v11023_v10, 16  ;;  %v2762_v58 = vadd.s32 %v2760_v29, %v11055_v6 }
 0x250   : > { %vm9308_vm0 = vc.u32 %v11052_v31, %v11051_v55  ;;  %vm2763_vm2 = vc.u32 %v2761_v11, %v2757_v2  ;;  %v9315_v17 = vadd.f32 1.0, %v961_v0  ;;  %v969_v27 = vadd.f32 1.0, %v968_v15  ;;  %v11059_v55 = vld [vmem:[#allocation154_spill] sm:$0xff] }
 0x251   : > { %v9319_v20 = vsel %vm9266_vm13, 0, %v2647_v12  ;;  %v9321_v37 = vsub.s32 %v1080_v4, %v1083_v61  ;;  %vm3445_vm7 = vcmp.eq.s32.totalorder %v9249_v59, 2  ;;  %v2644_v32 = vxor.u32 2147483648, %v2643_v40  ;;  %v11060_v31 = vld [vmem:[#allocation142_spill] sm:$0xff] }
 0x252   : > { %11056 = vst [vmem:[#allocation49_spill] sm:$0xff] %v9315_v17  ;;  %v2745_v63 = vadd.s32 %v2744_v36, %v2734_v35  ;;  %v2764_v49 = vsel %vm2763_vm2, 1, %v10778_v23  ;;  %v9326_v10 = vmul.f32 %v969_v27, %v9256_v18  ;;  %v10557_v42 = vxor.u32 2147483648, %v9315_v17 }
 0x253   : > { %11057 = vst [vmem:[#allocation53_spill] sm:$0xff] %v9319_v20  ;;  %vm1085_vm10 = vcmp.lt.s32.totalorder %v9321_v37, 0  ;;  %v1086_v19 = vsub.s32 0, %v9321_v37  ;;  %v2645_v54 = vsel %vm2524_vm6, %v2644_v32, %v2643_v40  ;;  %v5144_v4 = vadd.s32 3, %v9319_v20 }
 0x254   : > { %11058 = vst [vmem:[#allocation59_spill] sm:$0xff] %v9326_v10  ;;  %v2756_v12 = vshrl.u32 %v11041_v57, 16  ;;  %v2766_v26 = vadd.s32 %v2764_v49, %v2762_v58  ;;  %v10558_v16 = vxor.u32 2147483648, %v9326_v10  ;;  %v9339_v18 = vsel %vm9266_vm13, %v11030_v3, %v2645_v54 }
 0x255   : > { %v1087_v29 = vsel %vm1085_vm10, %v1086_v19, %v9321_v37  ;;  %v2736_v51 = vshrl.u32 %v9237_v33, 16  ;;  %v2650_v36 = vmul.f32 %v9339_v18, %v9339_v18  ;;  %v2758_v15 = vshrl.u32 %v9290_v28, 16 }
 0x256   : > { %v1088_v0 = vclz %v1087_v29  ;;  %v2767_v61 = vadd.s32 %v2766_v26, %v2756_v12  ;;  %v3444_v57 = vsel %vm3442_vm1, %v9315_v17, %v10558_v16  ;;  %v3447_v56 = vsel %vm3445_vm7, %v10557_v42, %v9326_v10 }
 0x257   : > { %v9356_v33 = vadd.s32 %v2745_v63, %v2736_v51  ;;  %v11061_v40 = vand.u32 65535, %v11060_v31  ;;  %v3448_v28 = vsel %vm3441_vm14, %v3444_v57, %v3447_v56  ;;  %v2651_v6 = vmul.f32 -0.001358992, %v2650_v36 }
 0x258   : > { %v2658_v58 = vmul.f32 -0.00019511016, %v2650_v36  ;;  %v6448_v27 = vadd.s32 4294967294, %v1088_v0  ;;  %v10560_v32 = vshrl.u32 %v9241_v9, 16  ;;  %v3449_v49 = vsel %vm10582_vm9, nan, %v3448_v28  ;;  %v11064_v28 = vld [vmem:[#allocation158_spill] sm:$0xff] }
 0x259   : > { %v9361_v35 = vmul.u32 %v11061_v40, %v11059_v55  ;;  %v9368_v19 = vand.u32 3, %v5144_v4  ;;  %v9370_v63 = vadd.s32 %v2761_v11, %v2757_v2  ;;  %6534 = vmatmul.msk.f32.gmra.mxu0 %vm5326_vm4, %v3449_v49  ;;  %v2652_v54 = vadd.f32 0.041655596, %v2651_v6  ;;  %v11062_v11 = vld [vmem:[#allocation31_spill] sm:$0xff] }
 0x25a   : > { %v2659_v12 = vadd.f32 0.008332121, %v2658_v58  ;;  %vm6449_vm10 = vcmp.lt.s32.totalorder %v6448_v27, 0  ;;  %v2768_v26 = vadd.s32 %v2767_v61, %v2758_v15  ;;  %v1076_v59 = vadd.s32 %v9232_v5, %v9230_v45  ;;  %v11063_v45 = vld [vmem:[#allocation160_spill] sm:$0xff] }
 0x25b   : > { %v1091_v29 = vsel %vm6449_vm10, 0, %v6448_v27  ;;  %v1195_v51 = vshll.u32 %v9361_v35, 16  ;;  %v1198_v0 = vsel %vm9308_vm0, 1, %v10778_v23  ;;  %v2653_v4 = vmul.f32 %v2652_v54, %v2650_v36 }
 0x25c   : > { %v2660_v57 = vmul.f32 %v2659_v12, %v2650_v36  ;;  %v1092_v2 = vsub.s32 32, %v1091_v29  ;;  %vm2771_vm7 = vc.u32 %v9356_v33, %v9370_v63  ;;  %vm984_vm6 = vcmp.lt.s32.totalorder %v11062_v11, 0 }
 0x25d   : > { %v1093_v15 = vshll.u32 %v9321_v37, %v1091_v29  ;;  %v1096_v61 = vsub.s32 4294967266, %v1091_v29  ;;  %v2772_v56 = vadd.s32 1, %v2768_v26  ;;  %vm1201_vm13 = vc.u32 %v11063_v45, %v1195_v51  ;;  %v11065_v29 = vld [vmem:[#allocation99_spill] sm:$0xff]  ;;  %v11066_v51 = vld [vmem:[#allocation116_spill] sm:$0xff] }
 0x25e   : > { %v2654_v5 = vadd.f32 -0.4999988, %v2653_v4  ;;  %v2661_v31 = vadd.f32 -0.16666654, %v2660_v57  ;;  %v1094_v40 = vshrl.u32 %v1076_v59, %v1092_v2  ;;  %v1200_v24 = vadd.s32 %v1198_v0, %v11064_v28  ;;  %v11068_v0 = vld [vmem:[#allocation147_spill] sm:$0xff]  ;;  %v11069_v2 = vld [vmem:[#allocation146_spill] sm:$0xff] }
 0x25f   : > { %vm5147_vm14 = vcmp.eq.s32.totalorder %v9368_v19, 0  ;;  %v1097_v6 = vadd.s32 127, %v1096_v61  ;;  %v1106_v58 = vsub.s32 4, %v9298_v44  ;;  %v2773_v27 = vsel %vm2771_vm7, %v2772_v56, %v2768_v26 }
 0x260   : > { %v1202_v49 = vsel %vm1201_vm13, 1, %v10778_v23  ;;  %v2655_v54 = vmul.f32 %v2654_v5, %v2650_v36  ;;  %v2662_v12 = vmul.f32 %v2661_v31, %v2650_v36  ;;  %vm5146_vm1 = vcmp.lt.s32.totalorder %v9368_v19, 2  ;;  %v11072_v5 = vld [vmem:[#allocation155_spill] sm:$0xff] }
 0x261   : > { %v1095_v37 = vor.u32 %v1094_v40, %v1093_v15  ;;  %v11067_v4 = vmul.u32 %v11065_v29, %v11066_v51  ;;  %vm10568_vm0 = vweird.f32 %v11030_v3  ;;  %v1098_v59 = vshll.u32 %v1097_v6, 23 }
 0x262   : > { %v11070_v61 = vand.u32 65535, %v11069_v2  ;;  %v1215_v36 = vshll.u32 %v11072_v5, 16  ;;  %v9400_v31 = vadd.f32 1.0, %v2655_v54  ;;  %v2663_v15 = vadd.f32 1.0, %v2662_v12 }
 0x263   : > { %v2774_v57 = vadd.s32 %v2773_v27, %v11067_v4  ;;  %v11074_v40 = vand.u32 2147483647, %v11062_v11  ;;  %v1204_v27 = vadd.s32 %v1202_v49, %v1200_v24  ;;  %vm5150_vm10 = vcmp.eq.s32.totalorder %v9368_v19, 2 }
 0x264   : > { %v1211_v45 = vmul.u32 %v11070_v61, %v11068_v0  ;;  %v11071_v26 = vmov %v11070_v61  ;;  %11073 = vst [vmem:[#allocation120_spill] sm:$0xff] %v9400_v31  ;;  %v1099_v29 = vor.u32 4788187, %v1098_v59  ;;  %v1102_v51 = vcvt.s32.f32 %v1095_v37 }
 0x265   : > { %v1213_v56 = vmul.u32 %v11071_v26, %v11059_v55  ;;  %vm9404_vm2 = vcmp.le.f32.partialorder %v11074_v40, 0.7853982  ;;  %v2775_v6 = vadd.s32 536870912, %v2774_v57  ;;  %v1194_v4 = vshrl.u32 %v11050_v8, 16 }
 0x266   : > { %v9411_v55 = vmul.f32 %v2663_v15, %v9339_v18  ;;  %v10555_v54 = vxor.u32 2147483648, %v9400_v31  ;;  %vm1219_vm7 = vc.u32 %v1211_v45, %v1215_v36  ;;  %v1100_v0 = vand.u32 2147483647, %v1099_v29  ;;  %v11078_v15 = vld [vmem:[#allocation159_spill] sm:$0xff] }
 0x267   : > { %v9414_v12 = vshrl.u32 %v2775_v6, 30  ;;  %v1217_v2 = vshll.u32 %v1213_v56, 16  ;;  %v1220_v61 = vsel %vm1219_vm7, 1, %v10778_v23  ;;  %v1221_v26 = vadd.s32 %v1215_v36, %v1211_v45 }
 0x268   : > { %11077 = vst [vmem:[#allocation124_spill] sm:$0xff] %v9411_v55  ;;  %v10556_v24 = vxor.u32 2147483648, %v9411_v55  ;;  %v1107_v49 = vsel %vm984_vm6, %v1106_v58, %v9298_v44  ;;  %v1205_v18 = vadd.s32 %v1204_v27, %v1194_v4  ;;  %v1103_v37 = vmul.f32 %v1102_v51, %v1100_v0 }
 0x269   : > { %v2777_v8 = vshll.u32 %v9414_v12, 30  ;;  %v1196_v59 = vshrl.u32 %v9361_v35, 16  ;;  %v1222_v40 = vadd.s32 %v1220_v61, %v11078_v15  ;;  %vm1223_vm13 = vc.u32 %v1221_v26, %v1217_v2  ;;  %v11080_v61 = vld [vmem:[#allocation102_spill] sm:$0xff] }
 0x26a   : > { %v5149_v45 = vsel %vm5147_vm14, %v9400_v31, %v10556_v24  ;;  %v5152_v44 = vsel %vm5150_vm10, %v10555_v54, %v9411_v55  ;;  %v1224_v36 = vsel %vm1223_vm13, 1, %v10778_v23  ;;  %v1104_v6 = vxor.u32 2147483648, %v1103_v37  ;;  %v11088_v54 = vld [vmem:[#allocation76_spill] sm:$0xff] }
 0x26b   : > { %v9434_v58 = vsub.s32 %v2774_v57, %v2777_v8  ;;  %v5153_v35 = vsel %vm5146_vm1, %v5149_v45, %v5152_v44  ;;  %v1216_v27 = vshrl.u32 %v11072_v5, 16  ;;  %v1226_v29 = vadd.s32 %v1224_v36, %v1222_v40 }
 0x26c   : > { %v5154_v51 = vsel %vm10568_vm0, nan, %v5153_v35  ;;  %v9444_v0 = vadd.s32 %v1205_v18, %v1196_v59  ;;  %v11079_v57 = vshll.u32 %v11029_v48, 16  ;;  %v1105_v19 = vsel %vm984_vm6, %v1104_v6, %v1103_v37 }
 0x26d   : > { %vm2779_vm14 = vcmp.lt.s32.totalorder %v9434_v58, 0  ;;  %v2780_v4 = vsub.s32 0, %v9434_v58  ;;  %6545 = vmatmul.msk.f32.gmra.mxu1 %vm5326_vm4, %v5154_v51  ;;  %v9458_v5 = vsel %vm9404_vm2, 0, %v1107_v49  ;;  %v1218_v15 = vshrl.u32 %v1213_v56, 16 }
 0x26e   : > { %vm9449_vm10 = vc.u32 %v11080_v61, %v11079_v57  ;;  %v1227_v40 = vadd.s32 %v1226_v29, %v1216_v27  ;;  %v10559_v18 = vand.u32 65535, %v9241_v9  ;;  %v1108_v59 = vsel %vm9404_vm2, %v11062_v11, %v1105_v19 }
 0x26f   : > { %v2781_v45 = vsel %vm2779_vm14, %v2780_v4, %v9434_v58  ;;  %v9465_v44 = vadd.s32 %v1221_v26, %v1217_v2  ;;  %v11083_v36 = vmov %v11079_v57  ;;  %v1110_v35 = vmul.f32 %v1108_v59, %v1108_v59 }
 0x270   : > { %v1353_v37 = vadd.s32 %v11083_v36, %v11080_v61  ;;  %v2782_v6 = vclz %v2781_v45  ;;  %v1228_v49 = vadd.s32 %v1227_v40, %v1218_v15  ;;  %v9471_v56 = vshrl.u32 %v11034_v30, 16  ;;  %v11085_v15 = vld [vmem:[#allocation162_spill] sm:$0xff]  ;;  %v11086_v40 = vld [vmem:[#allocation100_spill] sm:$0xff] }
 0x271   : > { %v9476_v27 = vmul.u32 %v10560_v32, %v9244_v41  ;;  %v3594_v28 = vadd.s32 3, %v9458_v5  ;;  %vm1231_vm6 = vc.u32 %v9444_v0, %v9465_v44  ;;  %v1111_v2 = vmul.f32 -0.001358992, %v1110_v35  ;;  %v11089_v32 = vld [vmem:[#allocation140_spill] sm:$0xff] }
 0x272   : > { %v1118_v26 = vmul.f32 -0.00019511016, %v1110_v35  ;;  %v6481_v29 = vadd.s32 4294967294, %v2782_v6  ;;  %v1232_v51 = vadd.s32 1, %v1228_v49  ;;  %v9484_v4 = vmul.u32 %v10559_v18, %v9244_v41 }
 0x273   : > { %v11084_v61 = vshrl.u32 %v9226_v53, 16  ;;  %v11087_v45 = vand.u32 65535, %v11086_v40  ;;  %vm2678_vm1 = vcmp.lt.s32.totalorder %v11088_v54, 0  ;;  %v1112_v6 = vadd.f32 0.041655596, %v1111_v2 }
 0x274   : > { %v1119_v24 = vadd.f32 0.008332121, %v1118_v26  ;;  %vm6482_vm2 = vcmp.lt.s32.totalorder %v6481_v29, 0  ;;  %v1233_v42 = vsel %vm1231_vm6, %v1232_v51, %v1228_v49  ;;  %v2770_v57 = vadd.s32 %v9370_v63, %v9356_v33 }
 0x275   : > { %v9490_v19 = vmul.u32 %v11084_v61, %v9244_v41  ;;  %v9495_v36 = vmul.u32 %v11087_v45, %v11085_v15  ;;  %v2785_v18 = vsel %vm6482_vm2, 0, %v6481_v29  ;;  %v11090_v61 = vld [vmem:[#allocation150_spill] sm:$0xff]  ;;  %v1113_v55 = vmul.f32 %v1112_v6, %v1110_v35 }
 0x276   : > { %v11091_v3 = vmul.u32 %v11089_v32, %v11090_v61  ;;  %v1120_v40 = vmul.f32 %v1119_v24, %v1110_v35  ;;  %v3595_v45 = vand.u32 3, %v3594_v28  ;;  %v2786_v20 = vsub.s32 32, %v2785_v18 }
 0x277   : > { %v11092_v60 = vand.u32 2147483647, %v11088_v54  ;;  %v2790_v49 = vsub.s32 4294967266, %v2785_v18  ;;  %v2800_v26 = vsub.s32 4, %v9414_v12  ;;  %v1114_v33 = vadd.f32 -0.4999988, %v1113_v55 }
 0x278   : > { %v1234_v31 = vadd.s32 %v1233_v42, %v11091_v3  ;;  %v1121_v63 = vadd.f32 -0.16666654, %v1120_v40  ;;  %v2788_v29 = vshrl.u32 %v2770_v57, %v2786_v20  ;;  %v1349_v32 = vshll.u32 %v9495_v36, 16 }
 0x279   : > { %vm9506_vm7 = vcmp.le.f32.partialorder %v11092_v60, 0.7853982  ;;  %v2787_v3 = vshll.u32 %v9434_v58, %v2785_v18  ;;  %v2791_v42 = vadd.s32 127, %v2790_v49  ;;  %v1352_v60 = vsel %vm9449_vm10, 1, %v10778_v23  ;;  %v5310_v58 = vld [vmem:[#allocation2] sm:$0xff]  ;;  %v11096_v18 = vld [vmem:[#allocation90_spill] sm:$0xff] }
 0x27a   : > { %v1235_v51 = vadd.s32 536870912, %v1234_v31  ;;  %v1115_v28 = vmul.f32 %v1114_v33, %v1110_v35  ;;  %v1122_v6 = vmul.f32 %v1121_v63, %v1110_v35  ;;  %vm3596_vm13 = vcmp.lt.s32.totalorder %v3595_v45, 2  ;;  %5503 = vmatpush.msrb.mxu1 %v5310_v58 }
 0x27b   : > { %vm1355_vm14 = vc.u32 %v1353_v37, %v1349_v32  ;;  %vm3597_vm6 = vcmp.eq.s32.totalorder %v3595_v45, 0  ;;  %v2789_v61 = vor.u32 %v2788_v29, %v2787_v3  ;;  %v2792_v55 = vshll.u32 %v2791_v42, 23  ;;  %v11098_v29 = vld [vmem:[#allocation166_spill] sm:$0xff]  ;;  %v11100_v42 = vld [vmem:[#allocation103_spill] sm:$0xff] }
 0x27c   : > { %v9513_v24 = vshrl.u32 %v1235_v51, 30  ;;  %v9519_v57 = vadd.f32 1.0, %v1115_v28  ;;  %v1123_v40 = vadd.f32 1.0, %v1122_v6  ;;  %vm3600_vm2 = vcmp.eq.s32.totalorder %v3595_v45, 2  ;;  %v11105_v45 = vld [vmem:[#allocation115_spill] sm:$0xff] }
 0x27d   : > { %v1354_v49 = vadd.s32 %v1352_v60, %v11096_v18  ;;  %v2793_v51 = vor.u32 4788187, %v2792_v55  ;;  %v2801_v8 = vsel %vm2678_vm1, %v2800_v26, %v9414_v12  ;;  %v1356_v37 = vsel %vm1355_vm14, 1, %v10778_v23  ;;  %v11102_v55 = vld [vmem:[#allocation161_spill] sm:$0xff] }
 0x27e   : > { %v1237_v20 = vshll.u32 %v9513_v24, 30  ;;  %11095 = vst [vmem:[#allocation62_spill] sm:$0xff] %v9519_v57  ;;  %v9528_v33 = vmul.f32 %v1123_v40, %v1108_v59  ;;  %v10569_v63 = vxor.u32 2147483648, %v9519_v57  ;;  %v11099_v32 = vand.u32 65535, %v11098_v29 }
 0x27f   : > { %v1369_v60 = vshll.u32 %v11100_v42, 16  ;;  %v2794_v28 = vand.u32 2147483647, %v2793_v51  ;;  %v2796_v6 = vcvt.s32.f32 %v2789_v61  ;;  %v9540_v59 = vsel %vm9506_vm7, 0, %v2801_v8 }
 0x280   : > { %v9525_v35 = vsub.s32 %v1234_v31, %v1237_v20  ;;  %11097 = vst [vmem:[#allocation58_spill] sm:$0xff] %v9528_v33  ;;  %v1367_v3 = vmul.u32 %v11099_v32, %v11085_v15  ;;  %v10570_v31 = vxor.u32 2147483648, %v9528_v33  ;;  %v1358_v26 = vadd.s32 %v1356_v37, %v1354_v49 }
 0x281   : > { %11101 = vst [vmem:[#allocation60_spill] sm:$0xff] %v9540_v59  ;;  %v11103_v20 = vmov %v11099_v32  ;;  %v3602_v15 = vsel %vm3600_vm2, %v10569_v63, %v9528_v33  ;;  %v2797_v61 = vmul.f32 %v2796_v6, %v2794_v28  ;;  %v1348_v18 = vshrl.u32 %v11029_v48, 16 }
 0x282   : > { %vm1239_vm10 = vcmp.lt.s32.totalorder %v9525_v35, 0  ;;  %v1240_v12 = vsub.s32 0, %v9525_v35  ;;  %v1365_v40 = vmul.u32 %v11103_v20, %v11102_v55  ;;  %v3599_v51 = vsel %vm3597_vm6, %v9519_v57, %v10570_v31  ;;  %v11104_v20 = vld [vmem:[#allocation130_spill] sm:$0xff] }
 0x283   : > { %vm10581_vm0 = vweird.f32 %v11062_v11  ;;  %v3603_v37 = vsel %vm3596_vm13, %v3599_v51, %v3602_v15  ;;  %v2798_v29 = vxor.u32 2147483648, %v2797_v61  ;;  %v1371_v32 = vshll.u32 %v1367_v3, 16 }
 0x284   : > { %v1241_v58 = vsel %vm1239_vm10, %v1240_v12, %v9525_v35  ;;  %vm1373_vm14 = vc.u32 %v1365_v40, %v1369_v60  ;;  %v1375_v8 = vadd.s32 %v1369_v60, %v1365_v40  ;;  %v3604_v28 = vsel %vm10581_vm0, nan, %v3603_v37 }
 0x285   : > { %v1242_v49 = vclz %v1241_v58  ;;  %v1359_v12 = vadd.s32 %v1358_v26, %v1348_v18  ;;  %v1374_v48 = vsel %vm1373_vm14, 1, %v10778_v23  ;;  %6535 = vmatmul.msk.f32.gmra.mxu0 %vm5326_vm4, %v3604_v28  ;;  %v2799_v55 = vsel %vm2678_vm1, %v2798_v29, %v2797_v61  ;;  %v11106_v18 = vld [vmem:[#allocation109_spill] sm:$0xff]  ;;  %v11108_v61 = vld [vmem:[#allocation107_spill] sm:$0xff] }
 0x286   : > { %v5299_v60 = vadd.s32 3, %v9540_v59  ;;  %v1376_v40 = vadd.s32 %v1374_v48, %v11104_v20  ;;  %vm1377_vm6 = vc.u32 %v1375_v8, %v1371_v32  ;;  %vm1138_vm13 = vcmp.lt.s32.totalorder %v11105_v45, 0 }
 0x287   : > { %v6451_v6 = vadd.s32 4294967294, %v1242_v49  ;;  %v9569_v15 = vsel %vm9506_vm7, %v11088_v54, %v2799_v55  ;;  %v1350_v26 = vshrl.u32 %v9495_v36, 16  ;;  %v1378_v58 = vsel %vm1377_vm6, 1, %v10778_v23 }
 0x288   : > { %v11107_v51 = vshll.u32 %v11106_v18, 16  ;;  %v2804_v37 = vmul.f32 %v9569_v15, %v9569_v15  ;;  %v1370_v2 = vshrl.u32 %v11100_v42, 16  ;;  %v1380_v28 = vadd.s32 %v1378_v58, %v1376_v40 }
 0x289   : > { %vm6452_vm2 = vcmp.lt.s32.totalorder %v6451_v6, 0  ;;  %v1230_v48 = vadd.s32 %v9465_v44, %v9444_v0  ;;  %v9585_v20 = vadd.s32 %v1359_v12, %v1350_v26  ;;  %v9589_v40 = vadd.s32 %v1375_v8, %v1371_v32  ;;  %v11111_v12 = vld [vmem:[#allocation96_spill] sm:$0xff]  ;;  %v11112_v26 = vld [vmem:[#allocation98_spill] sm:$0xff] }
 0x28a   : > { %vm9576_vm1 = vc.u32 %v11108_v61, %v11107_v51  ;;  %v1245_v29 = vsel %vm6452_vm2, 0, %v6451_v6  ;;  %v2805_v63 = vmul.f32 -0.001358992, %v2804_v37  ;;  %v2812_v31 = vmul.f32 -0.00019511016, %v2804_v37 }
 0x28b   : > { %v1246_v36 = vsub.s32 32, %v1245_v29  ;;  %v1250_v55 = vsub.s32 4294967266, %v1245_v29  ;;  %v1372_v51 = vshrl.u32 %v1367_v3, 16  ;;  %v1381_v61 = vadd.s32 %v1380_v28, %v1370_v2 }
 0x28c   : > { %v1247_v16 = vshll.u32 %v9525_v35, %v1245_v29  ;;  %v1260_v6 = vsub.s32 4, %v9513_v24  ;;  %v2806_v57 = vadd.f32 0.041655596, %v2805_v63  ;;  %v2813_v42 = vadd.f32 0.008332121, %v2812_v31 }
 0x28d   : > { %v1248_v59 = vshrl.u32 %v1230_v48, %v1246_v36  ;;  %v1251_v11 = vadd.s32 127, %v1250_v55  ;;  %v1382_v58 = vadd.s32 %v1381_v61, %v1372_v51  ;;  %v5300_v0 = vand.u32 3, %v5299_v60  ;;  %v11119_v51 = vld [vmem:[#allocation156_spill] sm:$0xff] }
 0x28e   : > { %v11113_v17 = vand.u32 65535, %v11112_v26  ;;  %v11114_v35 = vshrl.u32 %v9241_v9, 16  ;;  %v2807_v29 = vmul.f32 %v2806_v57, %v2804_v37  ;;  %v2814_v2 = vmul.f32 %v2813_v42, %v2804_v37  ;;  %v11120_v61 = vld [vmem:[#allocation164_spill] sm:$0xff] }
 0x28f   : > { %v1249_v44 = vor.u32 %v1248_v59, %v1247_v16  ;;  %v1252_v33 = vshll.u32 %v1251_v11, 23  ;;  %vm1385_vm7 = vc.u32 %v9585_v20, %v9589_v40  ;;  %v11115_v63 = vshll.u32 %v9476_v27, 16 }
 0x290   : > { %v9594_v10 = vmul.u32 %v11113_v17, %v11111_v12  ;;  %v9599_v3 = vmul.u32 %v11114_v35, %v9471_v56  ;;  %v9609_v31 = vand.u32 3, %v8477_v7  ;;  %v1386_v17 = vadd.s32 1, %v1382_v58 }
 0x291   : > { %v9606_v16 = vadd.s32 %v11115_v63, %v9484_v4  ;;  %v1253_v11 = vor.u32 4788187, %v1252_v33  ;;  %v2808_v59 = vadd.f32 -0.4999988, %v2807_v29  ;;  %v2815_v8 = vadd.f32 -0.16666654, %v2814_v2 }
 0x292   : > { %v11116_v32 = vand.u32 2147483647, %v11105_v45  ;;  %v1261_v60 = vsel %vm1138_vm13, %v1260_v6, %v9513_v24  ;;  %vm5302_vm14 = vcmp.eq.s32.totalorder %v5300_v0, 0  ;;  %v1256_v48 = vcvt.s32.f32 %v1249_v44  ;;  %v11122_v29 = vld [vmem:[#allocation121_spill] sm:$0xff]  ;;  %v11123_v63 = vld [vmem:[#allocation95_spill] sm:$0xff] }
 0x293   : > { %v1254_v28 = vand.u32 2147483647, %v1253_v11  ;;  %v1387_v33 = vsel %vm1385_vm7, %v1386_v17, %v1382_v58  ;;  %v1503_v7 = vshll.u32 %v9594_v10, 16  ;;  %v2809_v36 = vmul.f32 %v2808_v59, %v2804_v37  ;;  %v11124_v11 = vld [vmem:[#allocation101_spill] sm:$0xff] }
 0x294   : > { %vm9613_vm10 = vcmp.le.f32.partialorder %v11116_v32, 0.7853982  ;;  %v2816_v55 = vmul.f32 %v2815_v8, %v2804_v37  ;;  %vm5301_vm6 = vcmp.lt.s32.totalorder %v5300_v0, 2  ;;  %vm5305_vm2 = vcmp.eq.s32.totalorder %v5300_v0, 2  ;;  %v11126_v8 = vld [vmem:[#allocation111_spill] sm:$0xff] }
 0x295   : > { %v11121_v42 = vmul.u32 %v11119_v51, %v11120_v61  ;;  %vm2819_vm0 = vweird.f32 %v11088_v54  ;;  %v1257_v35 = vmul.f32 %v1256_v48, %v1254_v28  ;;  %v9627_v24 = vsel %vm9613_vm10, 0, %v1261_v60  ;;  %v11127_v48 = vld [vmem:[#allocation110_spill] sm:$0xff] }
 0x296   : > { %vm512_vm9 = vcmp.eq.s32.totalorder %v9609_v31, 0  ;;  %v1506_v6 = vsel %vm9576_vm1, 1, %v10778_v23  ;;  %v9633_v37 = vadd.f32 1.0, %v2809_v36  ;;  %v2817_v58 = vadd.f32 1.0, %v2816_v55 }
 0x297   : > { %v1388_v26 = vadd.s32 %v1387_v33, %v11121_v42  ;;  %vm1509_vm7 = vc.u32 %v11122_v29, %v1503_v7  ;;  %v1258_v2 = vxor.u32 2147483648, %v1257_v35  ;;  %vm511_vm8 = vcmp.lt.s32.totalorder %v9609_v31, 2 }
 0x298   : > { %vm515_vm5 = vcmp.eq.s32.totalorder %v9609_v31, 2  ;;  %v11125_v17 = vand.u32 65535, %v11124_v11  ;;  %v1523_v32 = vshll.u32 %v11126_v8, 16  ;;  %v9643_v49 = vmul.f32 %v2817_v58, %v9569_v15 }
 0x299   : > { %v1389_v44 = vadd.s32 536870912, %v1388_v26  ;;  %v10585_v60 = vxor.u32 2147483648, %v9633_v37  ;;  %v1508_v33 = vadd.s32 %v1506_v6, %v11127_v48  ;;  %v1259_v7 = vsel %vm1138_vm13, %v1258_v2, %v1257_v35 }
 0x29a   : > { %v1519_v59 = vmul.u32 %v11125_v17, %v11123_v63  ;;  %v3749_v36 = vadd.s32 3, %v9627_v24  ;;  %v1510_v55 = vsel %vm1509_vm7, 1, %v10778_v23  ;;  %v11128_v51 = vmov %v11125_v17 }
 0x29b   : > { %v9646_v28 = vshrl.u32 %v1389_v44, 30  ;;  %v9656_v61 = vmul.u32 %v11128_v51, %v11111_v12  ;;  %v10586_v15 = vxor.u32 2147483648, %v9643_v49  ;;  %v9662_v42 = vsel %vm9613_vm10, %v11105_v45, %v1259_v7 }
 0x29c   : > { %v9666_v35 = vand.u32 3, %v8778_v52  ;;  %v1264_v58 = vmul.f32 %v9662_v42, %v9662_v42  ;;  %v11129_v44 = vxor.u32 2147483648, %v8595_v38  ;;  %v1502_v29 = vshrl.u32 %v11106_v18, 16 }
 0x29d   : > { %v1391_v6 = vshll.u32 %v9646_v28, 30  ;;  %vm1527_vm13 = vc.u32 %v1519_v59, %v1523_v32  ;;  %v5304_v57 = vsel %vm5302_vm14, %v9633_v37, %v10586_v15  ;;  %v5307_v52 = vsel %vm5305_vm2, %v10585_v60, %v9643_v49 }
 0x29e   : > { %v514_v12 = vsel %vm512_vm9, %v8587_v1, %v11129_v44  ;;  %v1512_v63 = vadd.s32 %v1510_v55, %v1508_v33  ;;  %v5308_v11 = vsel %vm5301_vm6, %v5304_v57, %v5307_v52  ;;  %v1265_v17 = vmul.f32 -0.001358992, %v1264_v58 }
 0x29f   : > { %v9684_v2 = vsub.s32 %v1388_v26, %v1391_v6  ;;  %v1272_v48 = vmul.f32 -0.00019511016, %v1264_v58  ;;  %v1525_v18 = vshll.u32 %v9656_v61, 16  ;;  %v5309_v7 = vsel %vm2819_vm0, nan, %v5308_v11 }
 0x2a0   : > { %v1528_v44 = vsel %vm1527_vm13, 1, %v10778_v23  ;;  %v11130_v60 = vshll.u32 %v9476_v27, 16  ;;  %6546 = vmatmul.msk.f32.gmra.mxu1 %vm5326_vm4, %v5309_v7  ;;  %v1266_v0 = vadd.f32 0.041655596, %v1265_v17  ;;  %v9701_v55 = vand.u32 3, %v3749_v36  ;;  %v11134_v36 = vld [vmem:[#allocation112_spill] sm:$0xff] }
 0x2a1   : > { %vm1393_vm9 = vcmp.lt.s32.totalorder %v9684_v2, 0  ;;  %v1394_v51 = vsub.s32 0, %v9684_v2  ;;  %v1273_v33 = vadd.f32 0.008332121, %v1272_v48  ;;  %v11133_v6 = vxor.u32 2147483648, %v8587_v1 }
 0x2a2   : > { %vm9696_vm1 = vc.u32 %v9484_v4, %v11130_v60  ;;  %v1384_v4 = vadd.s32 %v9589_v40, %v9585_v20  ;;  %v1529_v11 = vadd.s32 %v1523_v32, %v1519_v59  ;;  %v1267_v7 = vmul.f32 %v1266_v0, %v1264_v58 }
 0x2a3   : > { %v517_v57 = vsel %vm515_vm5, %v11133_v6, %v8595_v38  ;;  %v1395_v60 = vsel %vm1393_vm9, %v1394_v51, %v9684_v2  ;;  %v1274_v17 = vmul.f32 %v1273_v33, %v1264_v58  ;;  %v1530_v15 = vadd.s32 %v1528_v44, %v11134_v36 }
 0x2a4   : > { %v518_v52 = vsel %vm511_vm8, %v514_v12, %v517_v57  ;;  %v1396_v48 = vclz %v1395_v60  ;;  %vm665_vm10 = vcmp.lt.s32.totalorder %v9666_v35, 2  ;;  %vm666_vm14 = vcmp.eq.s32.totalorder %v9666_v35, 0 }
 0x2a5   : > { %v1504_v1 = vshrl.u32 %v9594_v10, 16  ;;  %v1513_v38 = vadd.s32 %v1512_v63, %v1502_v29  ;;  %vm1531_vm5 = vc.u32 %v1529_v11, %v1525_v18  ;;  %v1268_v31 = vadd.f32 -0.4999988, %v1267_v7 }
 0x2a6   : > { %v1275_v12 = vadd.f32 -0.16666654, %v1274_v17  ;;  %v6454_v6 = vadd.s32 4294967294, %v1396_v48  ;;  %vm669_vm8 = vcmp.eq.s32.totalorder %v9666_v35, 2  ;;  %vm3752_vm6 = vcmp.eq.s32.totalorder %v9701_v55, 0 }
 0x2a7   : > { %v519_v20 = vsel %vm509_vm15, nan, %v518_v52  ;;  %v1524_v40 = vshrl.u32 %v11126_v8, 16  ;;  %v1526_v59 = vshrl.u32 %v9656_v61, 16  ;;  %v1532_v32 = vsel %vm1531_vm5, 1, %v10778_v23 }
 0x2a8   : > { %v1269_v51 = vmul.f32 %v1268_v31, %v1264_v58  ;;  %v1276_v10 = vmul.f32 %v1275_v12, %v1264_v58  ;;  %vm6455_vm2 = vcmp.lt.s32.totalorder %v6454_v6, 0  ;;  %v1534_v29 = vadd.s32 %v1532_v32, %v1530_v15  ;;  %6547 = vmatmul.msk.f32.vlgmr.msrb.gmra.mxu1 %vm5326_vm4, %v519_v20 }
 0x2a9   : > { %vm1279_vm7 = vweird.f32 %v11105_v45  ;;  %v1399_v63 = vsel %vm6455_vm2, 0, %v6454_v6  ;;  %v11135_v44 = vxor.u32 2147483648, %v8859_v22  ;;  %v9728_v33 = vadd.s32 %v1513_v38, %v1504_v1 }
 0x2aa   : > { %v11136_v13 = vand.u32 65535, %v9241_v9  ;;  %v9735_v61 = vadd.f32 1.0, %v1269_v51  ;;  %v1277_v57 = vadd.f32 1.0, %v1276_v10  ;;  %v1400_v15 = vsub.s32 32, %v1399_v63  ;;  %v11139_v51 = vld [vmem:[#allocation97_spill] sm:$0xff] }
 0x2ab   : > { %v671_v0 = vsel %vm669_vm8, %v11135_v44, %v8880_v46  ;;  %v9738_v58 = vadd.s32 %v1529_v11, %v1525_v18  ;;  %v1404_v52 = vsub.s32 4294967266, %v1399_v63  ;;  %v11137_v60 = vxor.u32 2147483648, %v8880_v46 }
 0x2ac   : > { %v9733_v8 = vmul.u32 %v11136_v13, %v9471_v56  ;;  %v1535_v17 = vadd.s32 %v1534_v29, %v1524_v40  ;;  %v9747_v48 = vmul.f32 %v1277_v57, %v9662_v42  ;;  %v1286_v36 = vxor.u32 2147483648, %v9735_v61  ;;  %v11142_v57 = vld [vmem:[#allocation135_spill] sm:$0xff] }
 0x2ad   : > { %v668_v7 = vsel %vm666_vm14, %v8859_v22, %v11137_v60  ;;  %v1401_v1 = vshll.u32 %v9684_v2, %v1399_v63  ;;  %v1402_v38 = vshrl.u32 %v1384_v4, %v1400_v15  ;;  %v1405_v18 = vadd.s32 127, %v1404_v52 }
 0x2ae   : > { %v1657_v9 = vshll.u32 %v9733_v8, 16  ;;  %v1536_v11 = vadd.s32 %v1535_v17, %v1526_v59  ;;  %v1660_v46 = vsel %vm9696_vm1, 1, %v10778_v23  ;;  %v1283_v22 = vxor.u32 2147483648, %v9747_v48 }
 0x2af   : > { %v1403_v31 = vor.u32 %v1402_v38, %v1401_v1  ;;  %v672_v42 = vsel %vm665_vm10, %v668_v7, %v671_v0  ;;  %vm1539_vm13 = vc.u32 %v9728_v33, %v9738_v58  ;;  %vm3755_vm9 = vcmp.eq.s32.totalorder %v9701_v55, 2 }
 0x2b0   : > { %vm1663_vm15 = vc.u32 %v9606_v16, %v1657_v9  ;;  %v1406_v2 = vshll.u32 %v1405_v18, 23  ;;  %v1540_v4 = vadd.s32 1, %v1536_v11  ;;  %v1662_v12 = vadd.s32 %v1660_v46, %v9599_v3 }
 0x2b1   : > { %vm3751_vm14 = vcmp.lt.s32.totalorder %v9701_v55, 2  ;;  %v3754_v16 = vsel %vm3752_vm6, %v9735_v61, %v1283_v22  ;;  %v3757_v35 = vsel %vm3755_vm9, %v1286_v36, %v9747_v48  ;;  %v1664_v26 = vsel %vm1663_vm15, 1, %v10778_v23  ;;  %v11138_v55 = vld [vmem:[#allocation94_spill] sm:$0xff] }
 0x2b2   : > { %v3758_v6 = vsel %vm3751_vm14, %v3754_v16, %v3757_v35  ;;  %v1407_v20 = vor.u32 4788187, %v1406_v2  ;;  %v673_v40 = vsel %vm663_vm11, nan, %v672_v42  ;;  %v1541_v3 = vsel %vm1539_vm13, %v1540_v4, %v1536_v11 }
 0x2b3   : > { %v3759_v59 = vsel %vm1279_vm7, nan, %v3758_v6  ;;  %v1410_v32 = vcvt.s32.f32 %v1403_v31  ;;  %6548 = vmatmul.msk.f32.gmra.mxu1 %vm5326_vm4, %v673_v40  ;;  %v11140_v10 = vmul.u32 %v11138_v55, %v11139_v51  ;;  %v1666_v44 = vadd.s32 %v1664_v26, %v1662_v12 }
 0x2b4   : > { %6536 = vmatmul.msk.f32.gmra.mxu0 %vm5326_vm4, %v3759_v59  ;;  %v1408_v63 = vand.u32 2147483647, %v1407_v20  ;;  %v11141_v0 = vand.u32 65535, %v9226_v53  ;;  %v1677_v13 = vshll.u32 %v9490_v19, 16  ;;  %vm1292_vm11 = vcmp.lt.s32.totalorder %v11142_v57, 0 }
 0x2b5   : > { %v1542_v29 = vadd.s32 %v1541_v3, %v11140_v10  ;;  %v11143_v15 = vmov 683565275   ;;  %v11145_v9 = vshrl.u32 %v9226_v53, 16  ;;  %v1414_v18 = vsub.s32 4, %v9646_v28 }
 0x2b6   : > { %v1675_v14 = vmul.u32 %v11141_v0, %v9471_v56  ;;  %v1614_v52 = vshrl.u32 %v11143_v15, %v8259_v34  ;;  %v11144_v7 = vmov %v11141_v0  ;;  %v1411_v38 = vmul.f32 %v1410_v32, %v1408_v63 }
 0x2b7   : > { %v1543_v60 = vadd.s32 536870912, %v1542_v29  ;;  %v1673_v17 = vmul.u32 %v11144_v7, %v9244_v41  ;;  %v1676_v1 = vmul.u32 %v11145_v9, %v9471_v56  ;;  %v1656_v11 = vshrl.u32 %v9476_v27, 16 }
 0x2b8   : > { %v1679_v31 = vshll.u32 %v1675_v14, 16  ;;  %v1635_v34 = vsel %vm1633_vm12, %v8774_v62, 2102212464  ;;  %v1412_v2 = vxor.u32 2147483648, %v1411_v38  ;;  %v11146_v53 = vand.u32 2147483647, %v11142_v57 }
 0x2b9   : > { %v9796_v46 = vshrl.u32 %v1543_v60, 30  ;;  %vm1681_vm1 = vc.u32 %v1673_v17, %v1677_v13  ;;  %v1683_v42 = vadd.s32 %v1677_v13, %v1673_v17  ;;  %v1667_v41 = vadd.s32 %v1666_v44, %v1656_v11 }
 0x2ba   : > { %v1682_v4 = vsel %vm1681_vm1, 1, %v10778_v23  ;;  %vm9804_vm10 = vcmp.le.f32.partialorder %v11146_v53, 0.7853982  ;;  %v1413_v16 = vsel %vm1292_vm11, %v1412_v2, %v1411_v38  ;;  %v1415_v62 = vsel %vm1292_vm11, %v1414_v18, %v9646_v28 }
 0x2bb   : > { %v1545_v27 = vshll.u32 %v9796_v46, 30  ;;  %v1684_v12 = vadd.s32 %v1682_v4, %v1676_v1  ;;  %vm1685_vm5 = vc.u32 %v1683_v42, %v1679_v31  ;;  %v1658_v35 = vshrl.u32 %v9733_v8, 16 }
 0x2bc   : > { %v1686_v26 = vsel %vm1685_vm5, 1, %v10778_v23  ;;  %v1416_v6 = vsel %vm9804_vm10, %v11142_v57, %v1413_v16  ;;  %v1678_v40 = vshrl.u32 %v9490_v19, 16  ;;  %v1634_v59 = vsel %vm1630_vm3, %v1614_v52, %v8679_v25 }
 0x2bd   : > { %v1546_v20 = vsub.s32 %v1542_v29, %v1545_v27  ;;  %v1688_v3 = vadd.s32 %v1686_v26, %v1684_v12  ;;  %vm11149_vm12 = vcmp.lt.s32.totalorder %v11000_v21, 3  ;;  %v1418_v32 = vmul.f32 %v1416_v6, %v1416_v6 }
 0x2be   : > { %v1636_v28 = vsel %vm11149_vm12, %v8685_v43, %v1635_v34  ;;  %v9826_v8 = vadd.s32 %v1667_v41, %v1658_v35  ;;  %v1680_v55 = vshrl.u32 %v1675_v14, 16  ;;  %v9830_v10 = vsel %vm9804_vm10, 0, %v1415_v62 }
 0x2bf   : > { %vm1547_vm8 = vcmp.lt.s32.totalorder %v1546_v20, 0  ;;  %v1548_v23 = vsub.s32 0, %v1546_v20  ;;  %v1689_v51 = vadd.s32 %v1688_v3, %v1678_v40  ;;  %v1419_v19 = vmul.f32 -0.001358992, %v1418_v32 }
 0x2c0   : > { %v1426_v29 = vmul.f32 -0.00019511016, %v1418_v32  ;;  %v9832_v63 = vadd.s32 %v1683_v42, %v1679_v31  ;;  %vm11150_vm3 = vcmp.lt.s32.totalorder %v11000_v21, 2  ;;  %v3904_v14 = vadd.s32 3, %v9830_v10 }
 0x2c1   : > { %v1637_v25 = vsel %vm11150_vm3, %v1634_v59, %v1636_v28  ;;  %v1549_v44 = vsel %vm1547_vm8, %v1548_v23, %v1546_v20  ;;  %v1690_v43 = vadd.s32 %v1689_v51, %v1680_v55  ;;  %v1420_v0 = vadd.f32 0.041655596, %v1419_v19 }
 0x2c2   : > { %v1427_v13 = vadd.f32 0.008332121, %v1426_v29  ;;  %v1550_v15 = vclz %v1549_v44  ;;  %vm1693_vm6 = vc.u32 %v9826_v8, %v9832_v63  ;;  %v1691_v60 = vmul.u32 %v11034_v30, %v1637_v25 }
 0x2c3   : > { %v1694_v52 = vadd.s32 1, %v1690_v43  ;;  %v1421_v7 = vmul.f32 %v1420_v0, %v1418_v32  ;;  %v3905_v11 = vand.u32 3, %v3904_v14  ;;  %v1538_v2 = vadd.s32 %v9738_v58, %v9728_v33 }
 0x2c4   : > { %v1428_v17 = vmul.f32 %v1427_v13, %v1418_v32  ;;  %v6457_v9 = vadd.s32 4294967294, %v1550_v15  ;;  %v818_v53 = vand.u32 3, %v8903_v39  ;;  %vm1433_vm15 = vweird.f32 %v11142_v57 }
 0x2c5   : > { %v1695_v1 = vsel %vm1693_vm6, %v1694_v52, %v1690_v43  ;;  %v1422_v38 = vadd.f32 -0.4999988, %v1421_v7  ;;  %vm3906_vm13 = vcmp.lt.s32.totalorder %v3905_v11, 2  ;;  %vm3907_vm9 = vcmp.eq.s32.totalorder %v3905_v11, 0  ;;  %v11153_v43 = vld [vmem:[#allocation108_spill] sm:$0xff]  ;;  %v11155_v7 = vld [vmem:[#allocation65_spill] sm:$0xff] }
 0x2c6   : > { %v1429_v21 = vadd.f32 -0.16666654, %v1428_v17  ;;  %vm6458_vm2 = vcmp.lt.s32.totalorder %v6457_v9, 0  ;;  %v1696_v18 = vadd.s32 %v1695_v1, %v1691_v60  ;;  %vm820_vm14 = vcmp.eq.s32.totalorder %v818_v53, 0 }
 0x2c7   : > { %v1553_v31 = vsel %vm6458_vm2, 0, %v6457_v9  ;;  %v1423_v42 = vmul.f32 %v1422_v38, %v1418_v32  ;;  %vm3910_vm11 = vcmp.eq.s32.totalorder %v3905_v11, 2  ;;  %vm823_vm1 = vcmp.eq.s32.totalorder %v818_v53, 2 }
 0x2c8   : > { %v1430_v34 = vmul.f32 %v1429_v21, %v1418_v32  ;;  %v1554_v41 = vsub.s32 32, %v1553_v31  ;;  %v1558_v4 = vsub.s32 4294967266, %v1553_v31  ;;  %v1697_v30 = vadd.s32 536870912, %v1696_v18 }
 0x2c9   : > { %v9843_v56 = vadd.f32 1.0, %v1423_v42  ;;  %v1555_v12 = vshll.u32 %v1546_v20, %v1553_v31  ;;  %v11151_v20 = vxor.u32 2147483648, %v9055_v47  ;;  %vm819_vm10 = vcmp.lt.s32.totalorder %v818_v53, 2  ;;  %v11157_v42 = vld [vmem:[#allocation52_spill] sm:$0xff] }
 0x2ca   : > { %v1431_v27 = vadd.f32 1.0, %v1430_v34  ;;  %v1556_v16 = vshrl.u32 %v1538_v2, %v1554_v41  ;;  %v1559_v62 = vadd.s32 127, %v1558_v4  ;;  %v9846_v35 = vshrl.u32 %v1697_v30, 30 }
 0x2cb   : > { %v1440_v40 = vxor.u32 2147483648, %v9843_v56  ;;  %v822_v59 = vsel %vm820_vm14, %v9042_v50, %v11151_v20  ;;  %vm11154_vm5 = vweird.f32 %v11153_v43  ;;  %v1568_v15 = vsub.s32 4, %v9796_v46 }
 0x2cc   : > { %v9848_v26 = vmul.f32 %v1431_v27, %v1416_v6  ;;  %v1557_v33 = vor.u32 %v1556_v16, %v1555_v12  ;;  %v1560_v58 = vshll.u32 %v1559_v62, 23  ;;  %v1699_v39 = vshll.u32 %v9846_v35, 30 }
 0x2cd   : > { %v11152_v6 = vxor.u32 2147483648, %v9042_v50  ;;  %vm1446_vm8 = vcmp.lt.s32.totalorder %v11155_v7, 0  ;;  %v11156_v17 = vand.u32 2147483647, %v11155_v7  ;;  %v972_v34 = vand.u32 3, %v11157_v42 }
 0x2ce   : > { %v1437_v3 = vxor.u32 2147483648, %v9848_v26  ;;  %v1561_v28 = vor.u32 4788187, %v1560_v58  ;;  %v1700_v23 = vsub.s32 %v1696_v18, %v1699_v39  ;;  %v3912_v51 = vsel %vm3910_vm11, %v1440_v40, %v9848_v26 }
 0x2cf   : > { %v825_v32 = vsel %vm823_vm1, %v11152_v6, %v9055_v47  ;;  %v1564_v19 = vcvt.s32.f32 %v1557_v33  ;;  %vm1445_vm3 = vcmp.le.f32.partialorder %v11156_v17, 0.7853982  ;;  %v1569_v1 = vsel %vm1446_vm8, %v1568_v15, %v9796_v46  ;;  %v11158_v6 = vld [vmem:[#allocation59_spill] sm:$0xff]  ;;  %v11162_v15 = vld [vmem:[#allocation113_spill] sm:$0xff] }
 0x2d0   : > { %v3909_v55 = vsel %vm3907_vm9, %v9843_v56, %v1437_v3  ;;  %v826_v29 = vsel %vm819_vm10, %v822_v59, %v825_v32  ;;  %v1562_v44 = vand.u32 2147483647, %v1561_v28  ;;  %vm1701_vm12 = vcmp.lt.s32.totalorder %v1700_v23, 0 }
 0x2d1   : > { %v3913_v25 = vsel %vm3906_vm13, %v3909_v55, %v3912_v51  ;;  %v827_v0 = vsel %vm11154_vm5, nan, %v826_v29  ;;  %v1702_v47 = vsub.s32 0, %v1700_v23  ;;  %v9878_v11 = vsel %vm1445_vm3, 0, %v1569_v1  ;;  %v11160_v55 = vld [vmem:[#allocation49_spill] sm:$0xff] }
 0x2d2   : > { %v3914_v50 = vsel %vm1433_vm15, nan, %v3913_v25  ;;  %6549 = vmatmul.msk.f32.gmra.mxu1 %vm5326_vm4, %v827_v0  ;;  %v1565_v13 = vmul.f32 %v1564_v19, %v1562_v44  ;;  %v1692_v4 = vadd.s32 %v9832_v63, %v9826_v8  ;;  %v1280_v27 = vand.u32 3, %v9627_v24 }
 0x2d3   : > { %6537 = vmatmul.msk.f32.gmra.mxu0 %vm5326_vm4, %v3914_v50  ;;  %v1703_v14 = vsel %vm1701_vm12, %v1702_v47, %v1700_v23  ;;  %v1126_v62 = vand.u32 3, %v9458_v5  ;;  %v4059_v33 = vadd.s32 3, %v9878_v11  ;;  %vm973_vm2 = vcmp.lt.s32.totalorder %v972_v34, 2 }
 0x2d4   : > { %v1566_v52 = vxor.u32 2147483648, %v1565_v13  ;;  %v1704_v60 = vclz %v1703_v14  ;;  %vm974_vm13 = vcmp.eq.s32.totalorder %v972_v34, 0  ;;  %vm977_vm9 = vcmp.eq.s32.totalorder %v972_v34, 2  ;;  %v11168_v34 = vld [vmem:[#allocation144_spill] sm:$0xff] }
 0x2d5   : > { %vm1281_vm14 = vcmp.lt.s32.totalorder %v1280_v27, 2  ;;  %vm1282_vm11 = vcmp.eq.s32.totalorder %v1280_v27, 0  ;;  %v11159_v32 = vxor.u32 2147483648, %v11158_v6  ;;  %vm1285_vm1 = vcmp.eq.s32.totalorder %v1280_v27, 2 }
 0x2d6   : > { %v1567_v9 = vsel %vm1446_vm8, %v1566_v52, %v1565_v13  ;;  %v6460_v38 = vadd.s32 4294967294, %v1704_v60  ;;  %v1284_v29 = vsel %vm1282_vm11, %v9735_v61, %v1283_v22  ;;  %v1287_v25 = vsel %vm1285_vm1, %v1286_v36, %v9747_v48  ;;  %v11164_v61 = vld [vmem:[#allocation58_spill] sm:$0xff] }
 0x2d7   : > { %v1570_v21 = vsel %vm1445_vm3, %v11155_v7, %v1567_v9  ;;  %v976_v51 = vsel %vm974_vm13, %v11160_v55, %v11159_v32  ;;  %v1288_v50 = vsel %vm1281_vm14, %v1284_v29, %v1287_v25  ;;  %vm11163_vm10 = vweird.f32 %v11162_v15  ;;  %v11166_v36 = vld [vmem:[#allocation62_spill] sm:$0xff] }
 0x2d8   : > { %v1572_v18 = vmul.f32 %v1570_v21, %v1570_v21  ;;  %vm6461_vm6 = vcmp.lt.s32.totalorder %v6460_v38, 0  ;;  %vm1128_vm5 = vcmp.eq.s32.totalorder %v1126_v62, 0  ;;  %v4060_v22 = vand.u32 3, %v4059_v33  ;;  %v11172_v33 = vld [vmem:[#allocation31_spill] sm:$0xff] }
 0x2d9   : > { %v1707_v31 = vsel %vm6461_vm6, 0, %v6460_v38  ;;  %v11165_v48 = vxor.u32 2147483648, %v11164_v61  ;;  %vm1131_vm12 = vcmp.eq.s32.totalorder %v1126_v62, 2  ;;  %vm1127_vm8 = vcmp.lt.s32.totalorder %v1126_v62, 2 }
 0x2da   : > { %v1573_v2 = vmul.f32 -0.001358992, %v1572_v18  ;;  %v1580_v41 = vmul.f32 -0.00019511016, %v1572_v18  ;;  %v1708_v53 = vsub.s32 32, %v1707_v31  ;;  %v1712_v30 = vsub.s32 4294967266, %v1707_v31 }
 0x2db   : > { %v1709_v58 = vshll.u32 %v1700_v23, %v1707_v31  ;;  %v11161_v23 = vxor.u32 2147483648, %v11160_v55  ;;  %v1130_v9 = vsel %vm1128_vm5, %v11166_v36, %v11165_v48  ;;  %v11167_v31 = vxor.u32 2147483648, %v11166_v36 }
 0x2dc   : > { %v1574_v46 = vadd.f32 0.041655596, %v1573_v2  ;;  %v1581_v12 = vadd.f32 0.008332121, %v1580_v41  ;;  %v1710_v16 = vshrl.u32 %v1692_v4, %v1708_v53  ;;  %v1713_v39 = vadd.s32 127, %v1712_v30 }
 0x2dd   : > { %v979_v19 = vsel %vm977_vm9, %v11161_v23, %v11158_v6  ;;  %v1133_v42 = vsel %vm1131_vm12, %v11167_v31, %v11164_v61  ;;  %vm1600_vm3 = vcmp.lt.s32.totalorder %v11168_v34, 0  ;;  %v11169_v41 = vand.u32 2147483647, %v11168_v34 }
 0x2de   : > { %v1575_v20 = vmul.f32 %v1574_v46, %v1572_v18  ;;  %v1582_v59 = vmul.f32 %v1581_v12, %v1572_v18  ;;  %v1711_v28 = vor.u32 %v1710_v16, %v1709_v58  ;;  %v1714_v8 = vshll.u32 %v1713_v39, 23 }
 0x2df   : > { %v980_v0 = vsel %vm973_vm2, %v976_v51, %v979_v19  ;;  %vm9917_vm6 = vcmp.le.f32.partialorder %v11169_v41, 0.7853982  ;;  %vm4061_vm2 = vcmp.lt.s32.totalorder %v4060_v22, 2  ;;  %vm4062_vm13 = vcmp.eq.s32.totalorder %v4060_v22, 0  ;;  %v11177_v41 = vld [vmem:[#allocation55_spill] sm:$0xff] }
 0x2e0   : > { %v1576_v63 = vadd.f32 -0.4999988, %v1575_v20  ;;  %v1583_v24 = vadd.f32 -0.16666654, %v1582_v59  ;;  %v1715_v5 = vor.u32 4788187, %v1714_v8  ;;  %v1718_v13 = vcvt.s32.f32 %v1711_v28  ;;  %v9937_v20 = vpop.f32.mrf.mxu1 }
 0x2e1   : > { %v981_v14 = vsel %vm11163_vm10, nan, %v980_v0  ;;  %vm4065_vm9 = vcmp.eq.s32.totalorder %v4060_v22, 2  ;;  %v1722_v46 = vsub.s32 4, %v9846_v35  ;;  %vm1587_vm14 = vweird.f32 %v11155_v7  ;;  %v11175_v7 = vld [vmem:[#allocation61_spill] sm:$0xff] }
 0x2e2   : > { %v1577_v44 = vmul.f32 %v1576_v63, %v1572_v18  ;;  %v1584_v43 = vmul.f32 %v1583_v24, %v1572_v18  ;;  %v1716_v47 = vand.u32 2147483647, %v1715_v5  ;;  %6550 = vmatmul.msk.f32.gmra.mxu1 %vm5326_vm4, %v981_v14  ;;  %vm11173_vm11 = vweird.f32 %v11172_v33 }
 0x2e3   : > { %v1723_v8 = vsel %vm1600_vm3, %v1722_v46, %v9846_v35  ;;  %v1434_v6 = vand.u32 3, %v9830_v10  ;;  %v1289_v19 = vsel %vm1279_vm7, nan, %v1288_v50 }
 0x2e4   : > { %v9901_v52 = vadd.f32 1.0, %v1577_v44  ;;  %v1585_v60 = vadd.f32 1.0, %v1584_v43  ;;  %v1719_v17 = vmul.f32 %v1718_v13, %v1716_v47  ;;  %v1725_v32 = vsel %vm9917_vm6, 0, %v1723_v8 }
 0x2e5   : > { %v4214_v29 = vadd.s32 3, %v1725_v32  ;;  %vm1436_vm1 = vcmp.eq.s32.totalorder %v1434_v6, 0  ;;  %vm1439_vm10 = vcmp.eq.s32.totalorder %v1434_v6, 2  ;;  %vm1435_vm5 = vcmp.lt.s32.totalorder %v1434_v6, 2  ;;  %v11187_v6 = vld [vmem:[#allocation57_spill] sm:$0xff] }
 0x2e6   : > { %v9907_v1 = vmul.f32 %v1585_v60, %v1570_v21  ;;  %v1594_v38 = vxor.u32 2147483648, %v9901_v52  ;;  %v1720_v18 = vxor.u32 2147483648, %v1719_v17  ;;  %v1134_v21 = vsel %vm1127_vm8, %v1130_v9, %v1133_v42  ;;  %v11174_v42 = vld [vmem:[#allocation119_spill] sm:$0xff] }
 0x2e7   : > { %v1135_v58 = vsel %vm11173_vm11, nan, %v1134_v21  ;;  %v1438_v10 = vsel %vm1436_vm1, %v9843_v56, %v1437_v3  ;;  %v1441_v45 = vsel %vm1439_vm10, %v1440_v40, %v9848_v26  ;;  %v4215_v50 = vand.u32 3, %v4214_v29 }
 0x2e8   : > { %v1591_v2 = vxor.u32 2147483648, %v9907_v1  ;;  %v1721_v53 = vsel %vm1600_vm3, %v1720_v18, %v1719_v17  ;;  %v4067_v27 = vsel %vm4065_vm9, %v1594_v38, %v9907_v1  ;;  %v9952_v44 = vpop.f32.mrf.mxu1  ;;  %v1442_v47 = vsel %vm1435_vm5, %v1438_v10, %v1441_v45  ;;  %v11193_v10 = vld [vmem:[#allocation133_spill] sm:$0xff] }
 0x2e9   : > { %v1724_v12 = vsel %vm9917_vm6, %v11168_v34, %v1721_v53  ;;  %v1588_v13 = vand.u32 3, %v9878_v11  ;;  %v1443_v3 = vsel %vm1433_vm15, nan, %v1442_v47  ;;  %vm4217_vm7 = vcmp.eq.s32.totalorder %v4215_v50, 0  ;;  %v5906_v47 = vld [vmem:[#allocation2 + $0xf0] sm:$0xff] }
 0x2ea   : > { %v4064_v30 = vsel %vm4062_vm13, %v9901_v52, %v1591_v2  ;;  %v1726_v62 = vmul.f32 %v1724_v12, %v1724_v12  ;;  %6551 = vmatmul.msk.f32.gmra.mxu1 %vm5326_vm4, %v1135_v58  ;;  %vm4220_vm12 = vcmp.eq.s32.totalorder %v4215_v50, 2  ;;  %vm4216_vm3 = vcmp.lt.s32.totalorder %v4215_v50, 2  ;;  %v11184_v58 = vld [vmem:[#allocation131_spill] sm:$0xff]  ;;  %v5907_v50 = vld [vmem:[#allocation2 + $0xf8] sm:$0xff] }
 0x2eb   : > { %v4068_v16 = vsel %vm4061_vm2, %v4064_v30, %v4067_v27  ;;  %vm1590_vm8 = vcmp.eq.s32.totalorder %v1588_v13, 0  ;;  %vm1741_vm6 = vweird.f32 %v11168_v34  ;;  %vm1593_vm2 = vcmp.eq.s32.totalorder %v1588_v13, 2  ;;  %v11179_v27 = vld [vmem:[#allocation104_spill] sm:$0xff]  ;;  %5910 = vmatpush.msra.mxu2 %v5907_v50 }
 0x2ec   : > { %v4069_v39 = vsel %vm1587_vm14, nan, %v4068_v16  ;;  %v1727_v59 = vmul.f32 -0.001358992, %v1726_v62  ;;  %v1734_v28 = vmul.f32 -0.00019511016, %v1726_v62  ;;  %v1592_v56 = vsel %vm1590_vm8, %v9901_v52, %v1591_v2 }
 0x2ed   : > { %6538 = vmatmul.msk.f32.gmra.mxu0 %vm5326_vm4, %v4069_v39  ;;  %vm1589_vm13 = vcmp.lt.s32.totalorder %v1588_v13, 2  ;;  %v1595_v57 = vsel %vm1593_vm2, %v1594_v38, %v9907_v1  ;;  %v1742_v61 = vand.u32 3, %v1725_v32  ;;  %v1896_v52 = vand.u32 3, %v11174_v42  ;;  %v11196_v13 = vld [vmem:[#allocation56_spill] sm:$0xff]  ;;  %5911 = vmatpush.msra.mxu2 %v5906_v47 }
 0x2ee   : > { %v1728_v63 = vadd.f32 0.041655596, %v1727_v59  ;;  %v1735_v24 = vadd.f32 0.008332121, %v1734_v28  ;;  %v1596_v11 = vsel %vm1589_vm13, %v1592_v56, %v1595_v57  ;;  %v11176_v2 = vxor.u32 2147483648, %v11175_v7  ;;  %v11200_v56 = vld [vmem:[#allocation86_spill] sm:$0xff] }
 0x2ef   : > { %v1597_v36 = vsel %vm1587_vm14, nan, %v1596_v11  ;;  %vm1744_vm15 = vcmp.eq.s32.totalorder %v1742_v61, 0  ;;  %vm1747_vm9 = vcmp.eq.s32.totalorder %v1742_v61, 2  ;;  %vm1743_vm11 = vcmp.lt.s32.totalorder %v1742_v61, 2  ;;  %v11201_v57 = vld [vmem:[#allocation45_spill] sm:$0xff]  ;;  %v11203_v61 = vld [vmem:[#allocation50_spill] sm:$0xff] }
 0x2f0   : > { %v1729_v55 = vmul.f32 %v1728_v63, %v1726_v62  ;;  %v1736_v51 = vmul.f32 %v1735_v24, %v1726_v62  ;;  %v9969_v48 = vpop.f32.mrf.mxu1  ;;  %vm1898_vm1 = vcmp.eq.s32.totalorder %v1896_v52, 0  ;;  %vm1901_vm14 = vcmp.eq.s32.totalorder %v1896_v52, 2  ;;  %v11186_v63 = vld [vmem:[#allocation122_spill] sm:$0xff] }
 0x2f1   : > { %v1900_v4 = vsel %vm1898_vm1, %v11177_v41, %v11176_v2  ;;  %vm1897_vm10 = vcmp.lt.s32.totalorder %v1896_v52, 2  ;;  %v11178_v21 = vxor.u32 2147483648, %v11177_v41  ;;  %v2050_v46 = vand.u32 3, %v11179_v27  ;;  %v5905_v52 = vld [vmem:[#allocation2 + $0xe8] sm:$0xff]  ;;  %v11207_v2 = vld [vmem:[#allocation53_spill] sm:$0xff]  ;;  %v5902_v27 = vld [vmem:[#allocation2 + $0xd0] sm:$0xff] }
 0x2f2   : > { %v1730_v5 = vadd.f32 -0.4999988, %v1729_v55  ;;  %v1737_v23 = vadd.f32 -0.16666654, %v1736_v51  ;;  %6552 = vmatmul.msk.f32.gmra.mxu1 %vm5326_vm4, %v1289_v19  ;;  %v11185_v59 = vxor.u32 2147483648, %v11184_v58  ;;  %v2204_v24 = vand.u32 3, %v11186_v63  ;;  %5912 = vmatpush.msra.mxu2 %v5905_v52 }
 0x2f3   : > { %v1903_v53 = vsel %vm1901_vm14, %v11178_v21, %v11175_v7  ;;  %vm2051_vm8 = vcmp.lt.s32.totalorder %v2050_v46, 2  ;;  %v11189_v55 = vld [vmem:[#allocation125_spill] sm:$0xff]  ;;  %vm11202_vm14 = vweird.f32 %v11201_v57  ;;  %v2666_v41 = vand.u32 3, %v11207_v2  ;;  %v11215_v63 = vld [vmem:[#allocation6_spill] sm:$0xff] }
 0x2f4   : > { %v1731_v25 = vmul.f32 %v1730_v5, %v1726_v62  ;;  %v1738_v35 = vmul.f32 %v1737_v23, %v1726_v62  ;;  %v1904_v30 = vsel %vm1897_vm10, %v1900_v4, %v1903_v53  ;;  %v11182_v62 = vld [vmem:[#allocation136_spill] sm:$0xff]  ;;  %v11190_v51 = vxor.u32 2147483648, %v11189_v55  ;;  %v11208_v53 = vld [vmem:[#allocation5_spill] sm:$0xff] }
 0x2f5   : > { %v11183_v33 = vxor.u32 2147483648, %v11182_v62  ;;  %v11191_v5 = vld [vmem:[#allocation132_spill] sm:$0xff]  ;;  %vm2209_vm2 = vcmp.eq.s32.totalorder %v2204_v24, 2  ;;  %vm2205_vm13 = vcmp.lt.s32.totalorder %v2204_v24, 2 }
 0x2f6   : > { %v1732_v43 = vadd.f32 1.0, %v1731_v25  ;;  %v1739_v0 = vadd.f32 1.0, %v1738_v35  ;;  %v11192_v29 = vxor.u32 2147483648, %v11191_v5  ;;  %v5903_v4 = vld [vmem:[#allocation2 + $0xd8] sm:$0xff] }
 0x2f8   : > { %v1740_v15 = vmul.f32 %v1739_v0, %v1724_v12  ;;  %v1748_v14 = vxor.u32 2147483648, %v1732_v43  ;;  %v9975_v1 = vpop.f32.mrf.mxu1  ;;  %v11180_v12 = vld [vmem:[#allocation20_spill] sm:$0xff]  ;;  %v2211_v25 = vsel %vm2209_vm2, %v11192_v29, %v11189_v55  ;;  %v11194_v0 = vld [vmem:[#allocation9_spill] sm:$0xff]  ;;  %vm11216_vm2 = vweird.f32 %v11215_v63 }
 0x2f9   : > { %vm11181_vm5 = vweird.f32 %v11180_v12  ;;  %v11210_v12 = vld [vmem:[#allocation124_spill] sm:$0xff]  ;;  %v11218_v29 = vxor.u32 2147483648, %v9633_v37 }
 0x2fa   : > { %v1745_v60 = vxor.u32 2147483648, %v1740_v15  ;;  %6553 = vmatmul.msk.f32.gmra.mxu1 %vm5326_vm4, %v1443_v3  ;;  %v4222_v17 = vsel %vm4220_vm12, %v1748_v14, %v1740_v15  ;;  %v1749_v18 = vsel %vm1747_vm9, %v1748_v14, %v1740_v15  ;;  %v1905_v34 = vsel %vm11181_vm5, nan, %v1904_v30  ;;  %v11198_v14 = vld [vmem:[#allocation54_spill] sm:$0xff] }
 0x2fb   : > { %vm2055_vm12 = vcmp.eq.s32.totalorder %v2050_v46, 2  ;;  %v11197_v15 = vxor.u32 2147483648, %v11196_v13  ;;  %v11199_v3 = vxor.u32 2147483648, %v11198_v14 }
 0x2fc   : > { %v4219_v22 = vsel %vm4217_vm7, %v1732_v43, %v1745_v60  ;;  %v1746_v9 = vsel %vm1744_vm15, %v1732_v43, %v1745_v60  ;;  %vm2052_vm7 = vcmp.eq.s32.totalorder %v2050_v46, 0  ;;  %v2057_v28 = vsel %vm2055_vm12, %v11185_v59, %v11182_v62  ;;  %v5392_v46 = vpop.f32.mrf.mxu0  ;;  %v11212_v62 = vld [vmem:[#allocation120_spill] sm:$0xff] }
 0x2fd   : > { %v4223_v26 = vsel %vm4216_vm3, %v4219_v22, %v4222_v17  ;;  %v1750_v31 = vsel %vm1743_vm11, %v1746_v9, %v1749_v18  ;;  %v2054_v39 = vsel %vm2052_vm7, %v11184_v58, %v11183_v33  ;;  %vm11188_vm3 = vweird.f32 %v11187_v6  ;;  %v11205_v9 = vld [vmem:[#allocation92_spill] sm:$0xff] }
 0x2fe   : > { %v4224_v40 = vsel %vm1741_vm6, nan, %v4223_v26  ;;  %v1751_v38 = vsel %vm1741_vm6, nan, %v1750_v31  ;;  %v2058_v8 = vsel %vm2051_vm8, %v2054_v39, %v2057_v28  ;;  %vm2206_vm6 = vcmp.eq.s32.totalorder %v2204_v24, 0  ;;  %v11214_v28 = vld [vmem:[#allocation60_spill] sm:$0xff] }
 0x2ff   : > { %6539 = vmatmul.msk.f32.gmra.mxu0 %vm5326_vm4, %v4224_v40  ;;  %v2059_v32 = vsel %vm11188_vm3, nan, %v2058_v8  ;;  %v2208_v23 = vsel %vm2206_vm6, %v11191_v5, %v11190_v51  ;;  %v2358_v43 = vand.u32 3, %v11193_v10  ;;  %vm11195_vm15 = vweird.f32 %v11194_v0 }
 0x300   : > { %v9990_v16 = vpop.f32.mrf.mxu1  ;;  %v2212_v35 = vsel %vm2205_vm13, %v2208_v23, %v2211_v25  ;;  %v2512_v26 = vand.u32 3, %v11200_v56  ;;  %v11206_v31 = vxor.u32 2147483648, %v11205_v9  ;;  %vm11209_vm12 = vweird.f32 %v11208_v53  ;;  %v5894_v53 = vld [vmem:[#allocation2 + $0x90] sm:$0xff] }
 0x301   : > { %v2213_v45 = vsel %vm11195_vm15, nan, %v2212_v35  ;;  %vm2360_vm9 = vcmp.eq.s32.totalorder %v2358_v43, 0  ;;  %vm2363_vm11 = vcmp.eq.s32.totalorder %v2358_v43, 2  ;;  %vm2359_vm1 = vcmp.lt.s32.totalorder %v2358_v43, 2 }
 0x302   : > { %6554 = vmatmul.msk.f32.gmra.mxu1 %vm5326_vm4, %v1597_v36  ;;  %v2362_v60 = vsel %vm2360_vm9, %v11198_v14, %v11197_v15  ;;  %v2365_v22 = vsel %vm2363_vm11, %v11199_v3, %v11196_v13  ;;  %vm2514_vm10 = vcmp.eq.s32.totalorder %v2512_v26, 0  ;;  %v11204_v36 = vxor.u32 2147483648, %v11203_v61  ;;  %v5899_v13 = vld [vmem:[#allocation2 + $0xb8] sm:$0xff] }
 0x303   : > { %v2366_v17 = vsel %vm2359_vm1, %v2362_v60, %v2365_v22  ;;  %vm2517_vm5 = vcmp.eq.s32.totalorder %v2512_v26, 2  ;;  %vm2513_vm7 = vcmp.lt.s32.totalorder %v2512_v26, 2  ;;  %vm2668_vm8 = vcmp.eq.s32.totalorder %v2666_v41, 0  ;;  %v5898_v60 = vld [vmem:[#allocation2 + $0xb0] sm:$0xff] }
 0x304   : > { %v2367_v11 = vsel %vm11202_vm14, nan, %v2366_v17  ;;  %v2516_v18 = vsel %vm2514_vm10, %v11205_v9, %v11204_v36  ;;  %v2519_v42 = vsel %vm2517_vm5, %v11206_v31, %v11203_v61  ;;  %vm2671_vm3 = vcmp.eq.s32.totalorder %v2666_v41, 2  ;;  %v5395_v23 = vpop.f32.mrf.mxu0  ;;  %v5896_v31 = vld [vmem:[#allocation2 + $0xa0] sm:$0xff] }
 0x305   : > { %v2520_v7 = vsel %vm2513_vm7, %v2516_v18, %v2519_v42  ;;  %vm2667_vm6 = vcmp.lt.s32.totalorder %v2666_v41, 2  ;;  %v11213_v58 = vxor.u32 2147483648, %v11212_v62  ;;  %v2820_v8 = vand.u32 3, %v11214_v28  ;;  %v5897_v18 = vld [vmem:[#allocation2 + $0xa8] sm:$0xff]  ;;  %v5892_v28 = vld [vmem:[#allocation2 + $0x80] sm:$0xff] }
 0x306   : > { %v2521_v30 = vsel %vm11209_vm12, nan, %v2520_v7  ;;  %v11217_v51 = vxor.u32 2147483648, %v9643_v49 }
 0x307   : > { %v2673_v39 = vsel %vm2671_vm3, %v11213_v58, %v11210_v12  ;;  %vm2822_vm13 = vcmp.eq.s32.totalorder %v2820_v8, 0  ;;  %vm2825_vm15 = vcmp.eq.s32.totalorder %v2820_v8, 2  ;;  %vm2821_vm9 = vcmp.lt.s32.totalorder %v2820_v8, 2 }
 0x308   : > { %v10005_v19 = vpop.f32.mrf.mxu1  ;;  %v2824_v5 = vsel %vm2822_vm13, %v9633_v37, %v11217_v51  ;;  %v2827_v25 = vsel %vm2825_vm15, %v11218_v29, %v9643_v49  ;;  %v5901_v37 = vld [vmem:[#allocation2 + $0xc8] sm:$0xff]  ;;  %v5900_v49 = vld [vmem:[#allocation2 + $0xc0] sm:$0xff] }
 0x309   : > { %v2828_v43 = vsel %vm2821_vm9, %v2824_v5, %v2827_v25 }
 0x30a   : > { %6555 = vmatmul.msk.f32.gmra.mxu1 %vm5326_vm4, %v1751_v38  ;;  %v5904_v38 = vld [vmem:[#allocation2 + $0xe0] sm:$0xff]  ;;  %v2829_v0 = vsel %vm2819_vm0, nan, %v2828_v43 }
 0x30b   : > { %5913 = vmatpush.msra.mxu2 %v5904_v38  ;;  %v5895_v38 = vld [vmem:[#allocation2 + $0x98] sm:$0xff] }
 0x30c   : > { %v5398_v14 = vpop.f32.mrf.mxu0 }
 0x30d   : > { %5914 = vmatpush.msra.mxu2 %v5903_v4 }
 0x30f   : > { %5915 = vmatpush.msra.mxu2 %v5902_v27 }
 0x311   : > { %5916 = vmatpush.msra.mxu2 %v5901_v37 }
 0x312   : > { %6556 = vmatmul.msk.f32.gmra.mxu1 %vm5326_vm4, %v1905_v34  ;;  %v11211_v34 = vxor.u32 2147483648, %v11210_v12 }
 0x313   : > { %5917 = vmatpush.msra.mxu2 %v5900_v49 }
 0x314   : > { %v2670_v33 = vsel %vm2668_vm8, %v11212_v62, %v11211_v34  ;;  %v5893_v34 = vld [vmem:[#allocation2 + $0x88] sm:$0xff] }
 0x315   : > { %v2674_v59 = vsel %vm2667_vm6, %v2670_v33, %v2673_v39  ;;  %5918 = vmatpush.msra.mxu2 %v5899_v13 }
 0x316   : > { %v2675_v24 = vsel %vm11216_vm2, nan, %v2674_v59 }
 0x317   : > { %5919 = vmatpush.msra.mxu2 %v5898_v60 }
 0x319   : > { %5920 = vmatpush.msra.mxu2 %v5897_v18 }
 0x31a   : > { %6557 = vmatmul.msk.f32.gmra.mxu1 %vm5326_vm4, %v2059_v32  ;;  %v10048_v32 = vld [vmem:[%s10284_s3] ss:$0 sm:$0xff] }
 0x31b   : > { %5921 = vmatpush.msra.mxu2 %v5896_v31 }
 0x31d   : > { %v10021_v40 = vpop.f32.mrf.mxu1  ;;  %5922 = vmatpush.msra.mxu2 %v5895_v38 }
 0x31f   : > { %5923 = vmatpush.msra.mxu2 %v5894_v53 }
 0x321   : > { %5924 = vmatpush.msra.mxu2 %v5893_v34 }
 0x322   : > { %6558 = vmatmul.msk.f32.gmra.mxu1 %vm5326_vm4, %v2213_v45 }
 0x323   : > { %5925 = vmatpush.msra.mxu2 %v5892_v28 }
 0x325   : > { %v5505_v21 = vpop.f32.mrf.mxu1 }
 0x326   : > { %v5506_v6 = vadd.f32 %v5505_v21, %v5392_v46  ;;  %v6009_v46 = vld [vmem:[#allocation2 + $0x108] sm:$0xff] }
 0x327   : > { %6605 = vmatpush.msra.mxu3 %v6009_v46  ;;  %6075 = vmatpush.msrb.mxu2 %v6009_v46 }
 0x328   : > { %v10058_v35 = vadd.f32 %v10048_v32, %v5506_v6 }
 0x32a   : > { %6559 = vmatmul.msk.f32.gmra.mxu1 %vm5326_vm4, %v2367_v11  ;;  %v6563_v45 = vmul.f32 -1.442695, %v10058_v35  ;;  %v5401_v11 = vpop.f32.mrf.mxu0 }
 0x32c   : > { %6648 = vpow2.f32 %v6563_v45 }
 0x330   : > { %v5508_v55 = vpop.f32.mrf.mxu1 }
 0x331   : > { %v5509_v10 = vadd.f32 %v5508_v55, %v5395_v23 }
 0x332   : > { %6560 = vmatmul.msk.f32.gmra.mxu1 %vm5326_vm4, %v2521_v30  ;;  %v6649_v15 = vpop.eup %6648  ;;  %v5404_v4 = vpop.f32.mrf.mxu0 }
 0x333   : > { %v10064_v50 = vadd.f32 %v10048_v32, %v5509_v10  ;;  %v5619_v22 = vadd.f32 1.0, %v6649_v15 }
 0x335   : > { %v6564_v47 = vmul.f32 -1.442695, %v10064_v50  ;;  %v5644_v2 = vand.u32 2147483647, %v5619_v22  ;;  %v5646_v41 = vand.u32 2147483648, %v5619_v22  ;;  %vm5640_vm0 = vweird.f32 %v5619_v22 }
 0x337   : > { %6650 = vpow2.f32 %v6564_v47  ;;  %vm5645_vm1 = vcmp.eq.f32.partialorder %v5644_v2, 8.507059e+37  ;;  %v5647_v39 = vor.u32 1.1754944e-38, %v5646_v41 }
 0x338   : > { %6652 = vrcp.f32 %v5619_v22 }
 0x33a   : > { %6561 = vmatmul.msk.f32.gmra.mxu1 %vm5326_vm4, %v2675_v24  ;;  %v5407_v47 = vpop.f32.mrf.mxu0 }
 0x33d   : > { %v6651_v17 = vpop.eup %6650 }
 0x33e   : > { %v5620_v57 = vadd.f32 1.0, %v6651_v17  ;;  %v6653_v61 = vpop.eup %6652 }
 0x33f   : > { %v5636_v42 = vmul.f32 %v6653_v61, %v5619_v22 }
 0x340   : > { %v5661_v59 = vand.u32 2147483648, %v5620_v57  ;;  %v5659_v24 = vand.u32 2147483647, %v5620_v57  ;;  %vm5655_vm10 = vweird.f32 %v5620_v57 }
 0x341   : > { %v5637_v7 = vsub.f32 1.0, %v5636_v42 }
 0x342   : > { %6562 = vmatmul.msk.f32.gmra.mxu1 %vm5326_vm4, %v2829_v0  ;;  %vm5641_vm4 = vweird.f32 %v6653_v61  ;;  %v5662_v29 = vor.u32 1.1754944e-38, %v5661_v59  ;;  %vm5660_vm7 = vcmp.eq.f32.partialorder %v5659_v24, 8.507059e+37 }
 0x343   : > { %v5638_v30 = vmul.f32 %v6653_v61, %v5637_v7  ;;  %vm5642_vm11 = vmor %vm5640_vm0, %vm5641_vm4 }
 0x345   : > { %v5639_v62 = vadd.f32 %v6653_v61, %v5638_v30 }
 0x347   : > { %v5643_v8 = vsel %vm5642_vm11, %v6653_v61, %v5639_v62 }
 0x348   : > { %v5648_v51 = vsel %vm5645_vm1, %v5647_v39, %v5643_v8 }
 0x349   : > { %v5875_v5 = vmul.f32 %v5648_v51, %v10058_v35 }
 0x34b   : > { %5926 = vmatmul.f32.vlgmr.msra.gmra.mxu2 %v5875_v5 }
 0x34f   : > { %v5511_v54 = vpop.f32.mrf.mxu1 }
 0x350   : > { %v5512_v3 = vadd.f32 %v5511_v54, %v5398_v14 }
 0x352   : > { %v10069_v56 = vadd.f32 %v10048_v32, %v5512_v3 }
 0x354   : > { %v6565_v26 = vmul.f32 -1.442695, %v10069_v56 }
 0x356   : > { %6654 = vpow2.f32 %v6565_v26 }
 0x357   : > { %6656 = vrcp.f32 %v5620_v57 }
 0x35c   : > { %v6655_v36 = vpop.eup %6654 }
 0x35d   : > { %v10072_v9 = vadd.f32 1.0, %v6655_v36  ;;  %v6657_v52 = vpop.eup %6656  ;;  %v5410_v36 = vpop.f32.mrf.mxu0 }
 0x35e   : > { %v5651_v27 = vmul.f32 %v6657_v52, %v5620_v57  ;;  %vm5656_vm14 = vweird.f32 %v6657_v52 }
 0x35f   : > { %6658 = vrcp.f32 %v10072_v9  ;;  %v5514_v21 = vpop.f32.mrf.mxu1  ;;  %vm5657_vm5 = vmor %vm5655_vm10, %vm5656_vm14  ;;  %v5676_v35 = vand.u32 2147483648, %v10072_v9  ;;  %v5674_v14 = vand.u32 2147483647, %v10072_v9  ;;  %vm5670_vm8 = vweird.f32 %v10072_v9 }
 0x360   : > { %v5515_v12 = vadd.f32 %v5514_v21, %v5401_v11  ;;  %v5652_v33 = vsub.f32 1.0, %v5651_v27 }
 0x361   : > { %v5677_v17 = vor.u32 1.1754944e-38, %v5676_v35  ;;  %vm5675_vm6 = vcmp.eq.f32.partialorder %v5674_v14, 8.507059e+37 }
 0x362   : > { %v10076_v58 = vadd.f32 %v10048_v32, %v5515_v12  ;;  %v5653_v63 = vmul.f32 %v6657_v52, %v5652_v33 }
 0x364   : > { %v6566_v55 = vmul.f32 -1.442695, %v10076_v58  ;;  %v5654_v23 = vadd.f32 %v6657_v52, %v5653_v63 }
 0x365   : > { %v6659_v6 = vpop.eup %6658 }
 0x366   : > { %6660 = vpow2.f32 %v6566_v55  ;;  %v5658_v10 = vsel %vm5657_vm5, %v6657_v52, %v5654_v23  ;;  %v5666_v43 = vmul.f32 %v6659_v6, %v10072_v9  ;;  %vm5671_vm12 = vweird.f32 %v6659_v6 }
 0x367   : > { %v5517_v25 = vpop.f32.mrf.mxu1  ;;  %v5663_v45 = vsel %vm5660_vm7, %v5662_v29, %v5658_v10  ;;  %vm5672_vm3 = vmor %vm5670_vm8, %vm5671_vm12 }
 0x368   : > { %v5518_v0 = vadd.f32 %v5517_v25, %v5404_v4  ;;  %v5667_v37 = vsub.f32 1.0, %v5666_v43  ;;  %v5876_v13 = vmul.f32 %v5663_v45, %v10064_v50 }
 0x36a   : > { %v10082_v49 = vadd.f32 %v10048_v32, %v5518_v0  ;;  %v5668_v15 = vmul.f32 %v6659_v6, %v5667_v37  ;;  %5929 = vmatmul.f32.gmra.mxu2 %v5876_v13  ;;  %v5413_v34 = vpop.f32.mrf.mxu0 }
 0x36c   : > { %v6661_v54 = vpop.eup %6660  ;;  %v6567_v60 = vmul.f32 -1.442695, %v10082_v49  ;;  %v5669_v22 = vadd.f32 %v6659_v6, %v5668_v15 }
 0x36d   : > { %v5622_v3 = vadd.f32 1.0, %v6661_v54 }
 0x36e   : > { %6662 = vpow2.f32 %v6567_v60  ;;  %v5673_v57 = vsel %vm5672_vm3, %v6659_v6, %v5669_v22 }
 0x36f   : > { %6664 = vrcp.f32 %v5622_v3  ;;  %v5520_v26 = vpop.f32.mrf.mxu1  ;;  %v5678_v11 = vsel %vm5675_vm6, %v5677_v17, %v5673_v57  ;;  %v5691_v4 = vand.u32 2147483648, %v5622_v3  ;;  %v5689_v30 = vand.u32 2147483647, %v5622_v3 }
 0x370   : > { %v5521_v50 = vadd.f32 %v5520_v26, %v5407_v47  ;;  %v5877_v18 = vmul.f32 %v5678_v11, %v10069_v56  ;;  %vm5685_vm13 = vweird.f32 %v5622_v3 }
 0x371   : > { %v5692_v33 = vor.u32 1.1754944e-38, %v5691_v4  ;;  %vm5690_vm9 = vcmp.eq.f32.partialorder %v5689_v30, 8.507059e+37 }
 0x372   : > { %v10090_v61 = vadd.f32 %v10048_v32, %v5521_v50  ;;  %5932 = vmatmul.f32.gmra.mxu2 %v5877_v18 }
 0x374   : > { %v6663_v31 = vpop.eup %6662  ;;  %v6568_v42 = vmul.f32 -1.442695, %v10090_v61 }
 0x375   : > { %v6665_v9 = vpop.eup %6664  ;;  %v5623_v52 = vadd.f32 1.0, %v6663_v31 }
 0x376   : > { %6666 = vpow2.f32 %v6568_v42  ;;  %v5681_v38 = vmul.f32 %v6665_v9, %v5622_v3  ;;  %vm5686_vm2 = vweird.f32 %v6665_v9 }
 0x377   : > { %6668 = vrcp.f32 %v5623_v52  ;;  %v5523_v7 = vpop.f32.mrf.mxu1  ;;  %vm5687_vm15 = vmor %vm5685_vm13, %vm5686_vm2  ;;  %v5706_v55 = vand.u32 2147483648, %v5623_v52  ;;  %v5704_v23 = vand.u32 2147483647, %v5623_v52  ;;  %vm5700_vm0 = vweird.f32 %v5623_v52 }
 0x378   : > { %v5524_v2 = vadd.f32 %v5523_v7, %v5410_v36  ;;  %v5682_v41 = vsub.f32 1.0, %v5681_v38 }
 0x379   : > { %v5707_v45 = vor.u32 1.1754944e-38, %v5706_v55  ;;  %vm5705_vm1 = vcmp.eq.f32.partialorder %v5704_v23, 8.507059e+37 }
 0x37a   : > { %v10095_v21 = vadd.f32 %v10048_v32, %v5524_v2  ;;  %v5683_v53 = vmul.f32 %v6665_v9, %v5682_v41 }
 0x37c   : > { %v6667_v56 = vpop.eup %6666  ;;  %v6569_v27 = vmul.f32 -1.442695, %v10095_v21  ;;  %v5684_v46 = vadd.f32 %v6665_v9, %v5683_v53  ;;  %v5416_v37 = vpop.f32.mrf.mxu0 }
 0x37d   : > { %v6669_v12 = vpop.eup %6668  ;;  %v5624_v62 = vadd.f32 1.0, %v6667_v56 }
 0x37e   : > { %6670 = vpow2.f32 %v6569_v27  ;;  %v5688_v39 = vsel %vm5687_vm15, %v6665_v9, %v5684_v46  ;;  %v5696_v59 = vmul.f32 %v6669_v12, %v5623_v52  ;;  %vm5701_vm4 = vweird.f32 %v6669_v12 }
 0x37f   : > { %6672 = vrcp.f32 %v5624_v62  ;;  %v5526_v28 = vpop.f32.mrf.mxu1  ;;  %v5693_v8 = vsel %vm5690_vm9, %v5692_v33, %v5688_v39  ;;  %vm5702_vm11 = vmor %vm5700_vm0, %vm5701_vm4  ;;  %v5721_v60 = vand.u32 2147483648, %v5624_v62  ;;  %v5719_v17 = vand.u32 2147483647, %v5624_v62 }
 0x380   : > { %v5527_v63 = vadd.f32 %v5526_v28, %v5413_v34  ;;  %v5878_v24 = vmul.f32 %v5693_v8, %v10076_v58  ;;  %v5697_v6 = vsub.f32 1.0, %v5696_v59  ;;  %vm5715_vm10 = vweird.f32 %v5624_v62 }
 0x381   : > { %v5722_v18 = vor.u32 1.1754944e-38, %v5721_v60  ;;  %vm5720_vm7 = vcmp.eq.f32.partialorder %v5719_v17, 8.507059e+37 }
 0x382   : > { %v10100_v51 = vadd.f32 %v10048_v32, %v5527_v63  ;;  %5935 = vmatmul.f32.gmra.mxu2 %v5878_v24  ;;  %v5698_v5 = vmul.f32 %v6669_v12, %v5697_v6 }
 0x384   : > { %v6671_v29 = vpop.eup %6670  ;;  %v6570_v25 = vmul.f32 -1.442695, %v10100_v51  ;;  %v5699_v10 = vadd.f32 %v6669_v12, %v5698_v5 }
 0x385   : > { %v6673_v43 = vpop.eup %6672  ;;  %v5625_v0 = vadd.f32 1.0, %v6671_v29 }
 0x386   : > { %6674 = vpow2.f32 %v6570_v25  ;;  %v5703_v58 = vsel %vm5702_vm11, %v6669_v12, %v5699_v10  ;;  %v5711_v47 = vmul.f32 %v6673_v43, %v5624_v62  ;;  %vm5716_vm14 = vweird.f32 %v6673_v43 }
 0x387   : > { %6676 = vrcp.f32 %v5625_v0  ;;  %v5529_v35 = vpop.f32.mrf.mxu1  ;;  %v5708_v13 = vsel %vm5705_vm1, %v5707_v45, %v5703_v58  ;;  %vm5717_vm5 = vmor %vm5715_vm10, %vm5716_vm14  ;;  %v5736_v2 = vand.u32 2147483648, %v5625_v0  ;;  %v5734_v53 = vand.u32 2147483647, %v5625_v0  ;;  %v6008_v45 = vld [vmem:[#allocation2 + $0x100] sm:$0xff] }
 0x388   : > { %v5530_v15 = vadd.f32 %v5529_v35, %v5416_v37  ;;  %v5879_v14 = vmul.f32 %v5708_v13, %v10082_v49  ;;  %v5712_v54 = vsub.f32 1.0, %v5711_v47  ;;  %vm5730_vm8 = vweird.f32 %v5625_v0  ;;  %6076 = vmatpush.msrb.mxu2 %v6008_v45  ;;  %6606 = vmatpush.msra.mxu3 %v6008_v45 }
 0x389   : > { %vm5735_vm6 = vcmp.eq.f32.partialorder %v5734_v53, 8.507059e+37 }
 0x38a   : > { %v10105_v3 = vadd.f32 %v10048_v32, %v5530_v15  ;;  %5938 = vmatmul.f32.gmra.mxu2 %v5879_v14  ;;  %v5713_v22 = vmul.f32 %v6673_v43, %v5712_v54 }
 0x38c   : > { %v6675_v26 = vpop.eup %6674  ;;  %v6571_v57 = vmul.f32 -1.442695, %v10105_v3  ;;  %v5714_v50 = vadd.f32 %v6673_v43, %v5713_v22 }
 0x38d   : > { %v6677_v11 = vpop.eup %6676  ;;  %v5626_v36 = vadd.f32 1.0, %v6675_v26 }
 0x38e   : > { %6678 = vpow2.f32 %v6571_v57  ;;  %v5718_v49 = vsel %vm5717_vm5, %v6673_v43, %v5714_v50  ;;  %v5726_v31 = vmul.f32 %v6677_v11, %v5625_v0  ;;  %vm5731_vm12 = vweird.f32 %v6677_v11 }
 0x38f   : > { %6680 = vrcp.f32 %v5626_v36  ;;  %v5532_v42 = vpop.f32.mrf.mxu1  ;;  %v5723_v9 = vsel %vm5720_vm7, %v5722_v18, %v5718_v49  ;;  %vm5732_vm3 = vmor %vm5730_vm8, %vm5731_vm12  ;;  %v5751_v8 = vand.u32 2147483648, %v5626_v36  ;;  %v5749_v6 = vand.u32 2147483647, %v5626_v36 }
 0x390   : > { %v5533_v52 = vadd.f32 %v5532_v42, %v9937_v20  ;;  %v5880_v38 = vmul.f32 %v5723_v9, %v10090_v61  ;;  %v5727_v7 = vsub.f32 1.0, %v5726_v31  ;;  %v5737_v20 = vor.u32 1.1754944e-38, %v5736_v2 }
 0x391   : > { %vm5745_vm13 = vweird.f32 %v5626_v36  ;;  %vm5750_vm9 = vcmp.eq.f32.partialorder %v5749_v6, 8.507059e+37 }
 0x392   : > { %v10111_v41 = vadd.f32 %v10048_v32, %v5533_v52  ;;  %5941 = vmatmul.f32.gmra.mxu2 %v5880_v38  ;;  %v5728_v4 = vmul.f32 %v6677_v11, %v5727_v7 }
 0x394   : > { %v6679_v30 = vpop.eup %6678  ;;  %v6572_v56 = vmul.f32 -1.442695, %v10111_v41  ;;  %v5729_v27 = vadd.f32 %v6677_v11, %v5728_v4 }
 0x395   : > { %v6681_v46 = vpop.eup %6680  ;;  %v5627_v12 = vadd.f32 1.0, %v6679_v30 }
 0x396   : > { %6682 = vpow2.f32 %v6572_v56  ;;  %v5733_v61 = vsel %vm5732_vm3, %v6677_v11, %v5729_v27  ;;  %v5741_v34 = vmul.f32 %v6681_v46, %v5626_v36  ;;  %vm5746_vm2 = vweird.f32 %v6681_v46 }
 0x397   : > { %6684 = vrcp.f32 %v5627_v12  ;;  %v5535_v62 = vpop.f32.mrf.mxu1  ;;  %v5738_v33 = vsel %vm5735_vm6, %v5737_v20, %v5733_v61  ;;  %vm5747_vm15 = vmor %vm5745_vm13, %vm5746_vm2  ;;  %v5766_v35 = vand.u32 2147483648, %v5627_v12  ;;  %v5764_v14 = vand.u32 2147483647, %v5627_v12 }
 0x398   : > { %v5536_v39 = vadd.f32 %v5535_v62, %v9952_v44  ;;  %v5881_v59 = vmul.f32 %v5738_v33, %v10095_v21  ;;  %v5742_v28 = vsub.f32 1.0, %v5741_v34  ;;  %v5752_v44 = vor.u32 1.1754944e-38, %v5751_v8 }
 0x399   : > { %vm5760_vm0 = vweird.f32 %v5627_v12  ;;  %vm5765_vm1 = vcmp.eq.f32.partialorder %v5764_v14, 8.507059e+37 }
 0x39a   : > { %v10117_v63 = vadd.f32 %v10048_v32, %v5536_v39  ;;  %5944 = vmatmul.f32.gmra.mxu2 %v5881_v59  ;;  %v5743_v24 = vmul.f32 %v6681_v46, %v5742_v28 }
 0x39c   : > { %v6683_v55 = vpop.eup %6682  ;;  %v6573_v5 = vmul.f32 -1.442695, %v10117_v63  ;;  %v5744_v23 = vadd.f32 %v6681_v46, %v5743_v24 }
 0x39d   : > { %v6685_v29 = vpop.eup %6684  ;;  %v5628_v25 = vadd.f32 1.0, %v6683_v55 }
 0x39e   : > { %6686 = vpow2.f32 %v6573_v5  ;;  %v5748_v21 = vsel %vm5747_vm15, %v6681_v46, %v5744_v23  ;;  %v5756_v10 = vmul.f32 %v6685_v29, %v5627_v12  ;;  %vm5761_vm4 = vweird.f32 %v6685_v29 }
 0x39f   : > { %6688 = vrcp.f32 %v5628_v25  ;;  %v5538_v43 = vpop.f32.mrf.mxu1  ;;  %v5753_v0 = vsel %vm5750_vm9, %v5752_v44, %v5748_v21  ;;  %vm5762_vm11 = vmor %vm5760_vm0, %vm5761_vm4  ;;  %v5781_v31 = vand.u32 2147483648, %v5628_v25  ;;  %v5779_v52 = vand.u32 2147483647, %v5628_v25 }
 0x3a0   : > { %v5539_v58 = vadd.f32 %v5538_v43, %v9969_v48  ;;  %v5882_v47 = vmul.f32 %v5753_v0, %v10100_v51  ;;  %v5757_v37 = vsub.f32 1.0, %v5756_v10  ;;  %v5767_v51 = vor.u32 1.1754944e-38, %v5766_v35 }
 0x3a1   : > { %vm5775_vm10 = vweird.f32 %v5628_v25  ;;  %vm5780_vm7 = vcmp.eq.f32.partialorder %v5779_v52, 8.507059e+37 }
 0x3a2   : > { %v10123_v13 = vadd.f32 %v10048_v32, %v5539_v58  ;;  %5947 = vmatmul.f32.gmra.mxu2 %v5882_v47  ;;  %v5758_v15 = vmul.f32 %v6685_v29, %v5757_v37 }
 0x3a4   : > { %v6687_v54 = vpop.eup %6686  ;;  %v6574_v60 = vmul.f32 -1.442695, %v10123_v13  ;;  %v5759_v22 = vadd.f32 %v6685_v29, %v5758_v15 }
 0x3a5   : > { %v6689_v17 = vpop.eup %6688  ;;  %v5629_v48 = vadd.f32 1.0, %v6687_v54 }
 0x3a6   : > { %6690 = vpow2.f32 %v6574_v60  ;;  %v5763_v26 = vsel %vm5762_vm11, %v6685_v29, %v5759_v22  ;;  %v5771_v57 = vmul.f32 %v6689_v17, %v5628_v25  ;;  %vm5776_vm14 = vweird.f32 %v6689_v17 }
 0x3a7   : > { %6692 = vrcp.f32 %v5629_v48  ;;  %v5541_v50 = vpop.f32.mrf.mxu1  ;;  %v5768_v11 = vsel %vm5765_vm1, %v5767_v51, %v5763_v26  ;;  %vm5777_vm5 = vmor %vm5775_vm10, %vm5776_vm14  ;;  %v5796_v61 = vand.u32 2147483648, %v5629_v48  ;;  %v5794_v33 = vand.u32 2147483647, %v5629_v48 }
 0x3a8   : > { %v5542_v36 = vadd.f32 %v5541_v50, %v9975_v1  ;;  %v5883_v18 = vmul.f32 %v5768_v11, %v10105_v3  ;;  %v5772_v49 = vsub.f32 1.0, %v5771_v57  ;;  %v5782_v1 = vor.u32 1.1754944e-38, %v5781_v31 }
 0x3a9   : > { %vm5790_vm8 = vweird.f32 %v5629_v48  ;;  %vm5795_vm6 = vcmp.eq.f32.partialorder %v5794_v33, 8.507059e+37 }
 0x3aa   : > { %v10129_v42 = vadd.f32 %v10048_v32, %v5542_v36  ;;  %5950 = vmatmul.f32.gmra.mxu2 %v5883_v18  ;;  %v5773_v9 = vmul.f32 %v6689_v17, %v5772_v49 }
 0x3ac   : > { %v6691_v38 = vpop.eup %6690  ;;  %v6575_v7 = vmul.f32 -1.442695, %v10129_v42  ;;  %v5774_v2 = vadd.f32 %v6689_v17, %v5773_v9 }
 0x3ad   : > { %v6693_v4 = vpop.eup %6692  ;;  %v5630_v53 = vadd.f32 1.0, %v6691_v38 }
 0x3ae   : > { %6694 = vpow2.f32 %v6575_v7  ;;  %v5778_v3 = vsel %vm5777_vm5, %v6689_v17, %v5774_v2  ;;  %v5786_v30 = vmul.f32 %v6693_v4, %v5629_v48  ;;  %vm5791_vm12 = vweird.f32 %v6693_v4 }
 0x3af   : > { %6696 = vrcp.f32 %v5630_v53  ;;  %v5544_v56 = vpop.f32.mrf.mxu1  ;;  %v5783_v27 = vsel %vm5780_vm7, %v5782_v1, %v5778_v3  ;;  %vm5792_vm3 = vmor %vm5790_vm8, %vm5791_vm12  ;;  %v5811_v44 = vand.u32 2147483648, %v5630_v53  ;;  %v5809_v43 = vand.u32 2147483647, %v5630_v53 }
 0x3b0   : > { %v5545_v46 = vadd.f32 %v5544_v56, %v9990_v16  ;;  %v5884_v12 = vmul.f32 %v5783_v27, %v10111_v41  ;;  %v5787_v20 = vsub.f32 1.0, %v5786_v30  ;;  %v5797_v16 = vor.u32 1.1754944e-38, %v5796_v61 }
 0x3b1   : > { %vm5805_vm13 = vweird.f32 %v5630_v53  ;;  %vm5810_vm9 = vcmp.eq.f32.partialorder %v5809_v43, 8.507059e+37 }
 0x3b2   : > { %v10135_v34 = vadd.f32 %v10048_v32, %v5545_v46  ;;  %5953 = vmatmul.f32.gmra.mxu2 %v5884_v12  ;;  %v5788_v62 = vmul.f32 %v6693_v4, %v5787_v20 }
 0x3b4   : > { %v6695_v39 = vpop.eup %6694  ;;  %v6576_v59 = vmul.f32 -1.442695, %v10135_v34  ;;  %v5789_v28 = vadd.f32 %v6693_v4, %v5788_v62 }
 0x3b5   : > { %v6697_v8 = vpop.eup %6696  ;;  %v5631_v24 = vadd.f32 1.0, %v6695_v39 }
 0x3b6   : > { %6698 = vpow2.f32 %v6576_v59  ;;  %v5793_v41 = vsel %vm5792_vm3, %v6693_v4, %v5789_v28  ;;  %v5801_v6 = vmul.f32 %v6697_v8, %v5630_v53  ;;  %vm5806_vm2 = vweird.f32 %v6697_v8 }
 0x3b7   : > { %6700 = vrcp.f32 %v5631_v24  ;;  %v5547_v55 = vpop.f32.mrf.mxu1  ;;  %v5798_v5 = vsel %vm5795_vm6, %v5797_v16, %v5793_v41  ;;  %vm5807_vm15 = vmor %vm5805_vm13, %vm5806_vm2  ;;  %v5826_v17 = vand.u32 2147483648, %v5631_v24  ;;  %v5824_v26 = vand.u32 2147483647, %v5631_v24 }
 0x3b8   : > { %v5548_v23 = vadd.f32 %v5547_v55, %v10005_v19  ;;  %v5885_v29 = vmul.f32 %v5798_v5, %v10117_v63  ;;  %v5802_v25 = vsub.f32 1.0, %v5801_v6  ;;  %v5812_v19 = vor.u32 1.1754944e-38, %v5811_v44  ;;  %v10163_v44 = vld [vmem:[%s10284_s3 + $0x1] ss:$0 sm:$0xff] }
 0x3b9   : > { %vm5820_vm0 = vweird.f32 %v5631_v24  ;;  %vm5825_vm1 = vcmp.eq.f32.partialorder %v5824_v26, 8.507059e+37 }
 0x3ba   : > { %v10141_v21 = vadd.f32 %v10048_v32, %v5548_v23  ;;  %5956 = vmatmul.f32.gmra.mxu2 %v5885_v29  ;;  %v5803_v10 = vmul.f32 %v6697_v8, %v5802_v25 }
 0x3bc   : > { %v6699_v0 = vpop.eup %6698  ;;  %v6577_v45 = vmul.f32 -1.442695, %v10141_v21  ;;  %v5804_v58 = vadd.f32 %v6697_v8, %v5803_v10  ;;  %v5975_v10 = vld [vmem:[%s10158_s7] sm:$0xff] }
 0x3bd   : > { %v6701_v47 = vpop.eup %6700  ;;  %v5632_v37 = vadd.f32 1.0, %v6699_v0 }
 0x3be   : > { %6702 = vpow2.f32 %v6577_v45  ;;  %v5808_v63 = vsel %vm5807_vm15, %v6697_v8, %v5804_v58  ;;  %v5816_v35 = vmul.f32 %v6701_v47, %v5631_v24  ;;  %vm5821_vm4 = vweird.f32 %v6701_v47  ;;  %v5976_v58 = vld [vmem:[%s10158_s7 + $0x8] sm:$0xff] }
 0x3bf   : > { %6704 = vrcp.f32 %v5632_v37  ;;  %v5550_v15 = vpop.f32.mrf.mxu1  ;;  %v5813_v14 = vsel %vm5810_vm9, %v5812_v19, %v5808_v63  ;;  %vm5822_vm11 = vmor %vm5820_vm0, %vm5821_vm4  ;;  %v5841_v52 = vand.u32 2147483648, %v5632_v37  ;;  %v5839_v7 = vand.u32 2147483647, %v5632_v37  ;;  %v5977_v63 = vld [vmem:[%s10158_s7 + $0x10] sm:$0xff] }
 0x3c0   : > { %v5551_v54 = vadd.f32 %v5550_v15, %v10021_v40  ;;  %v5886_v60 = vmul.f32 %v5813_v14, %v10123_v13  ;;  %v5817_v22 = vsub.f32 1.0, %v5816_v35  ;;  %v5827_v40 = vor.u32 1.1754944e-38, %v5826_v17  ;;  %v6158_v17 = vld [vmem:[#allocation2 + $0x1f8] sm:$0xff] }
 0x3c1   : > { %vm5835_vm10 = vweird.f32 %v5632_v37  ;;  %v5842_v3 = vor.u32 1.1754944e-38, %v5841_v52  ;;  %vm5840_vm7 = vcmp.eq.f32.partialorder %v5839_v7, 8.507059e+37  ;;  %vm6012_vm4 = vcmask 130048   ;;  %6161 = vmatpush.msrb.mxu3 %v6158_v17  ;;  %v6153_v7 = vld [vmem:[#allocation2 + $0x1d0] sm:$0xff] }
 0x3c2   : > { %v10147_v48 = vadd.f32 %v10048_v32, %v5551_v54  ;;  %5959 = vmatmul.f32.gmra.mxu2 %v5886_v60  ;;  %v5818_v51 = vmul.f32 %v6701_v47, %v5817_v22  ;;  %v5978_v54 = vld [vmem:[%s10158_s7 + $0x18] sm:$0xff] }
 0x3c4   : > { %v6703_v57 = vpop.eup %6702  ;;  %v6578_v50 = vmul.f32 -1.442695, %v10147_v48  ;;  %v5819_v11 = vadd.f32 %v6701_v47, %v5818_v51  ;;  %v5979_v51 = vld [vmem:[%s10158_s7 + $0x20] sm:$0xff] }
 0x3c5   : > { %v6705_v36 = vpop.eup %6704  ;;  %v5633_v18 = vadd.f32 1.0, %v6703_v57 }
 0x3c6   : > { %6706 = vpow2.f32 %v6578_v50  ;;  %v5823_v13 = vsel %vm5822_vm11, %v6701_v47, %v5819_v11  ;;  %v5831_v49 = vmul.f32 %v6705_v36, %v5632_v37  ;;  %vm5836_vm14 = vweird.f32 %v6705_v36  ;;  %v6157_v50 = vld [vmem:[#allocation2 + $0x1f0] sm:$0xff]  ;;  %v6156_v11 = vld [vmem:[#allocation2 + $0x1e8] sm:$0xff] }
 0x3c7   : > { %6708 = vrcp.f32 %v5633_v18  ;;  %v5828_v32 = vsel %vm5825_vm1, %v5827_v40, %v5823_v13  ;;  %vm5837_vm5 = vmor %vm5835_vm10, %vm5836_vm14  ;;  %v5856_v12 = vand.u32 2147483648, %v5633_v18  ;;  %v5854_v61 = vand.u32 2147483647, %v5633_v18  ;;  %6162 = vmatpush.msrb.mxu3 %v6157_v50 }
 0x3c8   : > { %v5887_v31 = vmul.f32 %v5828_v32, %v10129_v42  ;;  %v5832_v9 = vsub.f32 1.0, %v5831_v49  ;;  %vm5850_vm8 = vweird.f32 %v5633_v18  ;;  %v6155_v49 = vld [vmem:[#allocation2 + $0x1e0] sm:$0xff] }
 0x3c9   : > { %v5857_v39 = vor.u32 1.1754944e-38, %v5856_v12  ;;  %vm5855_vm6 = vcmp.eq.f32.partialorder %v5854_v61, 8.507059e+37  ;;  %6163 = vmatpush.msrb.mxu3 %v6156_v11  ;;  %v6150_v12 = vld [vmem:[#allocation2 + $0x1b8] sm:$0xff]  ;;  %v5984_v61 = vld [vmem:[%s10158_s7 + $0x48] sm:$0xff] }
 0x3ca   : > { %5962 = vmatmul.f32.gmra.mxu2 %v5887_v31  ;;  %v5833_v38 = vmul.f32 %v6705_v36, %v5832_v9  ;;  %v5981_v31 = vld [vmem:[%s10158_s7 + $0x30] sm:$0xff] }
 0x3cb   : > { %6164 = vmatpush.msrb.mxu3 %v6155_v49 }
 0x3cc   : > { %v6707_v2 = vpop.eup %6706  ;;  %v5834_v4 = vadd.f32 %v6705_v36, %v5833_v38  ;;  %v6154_v38 = vld [vmem:[#allocation2 + $0x1d8] sm:$0xff] }
 0x3cd   : > { %v6709_v53 = vpop.eup %6708  ;;  %v5634_v1 = vadd.f32 1.0, %v6707_v2  ;;  %6165 = vmatpush.msrb.mxu3 %v6154_v38  ;;  %v6258_v38 = vld [vmem:[#allocation2 + $0x278] sm:$0xff] }
 0x3ce   : > { %v5838_v30 = vsel %vm5837_vm5, %v6705_v36, %v5834_v4  ;;  %v5846_v56 = vmul.f32 %v6709_v53, %v5633_v18  ;;  %vm5851_vm12 = vweird.f32 %v6709_v53  ;;  %v5980_v18 = vld [vmem:[%s10158_s7 + $0x28] sm:$0xff]  ;;  %v5982_v4 = vld [vmem:[%s10158_s7 + $0x38] sm:$0xff]  ;;  %6261 = vmatpush.msrb.mxu0 %v6258_v38 }
 0x3cf   : > { %6710 = vrcp.f32 %v5634_v1  ;;  %v5843_v27 = vsel %vm5840_vm7, %v5842_v3, %v5838_v30  ;;  %vm5852_vm3 = vmor %vm5850_vm8, %vm5851_vm12  ;;  %v5869_v6 = vand.u32 2147483647, %v5634_v1  ;;  %vm5865_vm13 = vweird.f32 %v5634_v1  ;;  %6166 = vmatpush.msrb.mxu3 %v6153_v7  ;;  %v6152_v3 = vld [vmem:[#allocation2 + $0x1c8] sm:$0xff] }
 0x3d0   : > { %v5888_v42 = vmul.f32 %v5843_v27, %v10135_v34  ;;  %v5847_v46 = vsub.f32 1.0, %v5846_v56  ;;  %v5871_v34 = vand.u32 2147483648, %v5634_v1  ;;  %v5983_v56 = vld [vmem:[%s10158_s7 + $0x40] sm:$0xff] }
 0x3d1   : > { %vm5870_vm9 = vcmp.eq.f32.partialorder %v5869_v6, 8.507059e+37  ;;  %6167 = vmatpush.msrb.mxu3 %v6152_v3  ;;  %v5986_v6 = vld [vmem:[%s10158_s7 + $0x58] sm:$0xff] }
 0x3d2   : > { %5965 = vmatmul.f32.gmra.mxu2 %v5888_v42  ;;  %v5848_v20 = vmul.f32 %v6709_v53, %v5847_v46  ;;  %v5872_v5 = vor.u32 1.1754944e-38, %v5871_v34  ;;  %v6151_v46 = vld [vmem:[#allocation2 + $0x1c0] sm:$0xff] }
 0x3d3   : > { %6168 = vmatpush.msrb.mxu3 %v6151_v46  ;;  %v6147_v34 = vld [vmem:[#allocation2 + $0x1a0] sm:$0xff] }
 0x3d4   : > { %v5849_v62 = vadd.f32 %v6709_v53, %v5848_v20 }
 0x3d5   : > { %v6711_v33 = vpop.eup %6710  ;;  %6169 = vmatpush.msrb.mxu3 %v6150_v12 }
 0x3d6   : > { %v5853_v59 = vsel %vm5852_vm3, %v6709_v53, %v5849_v62  ;;  %v5861_v28 = vmul.f32 %v6711_v33, %v5634_v1  ;;  %vm5866_vm2 = vweird.f32 %v6711_v33 }
 0x3d7   : > { %v5858_v8 = vsel %vm5855_vm6, %v5857_v39, %v5853_v59  ;;  %vm5867_vm15 = vmor %vm5865_vm13, %vm5866_vm2  ;;  %v6149_v39 = vld [vmem:[#allocation2 + $0x1b0] sm:$0xff]  ;;  %v6148_v59 = vld [vmem:[#allocation2 + $0x1a8] sm:$0xff] }
 0x3d8   : > { %v5889_v24 = vmul.f32 %v5858_v8, %v10141_v21  ;;  %v5862_v16 = vsub.f32 1.0, %v5861_v28  ;;  %v5927_v21 = vpop.f32.mrf.mxu2  ;;  %6170 = vmatpush.msrb.mxu3 %v6149_v39  ;;  %v5985_v8 = vld [vmem:[%s10158_s7 + $0x50] sm:$0xff] }
 0x3d9   : > { %v5928_v43 = vadd.f32 %v10163_v44, %v5927_v21 }
 0x3da   : > { %5968 = vmatmul.f32.gmra.mxu2 %v5889_v24  ;;  %v5863_v41 = vmul.f32 %v6711_v33, %v5862_v16  ;;  %6171 = vmatpush.msrb.mxu3 %v6148_v59  ;;  %v6252_v59 = vld [vmem:[#allocation2 + $0x248] sm:$0xff] }
 0x3db   : > { %v5991_v0 = vadd.f32 %v5975_v10, %v5928_v43  ;;  %v5987_v10 = vld [vmem:[%s10158_s7 + $0x60] sm:$0xff] }
 0x3dc   : > { %v5864_v55 = vadd.f32 %v6711_v33, %v5863_v41  ;;  %6172 = vmatpush.msrb.mxu3 %v6147_v34  ;;  %v6250_v34 = vld [vmem:[#allocation2 + $0x238] sm:$0xff] }
 0x3de   : > { %v5868_v23 = vsel %vm5867_vm15, %v6711_v33, %v5864_v55 }
 0x3df   : > { %v5873_v29 = vsel %vm5870_vm9, %v5872_v5, %v5868_v23  ;;  %v6146_v23 = vld [vmem:[#allocation2 + $0x198] sm:$0xff] }
 0x3e0   : > { %v5890_v25 = vmul.f32 %v5873_v29, %v10147_v48  ;;  %6173 = vmatpush.msrb.mxu3 %v6146_v23  ;;  %v6145_v29 = vld [vmem:[#allocation2 + $0x190] sm:$0xff]  ;;  %v6248_v23 = vld [vmem:[#allocation2 + $0x228] sm:$0xff] }
 0x3e2   : > { %5971 = vmatmul.f32.gmra.mxu2 %v5890_v25  ;;  %v6144_v25 = vld [vmem:[#allocation2 + $0x188] sm:$0xff]  ;;  %6174 = vmatpush.msrb.mxu3 %v6145_v29  ;;  %v6247_v29 = vld [vmem:[#allocation2 + $0x220] sm:$0xff] }
 0x3e4   : > { %6175 = vmatpush.msrb.mxu3 %v6144_v25 }
 0x3ea   : > { %6579 = vmatmul.msk.f32.vlgmr.msrb.gmra.mxu2 %vm6012_vm4, %v5991_v0 }
 0x3ed   : > { %v5930_v45 = vpop.f32.mrf.mxu2 }
 0x3ee   : > { %v5931_v47 = vadd.f32 %v10163_v44, %v5930_v45 }
 0x3f0   : > { %v5992_v37 = vadd.f32 %v5976_v58, %v5931_v47  ;;  %v5988_v58 = vld [vmem:[%s10158_s7 + $0x68] sm:$0xff]  ;;  %v6143_v47 = vld [vmem:[#allocation2 + $0x180] sm:$0xff] }
 0x3f1   : > { %6176 = vmatpush.msrb.mxu3 %v6143_v47 }
 0x3f2   : > { %6580 = vmatmul.msk.f32.gmra.mxu2 %vm6012_vm4, %v5992_v37 }
 0x3f5   : > { %v5933_v19 = vpop.f32.mrf.mxu2 }
 0x3f6   : > { %v5934_v35 = vadd.f32 %v10163_v44, %v5933_v19 }
 0x3f8   : > { %v5993_v15 = vadd.f32 %v5977_v63, %v5934_v35  ;;  %v5989_v35 = vld [vmem:[%s10158_s7 + $0x70] sm:$0xff] }
 0x3fa   : > { %6581 = vmatmul.msk.f32.gmra.mxu2 %vm6012_vm4, %v5993_v15 }
 0x405   : > { %v5936_v14 = vpop.f32.mrf.mxu2 }
 0x406   : > { %v5937_v60 = vadd.f32 %v10163_v44, %v5936_v14 }
 0x408   : > { %v5994_v22 = vadd.f32 %v5978_v54, %v5937_v60  ;;  %v5990_v60 = vld [vmem:[%s10158_s7 + $0x78] sm:$0xff] }
 0x40a   : > { %6582 = vmatmul.msk.f32.gmra.mxu2 %vm6012_vm4, %v5994_v22 }
 0x40d   : > { %v5939_v48 = vpop.f32.mrf.mxu2 }
 0x40e   : > { %v5940_v26 = vadd.f32 %v10163_v44, %v5939_v48  ;;  %v10216_v48 = vld [vmem:[%s10284_s3 + $0x2] ss:$0 sm:$0xff] }
 0x410   : > { %v5995_v57 = vadd.f32 %v5979_v51, %v5940_v26 }
 0x412   : > { %6583 = vmatmul.msk.f32.gmra.mxu2 %vm6012_vm4, %v5995_v57 }
 0x415   : > { %v5942_v36 = vpop.f32.mrf.mxu2 }
 0x416   : > { %v5943_v40 = vadd.f32 %v10163_v44, %v5942_v36 }
 0x418   : > { %v5996_v13 = vadd.f32 %v5980_v18, %v5943_v40 }
 0x41a   : > { %6584 = vmatmul.msk.f32.gmra.mxu2 %vm6012_vm4, %v5996_v13 }
 0x41d   : > { %v5945_v32 = vpop.f32.mrf.mxu2 }
 0x41e   : > { %v5946_v9 = vadd.f32 %v10163_v44, %v5945_v32 }
 0x420   : > { %v5997_v52 = vadd.f32 %v5981_v31, %v5946_v9 }
 0x422   : > { %6585 = vmatmul.msk.f32.vlgmr.msra.gmra.mxu3 %vm6012_vm4, %v5997_v52 }
 0x425   : > { %v5948_v2 = vpop.f32.mrf.mxu2 }
 0x426   : > { %v5949_v53 = vadd.f32 %v10163_v44, %v5948_v2 }
 0x428   : > { %v5998_v1 = vadd.f32 %v5982_v4, %v5949_v53  ;;  %v6257_v53 = vld [vmem:[#allocation2 + $0x270] sm:$0xff] }
 0x429   : > { %6262 = vmatpush.msrb.mxu0 %v6257_v53 }
 0x42a   : > { %6586 = vmatmul.msk.f32.gmra.mxu3 %vm6012_vm4, %v5998_v1  ;;  %v6256_v1 = vld [vmem:[#allocation2 + $0x268] sm:$0xff] }
 0x42b   : > { %6263 = vmatpush.msrb.mxu0 %v6256_v1 }
 0x42d   : > { %v5951_v30 = vpop.f32.mrf.mxu2 }
 0x42e   : > { %v5952_v27 = vadd.f32 %v10163_v44, %v5951_v30 }
 0x430   : > { %v5999_v42 = vadd.f32 %v5983_v56, %v5952_v27  ;;  %v6255_v27 = vld [vmem:[#allocation2 + $0x260] sm:$0xff] }
 0x431   : > { %6264 = vmatpush.msrb.mxu0 %v6255_v27 }
 0x432   : > { %6587 = vmatmul.msk.f32.gmra.mxu3 %vm6012_vm4, %v5999_v42  ;;  %v6254_v42 = vld [vmem:[#allocation2 + $0x258] sm:$0xff] }
 0x433   : > { %6265 = vmatpush.msrb.mxu0 %v6254_v42 }
 0x435   : > { %v5954_v20 = vpop.f32.mrf.mxu2 }
 0x436   : > { %v5955_v62 = vadd.f32 %v10163_v44, %v5954_v20 }
 0x438   : > { %v6000_v33 = vadd.f32 %v5984_v61, %v5955_v62  ;;  %v6253_v61 = vld [vmem:[#allocation2 + $0x250] sm:$0xff] }
 0x439   : > { %6266 = vmatpush.msrb.mxu0 %v6253_v61 }
 0x43a   : > { %6588 = vmatmul.msk.f32.gmra.mxu3 %vm6012_vm4, %v6000_v33 }
 0x43b   : > { %6267 = vmatpush.msrb.mxu0 %v6252_v59 }
 0x43d   : > { %v5957_v28 = vpop.f32.mrf.mxu2 }
 0x43e   : > { %v5958_v24 = vadd.f32 %v10163_v44, %v5957_v28  ;;  %v6251_v28 = vld [vmem:[#allocation2 + $0x240] sm:$0xff] }
 0x43f   : > { %6268 = vmatpush.msrb.mxu0 %v6251_v28 }
 0x440   : > { %v6001_v16 = vadd.f32 %v5985_v8, %v5958_v24 }
 0x441   : > { %6269 = vmatpush.msrb.mxu0 %v6250_v34 }
 0x442   : > { %6589 = vmatmul.msk.f32.gmra.mxu3 %vm6012_vm4, %v6001_v16 }
 0x445   : > { %v5960_v41 = vpop.f32.mrf.mxu2 }
 0x446   : > { %v5961_v55 = vadd.f32 %v10163_v44, %v5960_v41  ;;  %v6249_v41 = vld [vmem:[#allocation2 + $0x230] sm:$0xff] }
 0x447   : > { %6270 = vmatpush.msrb.mxu0 %v6249_v41 }
 0x448   : > { %v6002_v5 = vadd.f32 %v5986_v6, %v5961_v55 }
 0x449   : > { %6271 = vmatpush.msrb.mxu0 %v6248_v23 }
 0x44a   : > { %6590 = vmatmul.msk.f32.gmra.mxu3 %vm6012_vm4, %v6002_v5 }
 0x44b   : > { %6272 = vmatpush.msrb.mxu0 %v6247_v29 }
 0x44d   : > { %v5963_v21 = vpop.f32.mrf.mxu2 }
 0x44e   : > { %v5964_v43 = vadd.f32 %v10163_v44, %v5963_v21 }
 0x450   : > { %v6003_v0 = vadd.f32 %v5987_v10, %v5964_v43  ;;  %v6246_v43 = vld [vmem:[#allocation2 + $0x218] sm:$0xff] }
 0x451   : > { %6273 = vmatpush.msrb.mxu0 %v6246_v43 }
 0x452   : > { %6591 = vmatmul.msk.f32.gmra.mxu3 %vm6012_vm4, %v6003_v0  ;;  %v6245_v0 = vld [vmem:[#allocation2 + $0x210] sm:$0xff] }
 0x453   : > { %6274 = vmatpush.msrb.mxu0 %v6245_v0  ;;  %v6643_v0 = vld [vmem:[%s10284_s3 + $0x4] ss:$0 sm:$0xff] }
 0x455   : > { %v5966_v45 = vpop.f32.mrf.mxu2 }
 0x456   : > { %v5967_v37 = vadd.f32 %v10163_v44, %v5966_v45  ;;  %v6244_v45 = vld [vmem:[#allocation2 + $0x208] sm:$0xff] }
 0x457   : > { %6275 = vmatpush.msrb.mxu0 %v6244_v45 }
 0x458   : > { %v6004_v19 = vadd.f32 %v5988_v58, %v5967_v37 }
 0x45a   : > { %6592 = vmatmul.msk.f32.gmra.mxu3 %vm6012_vm4, %v6004_v19 }
 0x45d   : > { %v5969_v63 = vpop.f32.mrf.mxu2 }
 0x45e   : > { %v5970_v15 = vadd.f32 %v10163_v44, %v5969_v63  ;;  %v6243_v63 = vld [vmem:[#allocation2 + $0x200] sm:$0xff] }
 0x45f   : > { %6276 = vmatpush.msrb.mxu0 %v6243_v63 }
 0x460   : > { %v6005_v14 = vadd.f32 %v5989_v35, %v5970_v15 }
 0x462   : > { %6593 = vmatmul.msk.f32.gmra.mxu3 %vm6012_vm4, %v6005_v14 }
 0x465   : > { %v5972_v54 = vpop.f32.mrf.mxu2 }
 0x466   : > { %v5973_v22 = vadd.f32 %v10163_v44, %v5972_v54 }
 0x468   : > { %v6006_v17 = vadd.f32 %v5990_v60, %v5973_v22 }
 0x46a   : > { %6594 = vmatmul.msk.f32.gmra.mxu3 %vm6012_vm4, %v6006_v17 }
 0x46d   : > { %v6078_v51 = vpop.f32.mrf.mxu2 }
 0x46e   : > { %v6079_v26 = vadd.f32 %v10216_v48, %v6078_v51 }
 0x470   : > { %v6126_v57 = vmax.f32 %v6079_v26, 0.0  ;;  %v6642_v26 = vld [vmem:[%s10284_s3 + $0x3] ss:$0 sm:$0xff] }
 0x472   : > { %6177 = vmatmul.f32.vlgmr.msrb.gmra.mxu3 %v6126_v57 }
 0x475   : > { %v6081_v50 = vpop.f32.mrf.mxu2 }
 0x476   : > { %v6082_v11 = vadd.f32 %v10216_v48, %v6081_v50 }
 0x478   : > { %v6127_v36 = vmax.f32 %v6082_v11, 0.0 }
 0x47a   : > { %6180 = vmatmul.f32.gmra.mxu3 %v6127_v36 }
 0x47d   : > { %v6084_v18 = vpop.f32.mrf.mxu2 }
 0x47e   : > { %v6085_v44 = vadd.f32 %v10216_v48, %v6084_v18 }
 0x480   : > { %v6128_v40 = vmax.f32 %v6085_v44, 0.0 }
 0x482   : > { %6183 = vmatmul.f32.gmra.mxu3 %v6128_v40 }
 0x48d   : > { %v6087_v13 = vpop.f32.mrf.mxu2 }
 0x48e   : > { %v6088_v49 = vadd.f32 %v10216_v48, %v6087_v13 }
 0x490   : > { %v6129_v32 = vmax.f32 %v6088_v49, 0.0 }
 0x492   : > { %6186 = vmatmul.f32.gmra.mxu3 %v6129_v32 }
 0x495   : > { %v6090_v31 = vpop.f32.mrf.mxu2 }
 0x496   : > { %v6091_v9 = vadd.f32 %v10216_v48, %v6090_v31 }
 0x498   : > { %v6130_v52 = vmax.f32 %v6091_v9, 0.0 }
 0x49a   : > { %6189 = vmatmul.f32.gmra.mxu3 %v6130_v52 }
 0x49d   : > { %v6093_v7 = vpop.f32.mrf.mxu2 }
 0x49e   : > { %v6094_v2 = vadd.f32 %v10216_v48, %v6093_v7 }
 0x4a0   : > { %v6131_v4 = vmax.f32 %v6094_v2, 0.0 }
 0x4a2   : > { %6192 = vmatmul.f32.gmra.mxu3 %v6131_v4 }
 0x4a5   : > { %v6096_v3 = vpop.f32.mrf.mxu3 }
 0x4a6   : > { %v6097_v30 = vadd.f32 %v10216_v48, %v6096_v3 }
 0x4a8   : > { %v6132_v56 = vmax.f32 %v6097_v30, 0.0 }
 0x4aa   : > { %6195 = vmatmul.f32.gmra.mxu3 %v6132_v56 }
 0x4ad   : > { %v6099_v46 = vpop.f32.mrf.mxu3 }
 0x4ae   : > { %v6100_v12 = vadd.f32 %v10216_v48, %v6099_v46 }
 0x4b0   : > { %v6133_v20 = vmax.f32 %v6100_v12, 0.0 }
 0x4b2   : > { %6198 = vmatmul.f32.gmra.mxu3 %v6133_v20 }
 0x4b5   : > { %v6102_v62 = vpop.f32.mrf.mxu3 }
 0x4b6   : > { %v6103_v33 = vadd.f32 %v10216_v48, %v6102_v62 }
 0x4b8   : > { %v6134_v39 = vmax.f32 %v6103_v33, 0.0 }
 0x4ba   : > { %6201 = vmatmul.f32.gmra.mxu3 %v6134_v39 }
 0x4bd   : > { %v6105_v8 = vpop.f32.mrf.mxu3 }
 0x4be   : > { %v6106_v24 = vadd.f32 %v10216_v48, %v6105_v8 }
 0x4c0   : > { %v6135_v16 = vmax.f32 %v6106_v24, 0.0 }
 0x4c2   : > { %6204 = vmatmul.f32.gmra.mxu3 %v6135_v16 }
 0x4c5   : > { %v6108_v6 = vpop.f32.mrf.mxu3 }
 0x4c6   : > { %v6109_v55 = vadd.f32 %v10216_v48, %v6108_v6 }
 0x4c8   : > { %v6136_v5 = vmax.f32 %v6109_v55, 0.0 }
 0x4ca   : > { %6207 = vmatmul.f32.gmra.mxu3 %v6136_v5 }
 0x4cd   : > { %v6111_v25 = vpop.f32.mrf.mxu3 }
 0x4ce   : > { %v6112_v21 = vadd.f32 %v10216_v48, %v6111_v25 }
 0x4d0   : > { %v6137_v10 = vmax.f32 %v6112_v21, 0.0 }
 0x4d2   : > { %6210 = vmatmul.f32.gmra.mxu3 %v6137_v10 }
 0x4d5   : > { %v6114_v58 = vpop.f32.mrf.mxu3 }
 0x4d6   : > { %v6115_v47 = vadd.f32 %v10216_v48, %v6114_v58 }
 0x4d8   : > { %v6138_v37 = vmax.f32 %v6115_v47, 0.0 }
 0x4da   : > { %6213 = vmatmul.f32.gmra.mxu3 %v6138_v37 }
 0x4dd   : > { %v6117_v19 = vpop.f32.mrf.mxu3 }
 0x4de   : > { %v6118_v35 = vadd.f32 %v10216_v48, %v6117_v19 }
 0x4e0   : > { %v6139_v15 = vmax.f32 %v6118_v35, 0.0 }
 0x4e2   : > { %6216 = vmatmul.f32.gmra.mxu3 %v6139_v15 }
 0x4e5   : > { %v6120_v14 = vpop.f32.mrf.mxu3 }
 0x4e6   : > { %v6121_v54 = vadd.f32 %v10216_v48, %v6120_v14 }
 0x4e8   : > { %v6140_v60 = vmax.f32 %v6121_v54, 0.0 }
 0x4ea   : > { %6219 = vmatmul.f32.gmra.mxu3 %v6140_v60 }
 0x4ed   : > { %v6123_v22 = vpop.f32.mrf.mxu3 }
 0x4ee   : > { %v6124_v17 = vadd.f32 %v10216_v48, %v6123_v22 }
 0x4f0   : > { %v6141_v51 = vmax.f32 %v6124_v17, 0.0 }
 0x4f2   : > { %6222 = vmatmul.f32.gmra.mxu3 %v6141_v51 }
 0x4f5   : > { %v6178_v57 = vpop.f32.mrf.mxu3 }
 0x4f6   : > { %v6179_v50 = vadd.f32 %v6642_v26, %v6178_v57 }
 0x4f8   : > { %v6226_v11 = vmax.f32 %v6179_v50, 0.0 }
 0x4fa   : > { %6277 = vmatmul.f32.vlgmr.msrb.gmra.mxu0 %v6226_v11 }
 0x4fd   : > { %v6181_v36 = vpop.f32.mrf.mxu3 }
 0x4fe   : > { %v6182_v18 = vadd.f32 %v6642_v26, %v6181_v36 }
 0x500   : > { %v6227_v44 = vmax.f32 %v6182_v18, 0.0 }
 0x502   : > { %6280 = vmatmul.f32.gmra.mxu0 %v6227_v44 }
 0x505   : > { %v6184_v40 = vpop.f32.mrf.mxu3 }
 0x506   : > { %v6185_v13 = vadd.f32 %v6642_v26, %v6184_v40 }
 0x508   : > { %v6228_v49 = vmax.f32 %v6185_v13, 0.0 }
 0x50a   : > { %6283 = vmatmul.f32.gmra.mxu0 %v6228_v49 }
 0x515   : > { %v6187_v32 = vpop.f32.mrf.mxu3 }
 0x516   : > { %v6188_v48 = vadd.f32 %v6642_v26, %v6187_v32 }
 0x518   : > { %v6229_v31 = vmax.f32 %v6188_v48, 0.0 }
 0x51a   : > { %6286 = vmatmul.f32.gmra.mxu0 %v6229_v31 }
 0x51d   : > { %v6190_v9 = vpop.f32.mrf.mxu3 }
 0x51e   : > { %v6191_v52 = vadd.f32 %v6642_v26, %v6190_v9 }
 0x520   : > { %v6230_v38 = vmax.f32 %v6191_v52, 0.0 }
 0x522   : > { %6289 = vmatmul.f32.gmra.mxu0 %v6230_v38 }
 0x525   : > { %v6193_v7 = vpop.f32.mrf.mxu3 }
 0x526   : > { %v6194_v2 = vadd.f32 %v6642_v26, %v6193_v7 }
 0x528   : > { %v6231_v4 = vmax.f32 %v6194_v2, 0.0 }
 0x52a   : > { %6292 = vmatmul.f32.gmra.mxu0 %v6231_v4 }
 0x52d   : > { %v6196_v53 = vpop.f32.mrf.mxu3 }
 0x52e   : > { %v6197_v1 = vadd.f32 %v6642_v26, %v6196_v53 }
 0x530   : > { %v6232_v3 = vmax.f32 %v6197_v1, 0.0 }
 0x532   : > { %6295 = vmatmul.f32.gmra.mxu0 %v6232_v3 }
 0x535   : > { %v6199_v30 = vpop.f32.mrf.mxu3 }
 0x536   : > { %v6200_v56 = vadd.f32 %v6642_v26, %v6199_v30 }
 0x538   : > { %v6233_v27 = vmax.f32 %v6200_v56, 0.0 }
 0x53a   : > { %6298 = vmatmul.f32.gmra.mxu0 %v6233_v27 }
 0x53d   : > { %v6202_v42 = vpop.f32.mrf.mxu3 }
 0x53e   : > { %v6203_v46 = vadd.f32 %v6642_v26, %v6202_v42 }
 0x540   : > { %v6234_v12 = vmax.f32 %v6203_v46, 0.0 }
 0x542   : > { %6301 = vmatmul.f32.gmra.mxu0 %v6234_v12 }
 0x545   : > { %v6205_v20 = vpop.f32.mrf.mxu3 }
 0x546   : > { %v6206_v61 = vadd.f32 %v6642_v26, %v6205_v20 }
 0x548   : > { %v6235_v62 = vmax.f32 %v6206_v61, 0.0 }
 0x54a   : > { %6304 = vmatmul.f32.gmra.mxu0 %v6235_v62 }
 0x54d   : > { %v6208_v33 = vpop.f32.mrf.mxu3 }
 0x54e   : > { %v6209_v39 = vadd.f32 %v6642_v26, %v6208_v33 }
 0x550   : > { %v6236_v59 = vmax.f32 %v6209_v39, 0.0 }
 0x552   : > { %6307 = vmatmul.f32.gmra.mxu0 %v6236_v59 }
 0x555   : > { %v6211_v28 = vpop.f32.mrf.mxu3 }
 0x556   : > { %v6212_v8 = vadd.f32 %v6642_v26, %v6211_v28 }
 0x558   : > { %v6237_v24 = vmax.f32 %v6212_v8, 0.0 }
 0x55a   : > { %6310 = vmatmul.f32.gmra.mxu0 %v6237_v24 }
 0x55d   : > { %v6214_v16 = vpop.f32.mrf.mxu3 }
 0x55e   : > { %v6215_v34 = vadd.f32 %v6642_v26, %v6214_v16 }
 0x560   : > { %v6238_v41 = vmax.f32 %v6215_v34, 0.0 }
 0x562   : > { %6313 = vmatmul.f32.gmra.mxu0 %v6238_v41 }
 0x565   : > { %v6217_v6 = vpop.f32.mrf.mxu3 }
 0x566   : > { %v6218_v55 = vadd.f32 %v6642_v26, %v6217_v6 }
 0x568   : > { %v6239_v5 = vmax.f32 %v6218_v55, 0.0 }
 0x56a   : > { %6316 = vmatmul.f32.gmra.mxu0 %v6239_v5 }
 0x56d   : > { %v6220_v23 = vpop.f32.mrf.mxu3 }
 0x56e   : > { %v6221_v29 = vadd.f32 %v6642_v26, %v6220_v23 }
 0x570   : > { %v6240_v25 = vmax.f32 %v6221_v29, 0.0 }
 0x572   : > { %6319 = vmatmul.f32.gmra.mxu0 %v6240_v25 }
 0x575   : > { %v6223_v21 = vpop.f32.mrf.mxu3 }
 0x576   : > { %v6224_v10 = vadd.f32 %v6642_v26, %v6223_v21 }
 0x577   : > { %v6278_v45 = vpop.f32.mrf.mxu0 }
 0x578   : > { %v6241_v43 = vmax.f32 %v6224_v10, 0.0  ;;  %v6279_v58 = vadd.f32 %v6643_v0, %v6278_v45 }
 0x57a   : > { %6322 = vmatmul.f32.gmra.mxu0 %v6241_v43  ;;  %6326 = vst.msk [vmem:[%s10244_s19] sm:$0xff] %vm6012_vm4, %v6279_v58 }
 0x57f   : > { %v6281_v47 = vpop.f32.mrf.mxu0 }
 0x580   : > { %v6282_v37 = vadd.f32 %v6643_v0, %v6281_v47 }
 0x582   : > { %6327 = vst.msk [vmem:[%s10244_s19 + $0x8] sm:$0xff] %vm6012_vm4, %v6282_v37 }
 0x587   : > { %v6284_v19 = vpop.f32.mrf.mxu0 }
 0x588   : > { %v6285_v63 = vadd.f32 %v6643_v0, %v6284_v19 }
 0x58a   : > { %6328 = vst.msk [vmem:[%s10244_s19 + $0x10] sm:$0xff] %vm6012_vm4, %v6285_v63 }
 0x597   : > { %v6287_v35 = vpop.f32.mrf.mxu0 }
 0x598   : > { %v6288_v15 = vadd.f32 %v6643_v0, %v6287_v35 }
 0x59a   : > { %6329 = vst.msk [vmem:[%s10244_s19 + $0x18] sm:$0xff] %vm6012_vm4, %v6288_v15 }
 0x59f   : > { %v6290_v14 = vpop.f32.mrf.mxu0 }
 0x5a0   : > { %v6291_v54 = vadd.f32 %v6643_v0, %v6290_v14 }
 0x5a2   : > { %6330 = vst.msk [vmem:[%s10244_s19 + $0x20] sm:$0xff] %vm6012_vm4, %v6291_v54 }
 0x5a7   : > { %v6293_v60 = vpop.f32.mrf.mxu0 }
 0x5a8   : > { %v6294_v22 = vadd.f32 %v6643_v0, %v6293_v60 }
 0x5aa   : > { %6331 = vst.msk [vmem:[%s10244_s19 + $0x28] sm:$0xff] %vm6012_vm4, %v6294_v22 }
 0x5af   : > { %v6296_v17 = vpop.f32.mrf.mxu0 }
 0x5b0   : > { %v6297_v51 = vadd.f32 %v6643_v0, %v6296_v17 }
 0x5b2   : > { %6332 = vst.msk [vmem:[%s10244_s19 + $0x30] sm:$0xff] %vm6012_vm4, %v6297_v51 }
 0x5b7   : > { %v6299_v26 = vpop.f32.mrf.mxu0 }
 0x5b8   : > { %v6300_v57 = vadd.f32 %v6643_v0, %v6299_v26 }
 0x5ba   : > { %6333 = vst.msk [vmem:[%s10244_s19 + $0x38] sm:$0xff] %vm6012_vm4, %v6300_v57 }
 0x5bf   : > { %v6302_v50 = vpop.f32.mrf.mxu0 }
 0x5c0   : > { %v6303_v11 = vadd.f32 %v6643_v0, %v6302_v50 }
 0x5c2   : > { %6334 = vst.msk [vmem:[%s10244_s19 + $0x40] sm:$0xff] %vm6012_vm4, %v6303_v11 }
 0x5c7   : > { %v6305_v36 = vpop.f32.mrf.mxu0 }
 0x5c8   : > { %v6306_v18 = vadd.f32 %v6643_v0, %v6305_v36 }
 0x5ca   : > { %6335 = vst.msk [vmem:[%s10244_s19 + $0x48] sm:$0xff] %vm6012_vm4, %v6306_v18 }
 0x5cf   : > { %v6308_v44 = vpop.f32.mrf.mxu0 }
 0x5d0   : > { %v6309_v40 = vadd.f32 %v6643_v0, %v6308_v44 }
 0x5d2   : > { %6336 = vst.msk [vmem:[%s10244_s19 + $0x50] sm:$0xff] %vm6012_vm4, %v6309_v40 }
 0x5d7   : > { %v6311_v13 = vpop.f32.mrf.mxu0 }
 0x5d8   : > { %v6312_v49 = vadd.f32 %v6643_v0, %v6311_v13 }
 0x5da   : > { %6337 = vst.msk [vmem:[%s10244_s19 + $0x58] sm:$0xff] %vm6012_vm4, %v6312_v49 }
 0x5df   : > { %v6314_v32 = vpop.f32.mrf.mxu0 }
 0x5e0   : > { %v6315_v48 = vadd.f32 %v6643_v0, %v6314_v32 }
 0x5e2   : > { %6338 = vst.msk [vmem:[%s10244_s19 + $0x60] sm:$0xff] %vm6012_vm4, %v6315_v48 }
 0x5e7   : > { %v6317_v31 = vpop.f32.mrf.mxu0 }
 0x5e8   : > { %v6318_v9 = vadd.f32 %v6643_v0, %v6317_v31 }
 0x5ea   : > { %6339 = vst.msk [vmem:[%s10244_s19 + $0x68] sm:$0xff] %vm6012_vm4, %v6318_v9 }
 0x5ef   : > { %v6320_v52 = vpop.f32.mrf.mxu0 }
 0x5f0   : > { %v6321_v38 = vadd.f32 %v6643_v0, %v6320_v52 }
 0x5f2   : > { %6340 = vst.msk [vmem:[%s10244_s19 + $0x70] sm:$0xff] %vm6012_vm4, %v6321_v38 }
 0x5f7   : > { %v6323_v7 = vpop.f32.mrf.mxu0 }
 0x5f8   : > { %v6324_v2 = vadd.f32 %v6643_v0, %v6323_v7 }
 0x5fa   : > { %6341 = vst.msk [vmem:[%s10244_s19 + $0x78] sm:$0xff] %vm6012_vm4, %v6324_v2 }
 0x5fb PF: > { %s15_s15 = sadd.s32 1, %s6752_s15  }
 0x5fc   : > { %p12_p7 = scmp.ge.s32.totalorder %s15_s15, 4  }
 0x5fe   :  { %14 = sbr.rel (!%p12_p7) target bundleno = 1 (0x1), region = 78 }
 0x603   :  { %6364 = vsyncpa [#allocation3], 1 }
 0x604   :  { %6366 = vsyncpa [#allocation3 + $0x1], 1 }

</bundles_post_ra>
